<compile_context>
chip_gen: v6e
topology: v6e:2x2x1
jax: 0.10.0
libtpu: 0.0.40
codegen_flags: <defaults>
</compile_context>

<pallas_src>
import math
import functools

import jax
import jax.numpy as jnp
from jax.experimental import pallas as pl
from jax.experimental.pallas import tpu as pltpu

# ---------------------------------------------------------------------------
# dtype policy: bf16 operands for every matmul (MXU-native), f32 accumulators
# and LayerNorm math, f32 biases / LN params, f32 final logits.
# ---------------------------------------------------------------------------
ACT_DTYPE = jnp.bfloat16

# ---------------------------------------------------------------------------
# Tile-size selection helpers (keep blocks (8,128)-aligned, VMEM-friendly)
# ---------------------------------------------------------------------------
_LANE_CANDS = (1024, 512, 256, 128)            # output-column tiles
_ROW_CANDS = (512, 256, 128, 64, 32, 16, 8)    # row tiles for matmul kernels (v7x-safe)
_ROW_CANDS_LN = (1024,) + _ROW_CANDS           # memory-bound LayerNorm row tiles
_FF_CANDS = (512, 256, 128)                    # dim_feedforward contraction tile


def _pick(dim, cands):
    for c in cands:
        if dim % c == 0:
            return c
    return dim  # fall back to the full dimension (always legal)


def _layernorm_rows(y_f32, g, b, eps=1e-5):
    """Row-wise LayerNorm in f32. g, b are (1, d)."""
    mean = jnp.mean(y_f32, axis=-1, keepdims=True)
    c = y_f32 - mean
    var = jnp.mean(c * c, axis=-1, keepdims=True)
    return c * jax.lax.rsqrt(var + eps) * g + b


# ---------------------------------------------------------------------------
# Kernel 1: tiled linear (matmul + bias [+ ReLU]); fast path when the whole
# contraction fits one tile (no accumulator scratch round-trip).
# ---------------------------------------------------------------------------
def _linear_nok_kernel(x_ref, w_ref, b_ref, o_ref, *, activation):
    y = jnp.dot(x_ref[...], w_ref[...], preferred_element_type=jnp.float32) + b_ref[...]
    if activation == "relu":
        y = jnp.maximum(y, 0.0)
    o_ref[...] = y.astype(o_ref.dtype)


def _linear_acc_kernel(x_ref, w_ref, b_ref, o_ref, acc_ref, *, activation):
    @pl.when(pl.program_id(2) == 0)
    def _():
        acc_ref[...] = jnp.zeros_like(acc_ref)

    acc_ref[...] += jnp.dot(x_ref[...], w_ref[...], preferred_element_type=jnp.float32)

    @pl.when(pl.program_id(2) == pl.num_programs(2) - 1)
    def _():
        y = acc_ref[...] + b_ref[...]
        if activation == "relu":
            y = jnp.maximum(y, 0.0)
        o_ref[...] = y.astype(o_ref.dtype)


def linear(x2d, w, b, activation=None, out_dtype=ACT_DTYPE):
    """x2d: (R, IN) bf16  w: (IN, OUT) bf16  b: (1, OUT) f32  ->  (R, OUT)"""
    R, IN = x2d.shape
    OUT = w.shape[1]
    TM = _pick(R, _ROW_CANDS)
    TN = _pick(OUT, _LANE_CANDS)
    TK = _pick(IN, _LANE_CANDS)

    if TK == IN:  # whole contraction in one step: no accumulator scratch
        return pl.pallas_call(
            functools.partial(_linear_nok_kernel, activation=activation),
            out_shape=jax.ShapeDtypeStruct((R, OUT), out_dtype),
            grid=(R // TM, OUT // TN),
            in_specs=[pl.BlockSpec((TM, IN), lambda i, j: (i, 0)),
                      pl.BlockSpec((IN, TN), lambda i, j: (0, j)),
                      pl.BlockSpec((1, TN), lambda i, j: (0, j))],
            out_specs=pl.BlockSpec((TM, TN), lambda i, j: (i, j)),
            compiler_params=pltpu.CompilerParams(
                dimension_semantics=("parallel", "parallel"),
                vmem_limit_bytes=64 * 1024 * 1024),
        )(x2d, w, b)

    return pl.pallas_call(
        functools.partial(_linear_acc_kernel, activation=activation),
        out_shape=jax.ShapeDtypeStruct((R, OUT), out_dtype),
        grid=(R // TM, OUT // TN, IN // TK),
        in_specs=[pl.BlockSpec((TM, TK), lambda i, j, k: (i, k)),
                  pl.BlockSpec((TK, TN), lambda i, j, k: (k, j)),
                  pl.BlockSpec((1, TN), lambda i, j, k: (0, j))],
        out_specs=pl.BlockSpec((TM, TN), lambda i, j, k: (i, j)),
        scratch_shapes=[pltpu.VMEM((TM, TN), jnp.float32)],
        compiler_params=pltpu.CompilerParams(
            dimension_semantics=("parallel", "parallel", "arbitrary"),
            vmem_limit_bytes=64 * 1024 * 1024),
    )(x2d, w, b)


# ---------------------------------------------------------------------------
# Kernel 2: fused  LayerNorm(residual + x @ W + b)   (attention out-projection)
# (contraction = d_model fits one lane tile; TODO(synk): tile it if d_model
#  ever exceeds 1024.)
# ---------------------------------------------------------------------------
def _lin_res_ln_kernel(x_ref, w_ref, b_ref, r_ref, g_ref, bln_ref, o_ref):
    y = (jnp.dot(x_ref[...], w_ref[...], preferred_element_type=jnp.float32)
         + b_ref[...] + r_ref[...].astype(jnp.float32))
    o_ref[...] = _layernorm_rows(y, g_ref[...], bln_ref[...]).astype(o_ref.dtype)


def linear_residual_layernorm(x2d, w, b, res2d, g, bln):
    """LN(res + x @ W + b); x2d:(R,d) bf16, w:(d,d) bf16, res:(R,d) bf16 -> (R,d) bf16"""
    R, d = x2d.shape
    TM = _pick(R, _ROW_CANDS)
    return pl.pallas_call(
        _lin_res_ln_kernel,
        out_shape=jax.ShapeDtypeStruct((R, d), ACT_DTYPE),
        grid=(R // TM,),
        in_specs=[pl.BlockSpec((TM, d), lambda i: (i, 0)),
                  pl.BlockSpec((d, d), lambda i: (0, 0)),
                  pl.BlockSpec((1, d), lambda i: (0, 0)),
                  pl.BlockSpec((TM, d), lambda i: (i, 0)),
                  pl.BlockSpec((1, d), lambda i: (0, 0)),
                  pl.BlockSpec((1, d), lambda i: (0, 0))],
        out_specs=pl.BlockSpec((TM, d), lambda i: (i, 0)),
        compiler_params=pltpu.CompilerParams(dimension_semantics=("parallel",)),
    )(x2d, w, b, res2d, g, bln)


# ---------------------------------------------------------------------------
# Kernel 3: fused FFN  LayerNorm(x + relu(x@W1+b1)@W2 + b2)
# Tiled over dim_feedforward with an f32 accumulator (bounded VMEM / vregs on
# v7x); single-step fast path when ff fits one tile.
# ---------------------------------------------------------------------------
def _ffn_res_ln_kernel(x_ref, w1_ref, b1_ref, w2_ref, b2_ref, g_ref, bln_ref,
                       o_ref, acc_ref):
    f = pl.program_id(1)

    @pl.when(f == 0)
    def _():
        acc_ref[...] = jnp.zeros_like(acc_ref)

    h = jnp.dot(x_ref[...], w1_ref[...], preferred_element_type=jnp.float32) + b1_ref[...]
    h = jnp.maximum(h, 0.0).astype(ACT_DTYPE)
    acc_ref[...] += jnp.dot(h, w2_ref[...], preferred_element_type=jnp.float32)

    @pl.when(f == pl.num_programs(1) - 1)
    def _():
        y = acc_ref[...] + b2_ref[...] + x_ref[...].astype(jnp.float32)
        o_ref[...] = _layernorm_rows(y, g_ref[...], bln_ref[...]).astype(o_ref.dtype)


def _ffn_res_ln_single_kernel(x_ref, w1_ref, b1_ref, w2_ref, b2_ref, g_ref, bln_ref,
                              o_ref):
    x = x_ref[...]
    h = jnp.dot(x, w1_ref[...], preferred_element_type=jnp.float32) + b1_ref[...]
    h = jnp.maximum(h, 0.0).astype(ACT_DTYPE)
    y = (jnp.dot(h, w2_ref[...], preferred_element_type=jnp.float32)
         + b2_ref[...] + x.astype(jnp.float32))
    o_ref[...] = _layernorm_rows(y, g_ref[...], bln_ref[...]).astype(o_ref.dtype)


def ffn_residual_layernorm(x2d, w1, b1, w2, b2, g, bln):
    R, d = x2d.shape
    ff = w1.shape[1]
    TM = _pick(R, _ROW_CANDS)
    TF = _pick(ff, _FF_CANDS)

    if TF == ff:  # whole ff in one step: skip the accumulator round-trip
        return pl.pallas_call(
            _ffn_res_ln_single_kernel,
            out_shape=jax.ShapeDtypeStruct((R, d), ACT_DTYPE),
            grid=(R // TM,),
            in_specs=[pl.BlockSpec((TM, d), lambda i: (i, 0)),
                      pl.BlockSpec((d, ff), lambda i: (0, 0)),
                      pl.BlockSpec((1, ff), lambda i: (0, 0)),
                      pl.BlockSpec((ff, d), lambda i: (0, 0)),
                      pl.BlockSpec((1, d), lambda i: (0, 0)),
                      pl.BlockSpec((1, d), lambda i: (0, 0)),
                      pl.BlockSpec((1, d), lambda i: (0, 0))],
            out_specs=pl.BlockSpec((TM, d), lambda i: (i, 0)),
            compiler_params=pltpu.CompilerParams(
                dimension_semantics=("parallel",),
                vmem_limit_bytes=64 * 1024 * 1024),
        )(x2d, w1, b1, w2, b2, g, bln)

    return pl.pallas_call(
        _ffn_res_ln_kernel,
        out_shape=jax.ShapeDtypeStruct((R, d), ACT_DTYPE),
        grid=(R // TM, ff // TF),
        in_specs=[pl.BlockSpec((TM, d), lambda i, f: (i, 0)),
                  pl.BlockSpec((d, TF), lambda i, f: (0, f)),
                  pl.BlockSpec((1, TF), lambda i, f: (0, f)),
                  pl.BlockSpec((TF, d), lambda i, f: (f, 0)),
                  pl.BlockSpec((1, d), lambda i, f: (0, 0)),
                  pl.BlockSpec((1, d), lambda i, f: (0, 0)),
                  pl.BlockSpec((1, d), lambda i, f: (0, 0))],
        out_specs=pl.BlockSpec((TM, d), lambda i, f: (i, 0)),
        scratch_shapes=[pltpu.VMEM((TM, d), jnp.float32)],
        compiler_params=pltpu.CompilerParams(
            dimension_semantics=("parallel", "arbitrary"),
            vmem_limit_bytes=64 * 1024 * 1024),
    )(x2d, w1, b1, w2, b2, g, bln)


# ---------------------------------------------------------------------------
# Kernel 4: plain tiled LayerNorm (final encoder stack norm)
# ---------------------------------------------------------------------------
def _ln_kernel(x_ref, g_ref, b_ref, o_ref):
    x = x_ref[...].astype(jnp.float32)
    o_ref[...] = _layernorm_rows(x, g_ref[...], b_ref[...]).astype(o_ref.dtype)


def layernorm(x2d, g, b):
    R, d = x2d.shape
    TM = _pick(R, _ROW_CANDS_LN)
    return pl.pallas_call(
        _ln_kernel,
        out_shape=jax.ShapeDtypeStruct((R, d), ACT_DTYPE),
        grid=(R // TM,),
        in_specs=[pl.BlockSpec((TM, d), lambda i: (i, 0)),
                  pl.BlockSpec((1, d), lambda i: (0, 0)),
                  pl.BlockSpec((1, d), lambda i: (0, 0))],
        out_specs=pl.BlockSpec((TM, d), lambda i: (i, 0)),
        compiler_params=pltpu.CompilerParams(dimension_semantics=("parallel",)),
    )(x2d, g, b)


# ---------------------------------------------------------------------------
# Kernel 5: fused  LayerNorm(x) @ W + b   (final decoder-stack norm + logits)
# LN is recomputed per output-column tile (pure VPU/EUP filler under the
# MXU-bound logits matmul), saving a full (N*T, d) HBM write+read.
# TODO(synk): tile the d contraction if d_model exceeds one lane tile.
# ---------------------------------------------------------------------------
def _ln_linear_kernel(x_ref, g_ref, bln_ref, w_ref, b_ref, o_ref):
    xn = _layernorm_rows(x_ref[...].astype(jnp.float32), g_ref[...], bln_ref[...])
    y = (jnp.dot(xn.astype(ACT_DTYPE), w_ref[...], preferred_element_type=jnp.float32)
         + b_ref[...])
    o_ref[...] = y.astype(o_ref.dtype)


def layernorm_linear(x2d, g, bln, w, b):
    """LN(x) @ W + b; x:(R,d) bf16, w:(d,V) bf16 -> (R,V) f32 logits."""
    R, d = x2d.shape
    V = w.shape[1]
    TM = _pick(R, _ROW_CANDS)
    TN = _pick(V, _LANE_CANDS)
    return pl.pallas_call(
        _ln_linear_kernel,
        out_shape=jax.ShapeDtypeStruct((R, V), jnp.float32),
        grid=(R // TM, V // TN),
        in_specs=[pl.BlockSpec((TM, d), lambda i, j: (i, 0)),
                  pl.BlockSpec((1, d), lambda i, j: (0, 0)),
                  pl.BlockSpec((1, d), lambda i, j: (0, 0)),
                  pl.BlockSpec((d, TN), lambda i, j: (0, j)),
                  pl.BlockSpec((1, TN), lambda i, j: (0, j))],
        out_specs=pl.BlockSpec((TM, TN), lambda i, j: (i, j)),
        compiler_params=pltpu.CompilerParams(
            dimension_semantics=("parallel", "parallel"),
            vmem_limit_bytes=64 * 1024 * 1024),
    )(x2d, g, bln, w, b)


# ---------------------------------------------------------------------------
# Kernel 6: multi-head attention core.
#   grid = (batch, Lq // TQ); q/k/v views are selected straight out of the
#   fused projection slabs via 128-aligned BlockSpec column blocks (no XLA
#   slicing copies).  All heads are processed in-register and stored with ONE
#   full-width lane-dense write per grid step.  The 1/sqrt(head_dim) scale is
#   folded into the Q projection weights at parameter build time.
#   (No mask: reference call uses src_mask=tgt_mask=None.)
# ---------------------------------------------------------------------------
def _mha_kernel(q_ref, k_ref, v_ref, o_ref, *, num_heads):
    d = o_ref.shape[-1]
    hd = d // num_heads
    q = q_ref[...]            # (TQ, d) bf16, pre-scaled Q
    k = k_ref[...]            # (Lk, d) bf16
    v = v_ref[...]            # (Lk, d) bf16
    outs = []
    for h in range(num_heads):            # static unroll over heads
        sl = slice(h * hd, (h + 1) * hd)
        s = jax.lax.dot_general(q[:, sl], k[:, sl],
                                (((1,), (1,)), ((), ())),
                                preferred_element_type=jnp.float32)   # (TQ, Lk)
        m = jnp.max(s, axis=-1, keepdims=True)
        p = jnp.exp(s - m)
        p = p * pl.reciprocal(jnp.sum(p, axis=-1, keepdims=True), approx=True)
        outs.append(jnp.dot(p.astype(ACT_DTYPE), v[:, sl],
                            preferred_element_type=jnp.float32))       # (TQ, hd)
    # single full-width lane-dense store (no per-head sub-128 masked stores)
    o_ref[...] = jnp.concatenate(outs, axis=-1).astype(o_ref.dtype)


def _mha_call(q_src, kv_src, Lq, Lk, d, num_heads, q_idx, k_idx, v_idx):
    N = q_src.shape[0]
    TQ = _pick(Lq, _ROW_CANDS)
    return pl.pallas_call(
        functools.partial(_mha_kernel, num_heads=num_heads),
        out_shape=jax.ShapeDtypeStruct((N, Lq, d), ACT_DTYPE),
        grid=(N, Lq // TQ),
        in_specs=[
            # q tile: rows [qi*TQ, ...), d columns starting at block q_idx*d
            pl.BlockSpec((None, TQ, d), lambda n, qi, b=q_idx: (n, qi, b)),
            # full K / V: resident across the qi loop (block index fixed at 0)
            pl.BlockSpec((None, Lk, d), lambda n, qi, b=k_idx: (n, 0, b)),
            pl.BlockSpec((None, Lk, d), lambda n, qi, b=v_idx: (n, 0, b)),
        ],
        out_specs=pl.BlockSpec((None, TQ, d), lambda n, qi: (n, qi, 0)),
        compiler_params=pltpu.CompilerParams(
            dimension_semantics=("parallel", "parallel")),
    )(q_src, kv_src, kv_src)


def mha_self(qkv, d, num_heads):
    """qkv: (N, L, 3d) fused Q|K|V projection slab -> (N, L, d)."""
    _, L, _ = qkv.shape
    return _mha_call(qkv, qkv, L, L, d, num_heads, q_idx=0, k_idx=1, v_idx=2)


def mha_cross(q, kv, d, num_heads):
    """q: (N, T, d); kv: (N, S, 2d) fused K|V slab -> (N, T, d)."""
    T = q.shape[1]
    S = kv.shape[1]
    return _mha_call(q, kv, T, S, d, num_heads, q_idx=0, k_idx=0, v_idx=1)


# ---------------------------------------------------------------------------
# Transformer layers (thin glue around the fused kernels; batch-first layout,
# every kernel sees a lane-dense (rows, features) slab)
# ---------------------------------------------------------------------------
def encoder_layer(x, p, num_heads):
    """x: (N, S, d) bf16 -> (N, S, d) bf16"""
    N, S, d = x.shape
    x2d = x.reshape(N * S, d)
    qkv = linear(x2d, p["self_attn"]["wqkv"], p["self_attn"]["bqkv"]).reshape(N, S, 3 * d)
    a = mha_self(qkv, d, num_heads).reshape(N * S, d)
    x1 = linear_residual_layernorm(a, p["self_attn"]["wo"], p["self_attn"]["bo"],
                                   x2d, p["norm1"]["g"], p["norm1"]["b"])
    y = ffn_residual_layernorm(x1, p["linear1"]["w"], p["linear1"]["b"],
                               p["linear2"]["w"], p["linear2"]["b"],
                               p["norm2"]["g"], p["norm2"]["b"])
    return y.reshape(N, S, d)


def decoder_layer(x, mem, p, num_heads):
    """x: (N, T, d)  mem: (N, S, d) -> (N, T, d)"""
    N, T, d = x.shape
    S = mem.shape[1]
    x2d = x.reshape(N * T, d)
    mem2d = mem.reshape(N * S, d)

    # self attention (no causal mask: reference call passes tgt_mask=None)
    qkv = linear(x2d, p["self_attn"]["wqkv"], p["self_attn"]["bqkv"]).reshape(N, T, 3 * d)
    a = mha_self(qkv, d, num_heads).reshape(N * T, d)
    x1 = linear_residual_layernorm(a, p["self_attn"]["wo"], p["self_attn"]["bo"],
                                   x2d, p["norm1"]["g"], p["norm1"]["b"])

    # cross attention (K|V of memory fused into one matmul / one slab)
    qc = linear(x1, p["cross_attn"]["wq"], p["cross_attn"]["bq"]).reshape(N, T, d)
    kv = linear(mem2d, p["cross_attn"]["wkv"], p["cross_attn"]["bkv"]).reshape(N, S, 2 * d)
    c = mha_cross(qc, kv, d, num_heads).reshape(N * T, d)
    x2 = linear_residual_layernorm(c, p["cross_attn"]["wo"], p["cross_attn"]["bo"],
                                   x1, p["norm2"]["g"], p["norm2"]["b"])

    # feed-forward
    y = ffn_residual_layernorm(x2, p["linear1"]["w"], p["linear1"]["b"],
                               p["linear2"]["w"], p["linear2"]["b"],
                               p["norm3"]["g"], p["norm3"]["b"])
    return y.reshape(N, T, d)


def transformer_model_forward(src_tokens, tgt_tokens, params, num_heads):
    """src/tgt tokens: (seq, batch) int32 -> logits (tgt_seq, batch, vocab) f32"""
    d = params["embedding"].shape[1]
    scale = math.sqrt(d)

    # Embedding lookup (XLA gather); work batch-first internally: (N, L, d) bf16.
    src = (jnp.take(params["embedding"], src_tokens.T, axis=0) * scale).astype(ACT_DTYPE)
    tgt = (jnp.take(params["embedding"], tgt_tokens.T, axis=0) * scale).astype(ACT_DTYPE)
    N, S, _ = src.shape
    T = tgt.shape[1]

    mem = src
    for lp in params["encoder_layers"]:
        mem = encoder_layer(mem, lp, num_heads)
    mem = layernorm(mem.reshape(N * S, d),
                    params["encoder_norm"]["g"], params["encoder_norm"]["b"]).reshape(N, S, d)

    out = tgt
    for lp in params["decoder_layers"]:
        out = decoder_layer(out, mem, lp, num_heads)

    # final decoder-stack LayerNorm fused into the logits projection
    logits = layernorm_linear(out.reshape(N * T, d),
                              params["decoder_norm"]["g"], params["decoder_norm"]["b"],
                              params["decoder"]["w"], params["decoder"]["b"])
    V = logits.shape[-1]
    return logits.reshape(N, T, V).transpose(1, 0, 2)   # (T, N, V) — PyTorch layout


# ---------------------------------------------------------------------------
# Deterministic parameter initialization (shapes match the PyTorch module,
# Q|K|V / K|V fused like PyTorch in_proj). Matmul weights stored bf16; biases
# and LN params f32. The 1/sqrt(head_dim) attention scale is folded into the
# Q projection weights/bias (same forward output, one fewer VPU pass).
# ---------------------------------------------------------------------------
def init_params(key, vocab_size, d_model, num_heads, num_layers, dim_feedforward):
    keys = iter(jax.random.split(key, 4096))
    q_scale = 1.0 / math.sqrt(d_model // num_heads)

    def lin(in_d, out_d):
        bound = 1.0 / math.sqrt(in_d)
        w = jax.random.uniform(next(keys), (in_d, out_d), jnp.float32, -bound, bound)
        b = jax.random.uniform(next(keys), (1, out_d), jnp.float32, -bound, bound)
        return w, b

    def self_attn_p():
        wqkv, bqkv = lin(d_model, 3 * d_model)
        wqkv = wqkv.at[:, :d_model].multiply(q_scale)   # fold attention scale into Q
        bqkv = bqkv.at[:, :d_model].multiply(q_scale)
        wo, bo = lin(d_model, d_model)
        return {"wqkv": wqkv.astype(ACT_DTYPE), "bqkv": bqkv,
                "wo": wo.astype(ACT_DTYPE), "bo": bo}

    def cross_attn_p():
        wq, bq = lin(d_model, d_model)
        wq, bq = wq * q_scale, bq * q_scale             # fold attention scale into Q
        wkv, bkv = lin(d_model, 2 * d_model)
        wo, bo = lin(d_model, d_model)
        return {"wq": wq.astype(ACT_DTYPE), "bq": bq,
                "wkv": wkv.astype(ACT_DTYPE), "bkv": bkv,
                "wo": wo.astype(ACT_DTYPE), "bo": bo}

    def ln_p():
        return {"g": jnp.ones((1, d_model), jnp.float32),
                "b": jnp.zeros((1, d_model), jnp.float32)}

    def ffn_p():
        w1, b1 = lin(d_model, dim_feedforward)
        w2, b2 = lin(dim_feedforward, d_model)
        return {"linear1": {"w": w1.astype(ACT_DTYPE), "b": b1},
                "linear2": {"w": w2.astype(ACT_DTYPE), "b": b2}}

    def enc_layer_p():
        p = {"self_attn": self_attn_p(), "norm1": ln_p(), "norm2": ln_p()}
        p.update(ffn_p())
        return p

    def dec_layer_p():
        p = {"self_attn": self_attn_p(), "norm1": ln_p(),
             "cross_attn": cross_attn_p(), "norm2": ln_p(), "norm3": ln_p()}
        p.update(ffn_p())
        return p

    initrange = 0.1
    dec_w = jax.random.uniform(next(keys), (d_model, vocab_size), jnp.float32,
                               -initrange, initrange)
    return {
        "embedding": jax.random.uniform(next(keys), (vocab_size, d_model), jnp.float32,
                                        -initrange, initrange),
        "encoder_layers": [enc_layer_p() for _ in range(num_layers)],
        "encoder_norm": ln_p(),
        "decoder_layers": [dec_layer_p() for _ in range(num_layers)],
        "decoder_norm": ln_p(),
        "decoder": {"w": dec_w.astype(ACT_DTYPE),
                    "b": jnp.zeros((1, vocab_size), jnp.float32)},
    }


# ---------------------------------------------------------------------------
if __name__ == "__main__":
    # Small config consistent with the module, but lane-friendly
    # (d_model / dim_feedforward / vocab multiples of 128 per TPU layout rules).
    vocab_size = 256
    d_model = 128
    num_heads = 4
    num_layers = 2
    dim_feedforward = 256
    src_len = 16    # PyTorch batch_first=False: tokens are (seq, batch)
    tgt_len = 8
    batch = 2

    key = jax.random.PRNGKey(0)
    k_param, k_src, k_tgt = jax.random.split(key, 3)

    params = init_params(k_param, vocab_size, d_model, num_heads, num_layers,
                         dim_feedforward)
    src = jax.random.randint(k_src, (src_len, batch), 0, vocab_size, dtype=jnp.int32)
    tgt = jax.random.randint(k_tgt, (tgt_len, batch), 0, vocab_size, dtype=jnp.int32)

    fwd = jax.jit(functools.partial(transformer_model_forward, num_heads=num_heads))
    logits = jax.block_until_ready(fwd(src, tgt, params))

    assert logits.shape == (tgt_len, batch, vocab_size), logits.shape
    assert logits.dtype == jnp.float32, logits.dtype
    assert bool(jnp.all(jnp.isfinite(logits)))
    print("KERNEL_OK")
</pallas_src>

<mosaic_0001>
module attributes {stable_mosaic.version = 11 : i64} {
  func.func @_linear_nok_kernel(%arg0: i32, %arg1: i32, %arg2: memref<32x128xbf16, #tpu.memory_space<vmem>>, %arg3: memref<128x128xbf16, #tpu.memory_space<vmem>>, %arg4: memref<1x128xf32, #tpu.memory_space<vmem>>, %arg5: memref<32x128xbf16, #tpu.memory_space<vmem>>) attributes {dimension_semantics = [#tpu.dimension_semantics<parallel>, #tpu.dimension_semantics<parallel>], iteration_bounds = array<i64: 1, 3>, scalar_prefetch = 0 : i64, scratch_operands = 0 : i64, tpu.core_type = #tpu.core_type<tc>, window_params = [{transform_indices = @transform_0, window_bounds = array<i64: 32, 128>}, {transform_indices = @transform_1, window_bounds = array<i64: 128, 128>}, {transform_indices = @transform_2, window_bounds = array<i64: 1, 128>}, {transform_indices = @transform_3, window_bounds = array<i64: 32, 128>}]} {
    %c0 = arith.constant 0 : index
    %c0_0 = arith.constant 0 : index
    %0 = vector.load %arg2[%c0, %c0_0] : memref<32x128xbf16, #tpu.memory_space<vmem>>, vector<32x128xbf16>
    %c0_1 = arith.constant 0 : index
    %c0_2 = arith.constant 0 : index
    %1 = vector.load %arg3[%c0_1, %c0_2] : memref<128x128xbf16, #tpu.memory_space<vmem>>, vector<128x128xbf16>
    %cst = arith.constant dense<0.000000e+00> : vector<32x128xf32>
    %2 = tpu.matmul %0, %1, %cst {dimension_numbers = #tpu.dot_dimension_numbers<[1], [0], [0], [1], [0, 0, 1, 1], [], []>} : vector<32x128xbf16>, vector<128x128xbf16>, vector<32x128xf32> -> vector<32x128xf32>
    %c0_3 = arith.constant 0 : index
    %c0_4 = arith.constant 0 : index
    %3 = vector.load %arg4[%c0_3, %c0_4] : memref<1x128xf32, #tpu.memory_space<vmem>>, vector<1x128xf32>
    %4 = vector.broadcast %3 : vector<1x128xf32> to vector<32x128xf32>
    %5 = arith.addf %2, %4 : vector<32x128xf32>
    %6 = arith.truncf %5 : vector<32x128xf32> to vector<32x128xbf16>
    %c0_5 = arith.constant 0 : index
    %c0_6 = arith.constant 0 : index
    %7 = vector.load %arg5[%c0_5, %c0_6] : memref<32x128xbf16, #tpu.memory_space<vmem>>, vector<32x128xbf16>
    tpu.vector_store %arg5[%c0_5, %c0_6], %6 {strides = array<i32>} : memref<32x128xbf16, #tpu.memory_space<vmem>>, vector<32x128xbf16>,
    return
  }
  func.func @transform_0(%arg0: i32, %arg1: i32) -> (i32, i32) {
    %c0_i32 = arith.constant 0 : i32
    %c0_i32_0 = arith.constant 0 : i32
    return %arg0, %c0_i32 : i32, i32
  }
  func.func @transform_1(%arg0: i32, %arg1: i32) -> (i32, i32) {
    %c0_i32 = arith.constant 0 : i32
    %c0_i32_0 = arith.constant 0 : i32
    return %c0_i32, %arg1 : i32, i32
  }
  func.func @transform_2(%arg0: i32, %arg1: i32) -> (i32, i32) {
    %c0_i32 = arith.constant 0 : i32
    %c0_i32_0 = arith.constant 0 : i32
    return %c0_i32, %arg1 : i32, i32
  }
  func.func @transform_3(%arg0: i32, %arg1: i32) -> (i32, i32) {
    %c0_i32 = arith.constant 0 : i32
    return %arg0, %arg1 : i32, i32
  }
}

module attributes {stable_mosaic.version = 11 : i64} {
  func.func @_mha_kernel(%arg0: i32, %arg1: i32, %arg2: memref<1x16x128xbf16, #tpu.memory_space<vmem>>, %arg3: memref<1x16x128xbf16, #tpu.memory_space<vmem>>, %arg4: memref<1x16x128xbf16, #tpu.memory_space<vmem>>, %arg5: memref<1x16x128xbf16, #tpu.memory_space<vmem>>) attributes {dimension_semantics = [#tpu.dimension_semantics<parallel>, #tpu.dimension_semantics<parallel>], iteration_bounds = array<i64: 2, 1>, scalar_prefetch = 0 : i64, scratch_operands = 0 : i64, tpu.core_type = #tpu.core_type<tc>, window_params = [{transform_indices = @transform_0, window_bounds = array<i64: 1, 16, 128>}, {transform_indices = @transform_1, window_bounds = array<i64: 1, 16, 128>}, {transform_indices = @transform_2, window_bounds = array<i64: 1, 16, 128>}, {transform_indices = @transform_3, window_bounds = array<i64: 1, 16, 128>}]} {
    %c0 = arith.constant 0 : index
    %c0_0 = arith.constant 0 : index
    %c0_1 = arith.constant 0 : index
    %0 = vector.load %arg2[%c0, %c0_0, %c0_1] : memref<1x16x128xbf16, #tpu.memory_space<vmem>>, vector<1x16x128xbf16>
    %1 = vector.shape_cast %0 : vector<1x16x128xbf16> to vector<16x128xbf16>
    %c0_2 = arith.constant 0 : index
    %c0_3 = arith.constant 0 : index
    %c0_4 = arith.constant 0 : index
    %2 = vector.load %arg3[%c0_2, %c0_3, %c0_4] : memref<1x16x128xbf16, #tpu.memory_space<vmem>>, vector<1x16x128xbf16>
    %3 = vector.shape_cast %2 : vector<1x16x128xbf16> to vector<16x128xbf16>
    %c0_5 = arith.constant 0 : index
    %c0_6 = arith.constant 0 : index
    %c0_7 = arith.constant 0 : index
    %4 = vector.load %arg4[%c0_5, %c0_6, %c0_7] : memref<1x16x128xbf16, #tpu.memory_space<vmem>>, vector<1x16x128xbf16>
    %5 = vector.shape_cast %4 : vector<1x16x128xbf16> to vector<16x128xbf16>
    %6 = vector.extract_strided_slice %1 {offsets = [0, 0], sizes = [16, 32], strides = [1, 1]} : vector<16x128xbf16> to vector<16x32xbf16>
    %7 = vector.extract_strided_slice %3 {offsets = [0, 0], sizes = [16, 32], strides = [1, 1]} : vector<16x128xbf16> to vector<16x32xbf16>
    %cst = arith.constant dense<0.000000e+00> : vector<16x16xf32>
    %8 = tpu.matmul %6, %7, %cst {dimension_numbers = #tpu.dot_dimension_numbers<[1], [1], [0], [0], [0, 0, 1, 0], [], []>} : vector<16x32xbf16>, vector<16x32xbf16>, vector<16x16xf32> -> vector<16x16xf32>
    %cst_8 = arith.constant dense<0xFF800000> : vector<16xf32>
    %9 = vector.multi_reduction <maximumf>, %8, %cst_8 [1] : vector<16x16xf32> to vector<16xf32>
    %10 = vector.shape_cast %9 : vector<16xf32> to vector<16x1xf32>
    %11 = vector.broadcast %10 : vector<16x1xf32> to vector<16x16xf32>
    %12 = arith.subf %8, %11 : vector<16x16xf32>
    %13 = math.exp %12 : vector<16x16xf32>
    %cst_9 = arith.constant dense<0.000000e+00> : vector<16xf32>
    %14 = vector.multi_reduction <add>, %13, %cst_9 [1] : vector<16x16xf32> to vector<16xf32>
    %15 = vector.shape_cast %14 : vector<16xf32> to vector<16x1xf32>
    %16 = tpu.reciprocal %15 {approx = true} : vector<16x1xf32> -> vector<16x1xf32>
    %17 = vector.broadcast %16 : vector<16x1xf32> to vector<16x16xf32>
    %18 = arith.mulf %13, %17 : vector<16x16xf32>
    %19 = arith.truncf %18 : vector<16x16xf32> to vector<16x16xbf16>
    %20 = vector.extract_strided_slice %5 {offsets = [0, 0], sizes = [16, 32], strides = [1, 1]} : vector<16x128xbf16> to vector<16x32xbf16>
    %cst_10 = arith.constant dense<0.000000e+00> : vector<16x32xf32>
    %21 = tpu.matmul %19, %20, %cst_10 {dimension_numbers = #tpu.dot_dimension_numbers<[1], [0], [0], [1], [0, 0, 1, 1], [], []>} : vector<16x16xbf16>, vector<16x32xbf16>, vector<16x32xf32> -> vector<16x32xf32>
    %22 = vector.extract_strided_slice %1 {offsets = [0, 32], sizes = [16, 32], strides = [1, 1]} : vector<16x128xbf16> to vector<16x32xbf16>
    %23 = vector.extract_strided_slice %3 {offsets = [0, 32], sizes = [16, 32], strides = [1, 1]} : vector<16x128xbf16> to vector<16x32xbf16>
    %cst_11 = arith.constant dense<0.000000e+00> : vector<16x16xf32>
    %24 = tpu.matmul %22, %23, %cst_11 {dimension_numbers = #tpu.dot_dimension_numbers<[1], [1], [0], [0], [0, 0, 1, 0], [], []>} : vector<16x32xbf16>, vector<16x32xbf16>, vector<16x16xf32> -> vector<16x16xf32>
    %cst_12 = arith.constant dense<0xFF800000> : vector<16xf32>
    %25 = vector.multi_reduction <maximumf>, %24, %cst_12 [1] : vector<16x16xf32> to vector<16xf32>
    %26 = vector.shape_cast %25 : vector<16xf32> to vector<16x1xf32>
    %27 = vector.broadcast %26 : vector<16x1xf32> to vector<16x16xf32>
    %28 = arith.subf %24, %27 : vector<16x16xf32>
    %29 = math.exp %28 : vector<16x16xf32>
    %cst_13 = arith.constant dense<0.000000e+00> : vector<16xf32>
    %30 = vector.multi_reduction <add>, %29, %cst_13 [1] : vector<16x16xf32> to vector<16xf32>
    %31 = vector.shape_cast %30 : vector<16xf32> to vector<16x1xf32>
    %32 = tpu.reciprocal %31 {approx = true} : vector<16x1xf32> -> vector<16x1xf32>
    %33 = vector.broadcast %32 : vector<16x1xf32> to vector<16x16xf32>
    %34 = arith.mulf %29, %33 : vector<16x16xf32>
    %35 = arith.truncf %34 : vector<16x16xf32> to vector<16x16xbf16>
    %36 = vector.extract_strided_slice %5 {offsets = [0, 32], sizes = [16, 32], strides = [1, 1]} : vector<16x128xbf16> to vector<16x32xbf16>
    %cst_14 = arith.constant dense<0.000000e+00> : vector<16x32xf32>
    %37 = tpu.matmul %35, %36, %cst_14 {dimension_numbers = #tpu.dot_dimension_numbers<[1], [0], [0], [1], [0, 0, 1, 1], [], []>} : vector<16x16xbf16>, vector<16x32xbf16>, vector<16x32xf32> -> vector<16x32xf32>
    %38 = vector.extract_strided_slice %1 {offsets = [0, 64], sizes = [16, 32], strides = [1, 1]} : vector<16x128xbf16> to vector<16x32xbf16>
    %39 = vector.extract_strided_slice %3 {offsets = [0, 64], sizes = [16, 32], strides = [1, 1]} : vector<16x128xbf16> to vector<16x32xbf16>
    %cst_15 = arith.constant dense<0.000000e+00> : vector<16x16xf32>
    %40 = tpu.matmul %38, %39, %cst_15 {dimension_numbers = #tpu.dot_dimension_numbers<[1], [1], [0], [0], [0, 0, 1, 0], [], []>} : vector<16x32xbf16>, vector<16x32xbf16>, vector<16x16xf32> -> vector<16x16xf32>
    %cst_16 = arith.constant dense<0xFF800000> : vector<16xf32>
    %41 = vector.multi_reduction <maximumf>, %40, %cst_16 [1] : vector<16x16xf32> to vector<16xf32>
    %42 = vector.shape_cast %41 : vector<16xf32> to vector<16x1xf32>
    %43 = vector.broadcast %42 : vector<16x1xf32> to vector<16x16xf32>
    %44 = arith.subf %40, %43 : vector<16x16xf32>
    %45 = math.exp %44 : vector<16x16xf32>
    %cst_17 = arith.constant dense<0.000000e+00> : vector<16xf32>
    %46 = vector.multi_reduction <add>, %45, %cst_17 [1] : vector<16x16xf32> to vector<16xf32>
    %47 = vector.shape_cast %46 : vector<16xf32> to vector<16x1xf32>
    %48 = tpu.reciprocal %47 {approx = true} : vector<16x1xf32> -> vector<16x1xf32>
    %49 = vector.broadcast %48 : vector<16x1xf32> to vector<16x16xf32>
    %50 = arith.mulf %45, %49 : vector<16x16xf32>
    %51 = arith.truncf %50 : vector<16x16xf32> to vector<16x16xbf16>
    %52 = vector.extract_strided_slice %5 {offsets = [0, 64], sizes = [16, 32], strides = [1, 1]} : vector<16x128xbf16> to vector<16x32xbf16>
    %cst_18 = arith.constant dense<0.000000e+00> : vector<16x32xf32>
    %53 = tpu.matmul %51, %52, %cst_18 {dimension_numbers = #tpu.dot_dimension_numbers<[1], [0], [0], [1], [0, 0, 1, 1], [], []>} : vector<16x16xbf16>, vector<16x32xbf16>, vector<16x32xf32> -> vector<16x32xf32>
    %54 = vector.extract_strided_slice %1 {offsets = [0, 96], sizes = [16, 32], strides = [1, 1]} : vector<16x128xbf16> to vector<16x32xbf16>
    %55 = vector.extract_strided_slice %3 {offsets = [0, 96], sizes = [16, 32], strides = [1, 1]} : vector<16x128xbf16> to vector<16x32xbf16>
    %cst_19 = arith.constant dense<0.000000e+00> : vector<16x16xf32>
    %56 = tpu.matmul %54, %55, %cst_19 {dimension_numbers = #tpu.dot_dimension_numbers<[1], [1], [0], [0], [0, 0, 1, 0], [], []>} : vector<16x32xbf16>, vector<16x32xbf16>, vector<16x16xf32> -> vector<16x16xf32>
    %cst_20 = arith.constant dense<0xFF800000> : vector<16xf32>
    %57 = vector.multi_reduction <maximumf>, %56, %cst_20 [1] : vector<16x16xf32> to vector<16xf32>
    %58 = vector.shape_cast %57 : vector<16xf32> to vector<16x1xf32>
    %59 = vector.broadcast %58 : vector<16x1xf32> to vector<16x16xf32>
    %60 = arith.subf %56, %59 : vector<16x16xf32>
    %61 = math.exp %60 : vector<16x16xf32>
    %cst_21 = arith.constant dense<0.000000e+00> : vector<16xf32>
    %62 = vector.multi_reduction <add>, %61, %cst_21 [1] : vector<16x16xf32> to vector<16xf32>
    %63 = vector.shape_cast %62 : vector<16xf32> to vector<16x1xf32>
    %64 = tpu.reciprocal %63 {approx = true} : vector<16x1xf32> -> vector<16x1xf32>
    %65 = vector.broadcast %64 : vector<16x1xf32> to vector<16x16xf32>
    %66 = arith.mulf %61, %65 : vector<16x16xf32>
    %67 = arith.truncf %66 : vector<16x16xf32> to vector<16x16xbf16>
    %68 = vector.extract_strided_slice %5 {offsets = [0, 96], sizes = [16, 32], strides = [1, 1]} : vector<16x128xbf16> to vector<16x32xbf16>
    %cst_22 = arith.constant dense<0.000000e+00> : vector<16x32xf32>
    %69 = tpu.matmul %67, %68, %cst_22 {dimension_numbers = #tpu.dot_dimension_numbers<[1], [0], [0], [1], [0, 0, 1, 1], [], []>} : vector<16x16xbf16>, vector<16x32xbf16>, vector<16x32xf32> -> vector<16x32xf32>
    %70 = tpu.concatenate %21, %37, %53, %69 in 1 : vector<16x32xf32>, vector<16x32xf32>, vector<16x32xf32>, vector<16x32xf32> -> vector<16x128xf32>
    %71 = arith.truncf %70 : vector<16x128xf32> to vector<16x128xbf16>
    %c0_23 = arith.constant 0 : index
    %c0_24 = arith.constant 0 : index
    %c0_25 = arith.constant 0 : index
    %72 = vector.load %arg5[%c0_23, %c0_24, %c0_25] : memref<1x16x128xbf16, #tpu.memory_space<vmem>>, vector<1x16x128xbf16>
    %73 = vector.shape_cast %72 : vector<1x16x128xbf16> to vector<16x128xbf16>
    %74 = vector.shape_cast %71 : vector<16x128xbf16> to vector<1x16x128xbf16>
    tpu.vector_store %arg5[%c0_23, %c0_24, %c0_25], %74 {strides = array<i32>} : memref<1x16x128xbf16, #tpu.memory_space<vmem>>, vector<1x16x128xbf16>,
    return
  }
  func.func @transform_0(%arg0: i32, %arg1: i32) -> (i32, i32, i32) {
    %c0_i32 = arith.constant 0 : i32
    %c0_i32_0 = arith.constant 0 : i32
    return %arg0, %arg1, %c0_i32 : i32, i32, i32
  }
  func.func @transform_1(%arg0: i32, %arg1: i32) -> (i32, i32, i32) {
    %c0_i32 = arith.constant 0 : i32
    %c1_i32 = arith.constant 1 : i32
    %c0_i32_0 = arith.constant 0 : i32
    return %arg0, %c0_i32, %c1_i32 : i32, i32, i32
  }
  func.func @transform_2(%arg0: i32, %arg1: i32) -> (i32, i32, i32) {
    %c0_i32 = arith.constant 0 : i32
    %c2_i32 = arith.constant 2 : i32
    %c0_i32_0 = arith.constant 0 : i32
    return %arg0, %c0_i32, %c2_i32 : i32, i32, i32
  }
  func.func @transform_3(%arg0: i32, %arg1: i32) -> (i32, i32, i32) {
    %c0_i32 = arith.constant 0 : i32
    %c0_i32_0 = arith.constant 0 : i32
    return %arg0, %arg1, %c0_i32 : i32, i32, i32
  }
}

module attributes {stable_mosaic.version = 11 : i64} {
  func.func @_lin_res_ln_kernel(%arg0: i32, %arg1: memref<32x128xbf16, #tpu.memory_space<vmem>>, %arg2: memref<128x128xbf16, #tpu.memory_space<vmem>>, %arg3: memref<1x128xf32, #tpu.memory_space<vmem>>, %arg4: memref<32x128xbf16, #tpu.memory_space<vmem>>, %arg5: memref<1x128xf32, #tpu.memory_space<vmem>>, %arg6: memref<1x128xf32, #tpu.memory_space<vmem>>, %arg7: memref<32x128xbf16, #tpu.memory_space<vmem>>) attributes {dimension_semantics = [#tpu.dimension_semantics<parallel>], iteration_bounds = array<i64: 1>, scalar_prefetch = 0 : i64, scratch_operands = 0 : i64, tpu.core_type = #tpu.core_type<tc>, window_params = [{transform_indices = @transform_0, window_bounds = array<i64: 32, 128>}, {pipeline_mode = #tpu.pipeline_mode<synchronous>, transform_indices = @transform_1, window_bounds = array<i64: 128, 128>}, {pipeline_mode = #tpu.pipeline_mode<synchronous>, transform_indices = @transform_2, window_bounds = array<i64: 1, 128>}, {transform_indices = @transform_3, window_bounds = array<i64: 32, 128>}, {pipeline_mode = #tpu.pipeline_mode<synchronous>, transform_indices = @transform_4, window_bounds = array<i64: 1, 128>}, {pipeline_mode = #tpu.pipeline_mode<synchronous>, transform_indices = @transform_5, window_bounds = array<i64: 1, 128>}, {transform_indices = @transform_6, window_bounds = array<i64: 32, 128>}]} {
    %c0 = arith.constant 0 : index
    %c0_0 = arith.constant 0 : index
    %0 = vector.load %arg1[%c0, %c0_0] : memref<32x128xbf16, #tpu.memory_space<vmem>>, vector<32x128xbf16>
    %c0_1 = arith.constant 0 : index
    %c0_2 = arith.constant 0 : index
    %1 = vector.load %arg2[%c0_1, %c0_2] : memref<128x128xbf16, #tpu.memory_space<vmem>>, vector<128x128xbf16>
    %cst = arith.constant dense<0.000000e+00> : vector<32x128xf32>
    %2 = tpu.matmul %0, %1, %cst {dimension_numbers = #tpu.dot_dimension_numbers<[1], [0], [0], [1], [0, 0, 1, 1], [], []>} : vector<32x128xbf16>, vector<128x128xbf16>, vector<32x128xf32> -> vector<32x128xf32>
    %c0_3 = arith.constant 0 : index
    %c0_4 = arith.constant 0 : index
    %3 = vector.load %arg3[%c0_3, %c0_4] : memref<1x128xf32, #tpu.memory_space<vmem>>, vector<1x128xf32>
    %4 = vector.broadcast %3 : vector<1x128xf32> to vector<32x128xf32>
    %5 = arith.addf %2, %4 : vector<32x128xf32>
    %c0_5 = arith.constant 0 : index
    %c0_6 = arith.constant 0 : index
    %6 = vector.load %arg4[%c0_5, %c0_6] : memref<32x128xbf16, #tpu.memory_space<vmem>>, vector<32x128xbf16>
    %7 = arith.extf %6 : vector<32x128xbf16> to vector<32x128xf32>
    %8 = arith.addf %5, %7 : vector<32x128xf32>
    %c0_7 = arith.constant 0 : index
    %c0_8 = arith.constant 0 : index
    %9 = vector.load %arg5[%c0_7, %c0_8] : memref<1x128xf32, #tpu.memory_space<vmem>>, vector<1x128xf32>
    %c0_9 = arith.constant 0 : index
    %c0_10 = arith.constant 0 : index
    %10 = vector.load %arg6[%c0_9, %c0_10] : memref<1x128xf32, #tpu.memory_space<vmem>>, vector<1x128xf32>
    %cst_11 = arith.constant dense<0.000000e+00> : vector<32xf32>
    %11 = vector.multi_reduction <add>, %8, %cst_11 [1] : vector<32x128xf32> to vector<32xf32>
    %12 = vector.shape_cast %11 : vector<32xf32> to vector<32x1xf32>
    %cst_12 = arith.constant 1.280000e+02 : f32
    %13 = vector.broadcast %cst_12 : f32 to vector<32x1xf32>
    %14 = arith.divf %12, %13 : vector<32x1xf32>
    %15 = vector.broadcast %14 : vector<32x1xf32> to vector<32x128xf32>
    %16 = arith.subf %8, %15 : vector<32x128xf32>
    %17 = arith.mulf %16, %16 : vector<32x128xf32>
    %cst_13 = arith.constant dense<0.000000e+00> : vector<32xf32>
    %18 = vector.multi_reduction <add>, %17, %cst_13 [1] : vector<32x128xf32> to vector<32xf32>
    %19 = vector.shape_cast %18 : vector<32xf32> to vector<32x1xf32>
    %cst_14 = arith.constant 1.280000e+02 : f32
    %20 = vector.broadcast %cst_14 : f32 to vector<32x1xf32>
    %21 = arith.divf %19, %20 : vector<32x1xf32>
    %cst_15 = arith.constant 9.99999974E-6 : f32
    %22 = vector.broadcast %cst_15 : f32 to vector<32x1xf32>
    %23 = arith.addf %21, %22 : vector<32x1xf32>
    %24 = math.rsqrt %23 : vector<32x1xf32>
    %25 = vector.broadcast %24 : vector<32x1xf32> to vector<32x128xf32>
    %26 = arith.mulf %16, %25 : vector<32x128xf32>
    %27 = vector.broadcast %9 : vector<1x128xf32> to vector<32x128xf32>
    %28 = arith.mulf %26, %27 : vector<32x128xf32>
    %29 = vector.broadcast %10 : vector<1x128xf32> to vector<32x128xf32>
    %30 = arith.addf %28, %29 : vector<32x128xf32>
    %31 = arith.truncf %30 : vector<32x128xf32> to vector<32x128xbf16>
    %c0_16 = arith.constant 0 : index
    %c0_17 = arith.constant 0 : index
    %32 = vector.load %arg7[%c0_16, %c0_17] : memref<32x128xbf16, #tpu.memory_space<vmem>>, vector<32x128xbf16>
    tpu.vector_store %arg7[%c0_16, %c0_17], %31 {strides = array<i32>} : memref<32x128xbf16, #tpu.memory_space<vmem>>, vector<32x128xbf16>,
    return
  }
  func.func @transform_0(%arg0: i32) -> (i32, i32) {
    %c0_i32 = arith.constant 0 : i32
    %c0_i32_0 = arith.constant 0 : i32
    return %arg0, %c0_i32 : i32, i32
  }
  func.func @transform_1(%arg0: i32) -> (i32, i32) {
    %c0_i32 = arith.constant 0 : i32
    %c0_i32_0 = arith.constant 0 : i32
    %c0_i32_1 = arith.constant 0 : i32
    return %c0_i32, %c0_i32_0 : i32, i32
  }
  func.func @transform_2(%arg0: i32) -> (i32, i32) {
    %c0_i32 = arith.constant 0 : i32
    %c0_i32_0 = arith.constant 0 : i32
    %c0_i32_1 = arith.constant 0 : i32
    return %c0_i32, %c0_i32_0 : i32, i32
  }
  func.func @transform_3(%arg0: i32) -> (i32, i32) {
    %c0_i32 = arith.constant 0 : i32
    %c0_i32_0 = arith.constant 0 : i32
    return %arg0, %c0_i32 : i32, i32
  }
  func.func @transform_4(%arg0: i32) -> (i32, i32) {
    %c0_i32 = arith.constant 0 : i32
    %c0_i32_0 = arith.constant 0 : i32
    %c0_i32_1 = arith.constant 0 : i32
    return %c0_i32, %c0_i32_0 : i32, i32
  }
  func.func @transform_5(%arg0: i32) -> (i32, i32) {
    %c0_i32 = arith.constant 0 : i32
    %c0_i32_0 = arith.constant 0 : i32
    %c0_i32_1 = arith.constant 0 : i32
    return %c0_i32, %c0_i32_0 : i32, i32
  }
  func.func @transform_6(%arg0: i32) -> (i32, i32) {
    %c0_i32 = arith.constant 0 : i32
    %c0_i32_0 = arith.constant 0 : i32
    return %arg0, %c0_i32 : i32, i32
  }
}

module attributes {stable_mosaic.version = 11 : i64} {
  func.func @_ffn_res_ln_single_kernel(%arg0: i32, %arg1: memref<32x128xbf16, #tpu.memory_space<vmem>>, %arg2: memref<128x256xbf16, #tpu.memory_space<vmem>>, %arg3: memref<1x256xf32, #tpu.memory_space<vmem>>, %arg4: memref<256x128xbf16, #tpu.memory_space<vmem>>, %arg5: memref<1x128xf32, #tpu.memory_space<vmem>>, %arg6: memref<1x128xf32, #tpu.memory_space<vmem>>, %arg7: memref<1x128xf32, #tpu.memory_space<vmem>>, %arg8: memref<32x128xbf16, #tpu.memory_space<vmem>>) attributes {dimension_semantics = [#tpu.dimension_semantics<parallel>], iteration_bounds = array<i64: 1>, scalar_prefetch = 0 : i64, scratch_operands = 0 : i64, tpu.core_type = #tpu.core_type<tc>, window_params = [{transform_indices = @transform_0, window_bounds = array<i64: 32, 128>}, {pipeline_mode = #tpu.pipeline_mode<synchronous>, transform_indices = @transform_1, window_bounds = array<i64: 128, 256>}, {pipeline_mode = #tpu.pipeline_mode<synchronous>, transform_indices = @transform_2, window_bounds = array<i64: 1, 256>}, {pipeline_mode = #tpu.pipeline_mode<synchronous>, transform_indices = @transform_3, window_bounds = array<i64: 256, 128>}, {pipeline_mode = #tpu.pipeline_mode<synchronous>, transform_indices = @transform_4, window_bounds = array<i64: 1, 128>}, {pipeline_mode = #tpu.pipeline_mode<synchronous>, transform_indices = @transform_5, window_bounds = array<i64: 1, 128>}, {pipeline_mode = #tpu.pipeline_mode<synchronous>, transform_indices = @transform_6, window_bounds = array<i64: 1, 128>}, {transform_indices = @transform_7, window_bounds = array<i64: 32, 128>}]} {
    %c0 = arith.constant 0 : index
    %c0_0 = arith.constant 0 : index
    %0 = vector.load %arg1[%c0, %c0_0] : memref<32x128xbf16, #tpu.memory_space<vmem>>, vector<32x128xbf16>
    %c0_1 = arith.constant 0 : index
    %c0_2 = arith.constant 0 : index
    %1 = vector.load %arg2[%c0_1, %c0_2] : memref<128x256xbf16, #tpu.memory_space<vmem>>, vector<128x256xbf16>
    %cst = arith.constant dense<0.000000e+00> : vector<32x256xf32>
    %2 = tpu.matmul %0, %1, %cst {dimension_numbers = #tpu.dot_dimension_numbers<[1], [0], [0], [1], [0, 0, 1, 1], [], []>} : vector<32x128xbf16>, vector<128x256xbf16>, vector<32x256xf32> -> vector<32x256xf32>
    %c0_3 = arith.constant 0 : index
    %c0_4 = arith.constant 0 : index
    %3 = vector.load %arg3[%c0_3, %c0_4] : memref<1x256xf32, #tpu.memory_space<vmem>>, vector<1x256xf32>
    %4 = vector.broadcast %3 : vector<1x256xf32> to vector<32x256xf32>
    %5 = arith.addf %2, %4 : vector<32x256xf32>
    %cst_5 = arith.constant 0.000000e+00 : f32
    %6 = vector.broadcast %cst_5 : f32 to vector<32x256xf32>
    %7 = arith.maximumf %5, %6 : vector<32x256xf32>
    %8 = arith.truncf %7 : vector<32x256xf32> to vector<32x256xbf16>
    %c0_6 = arith.constant 0 : index
    %c0_7 = arith.constant 0 : index
    %9 = vector.load %arg4[%c0_6, %c0_7] : memref<256x128xbf16, #tpu.memory_space<vmem>>, vector<256x128xbf16>
    %cst_8 = arith.constant dense<0.000000e+00> : vector<32x128xf32>
    %10 = tpu.matmul %8, %9, %cst_8 {dimension_numbers = #tpu.dot_dimension_numbers<[1], [0], [0], [1], [0, 0, 1, 1], [], []>} : vector<32x256xbf16>, vector<256x128xbf16>, vector<32x128xf32> -> vector<32x128xf32>
    %c0_9 = arith.constant 0 : index
    %c0_10 = arith.constant 0 : index
    %11 = vector.load %arg5[%c0_9, %c0_10] : memref<1x128xf32, #tpu.memory_space<vmem>>, vector<1x128xf32>
    %12 = vector.broadcast %11 : vector<1x128xf32> to vector<32x128xf32>
    %13 = arith.addf %10, %12 : vector<32x128xf32>
    %14 = arith.extf %0 : vector<32x128xbf16> to vector<32x128xf32>
    %15 = arith.addf %13, %14 : vector<32x128xf32>
    %c0_11 = arith.constant 0 : index
    %c0_12 = arith.constant 0 : index
    %16 = vector.load %arg6[%c0_11, %c0_12] : memref<1x128xf32, #tpu.memory_space<vmem>>, vector<1x128xf32>
    %c0_13 = arith.constant 0 : index
    %c0_14 = arith.constant 0 : index
    %17 = vector.load %arg7[%c0_13, %c0_14] : memref<1x128xf32, #tpu.memory_space<vmem>>, vector<1x128xf32>
    %cst_15 = arith.constant dense<0.000000e+00> : vector<32xf32>
    %18 = vector.multi_reduction <add>, %15, %cst_15 [1] : vector<32x128xf32> to vector<32xf32>
    %19 = vector.shape_cast %18 : vector<32xf32> to vector<32x1xf32>
    %cst_16 = arith.constant 1.280000e+02 : f32
    %20 = vector.broadcast %cst_16 : f32 to vector<32x1xf32>
    %21 = arith.divf %19, %20 : vector<32x1xf32>
    %22 = vector.broadcast %21 : vector<32x1xf32> to vector<32x128xf32>
    %23 = arith.subf %15, %22 : vector<32x128xf32>
    %24 = arith.mulf %23, %23 : vector<32x128xf32>
    %cst_17 = arith.constant dense<0.000000e+00> : vector<32xf32>
    %25 = vector.multi_reduction <add>, %24, %cst_17 [1] : vector<32x128xf32> to vector<32xf32>
    %26 = vector.shape_cast %25 : vector<32xf32> to vector<32x1xf32>
    %cst_18 = arith.constant 1.280000e+02 : f32
    %27 = vector.broadcast %cst_18 : f32 to vector<32x1xf32>
    %28 = arith.divf %26, %27 : vector<32x1xf32>
    %cst_19 = arith.constant 9.99999974E-6 : f32
    %29 = vector.broadcast %cst_19 : f32 to vector<32x1xf32>
    %30 = arith.addf %28, %29 : vector<32x1xf32>
    %31 = math.rsqrt %30 : vector<32x1xf32>
    %32 = vector.broadcast %31 : vector<32x1xf32> to vector<32x128xf32>
    %33 = arith.mulf %23, %32 : vector<32x128xf32>
    %34 = vector.broadcast %16 : vector<1x128xf32> to vector<32x128xf32>
    %35 = arith.mulf %33, %34 : vector<32x128xf32>
    %36 = vector.broadcast %17 : vector<1x128xf32> to vector<32x128xf32>
    %37 = arith.addf %35, %36 : vector<32x128xf32>
    %38 = arith.truncf %37 : vector<32x128xf32> to vector<32x128xbf16>
    %c0_20 = arith.constant 0 : index
    %c0_21 = arith.constant 0 : index
    %39 = vector.load %arg8[%c0_20, %c0_21] : memref<32x128xbf16, #tpu.memory_space<vmem>>, vector<32x128xbf16>
    tpu.vector_store %arg8[%c0_20, %c0_21], %38 {strides = array<i32>} : memref<32x128xbf16, #tpu.memory_space<vmem>>, vector<32x128xbf16>,
    return
  }
  func.func @transform_0(%arg0: i32) -> (i32, i32) {
    %c0_i32 = arith.constant 0 : i32
    %c0_i32_0 = arith.constant 0 : i32
    return %arg0, %c0_i32 : i32, i32
  }
  func.func @transform_1(%arg0: i32) -> (i32, i32) {
    %c0_i32 = arith.constant 0 : i32
    %c0_i32_0 = arith.constant 0 : i32
    %c0_i32_1 = arith.constant 0 : i32
    return %c0_i32, %c0_i32_0 : i32, i32
  }
  func.func @transform_2(%arg0: i32) -> (i32, i32) {
    %c0_i32 = arith.constant 0 : i32
    %c0_i32_0 = arith.constant 0 : i32
    %c0_i32_1 = arith.constant 0 : i32
    return %c0_i32, %c0_i32_0 : i32, i32
  }
  func.func @transform_3(%arg0: i32) -> (i32, i32) {
    %c0_i32 = arith.constant 0 : i32
    %c0_i32_0 = arith.constant 0 : i32
    %c0_i32_1 = arith.constant 0 : i32
    return %c0_i32, %c0_i32_0 : i32, i32
  }
  func.func @transform_4(%arg0: i32) -> (i32, i32) {
    %c0_i32 = arith.constant 0 : i32
    %c0_i32_0 = arith.constant 0 : i32
    %c0_i32_1 = arith.constant 0 : i32
    return %c0_i32, %c0_i32_0 : i32, i32
  }
  func.func @transform_5(%arg0: i32) -> (i32, i32) {
    %c0_i32 = arith.constant 0 : i32
    %c0_i32_0 = arith.constant 0 : i32
    %c0_i32_1 = arith.constant 0 : i32
    return %c0_i32, %c0_i32_0 : i32, i32
  }
  func.func @transform_6(%arg0: i32) -> (i32, i32) {
    %c0_i32 = arith.constant 0 : i32
    %c0_i32_0 = arith.constant 0 : i32
    %c0_i32_1 = arith.constant 0 : i32
    return %c0_i32, %c0_i32_0 : i32, i32
  }
  func.func @transform_7(%arg0: i32) -> (i32, i32) {
    %c0_i32 = arith.constant 0 : i32
    %c0_i32_0 = arith.constant 0 : i32
    return %arg0, %c0_i32 : i32, i32
  }
}

module attributes {stable_mosaic.version = 11 : i64} {
  func.func @_ln_kernel(%arg0: i32, %arg1: memref<32x128xbf16, #tpu.memory_space<vmem>>, %arg2: memref<1x128xf32, #tpu.memory_space<vmem>>, %arg3: memref<1x128xf32, #tpu.memory_space<vmem>>, %arg4: memref<32x128xbf16, #tpu.memory_space<vmem>>) attributes {dimension_semantics = [#tpu.dimension_semantics<parallel>], iteration_bounds = array<i64: 1>, scalar_prefetch = 0 : i64, scratch_operands = 0 : i64, tpu.core_type = #tpu.core_type<tc>, window_params = [{transform_indices = @transform_0, window_bounds = array<i64: 32, 128>}, {pipeline_mode = #tpu.pipeline_mode<synchronous>, transform_indices = @transform_1, window_bounds = array<i64: 1, 128>}, {pipeline_mode = #tpu.pipeline_mode<synchronous>, transform_indices = @transform_2, window_bounds = array<i64: 1, 128>}, {transform_indices = @transform_3, window_bounds = array<i64: 32, 128>}]} {
    %c0 = arith.constant 0 : index
    %c0_0 = arith.constant 0 : index
    %0 = vector.load %arg1[%c0, %c0_0] : memref<32x128xbf16, #tpu.memory_space<vmem>>, vector<32x128xbf16>
    %1 = arith.extf %0 : vector<32x128xbf16> to vector<32x128xf32>
    %c0_1 = arith.constant 0 : index
    %c0_2 = arith.constant 0 : index
    %2 = vector.load %arg2[%c0_1, %c0_2] : memref<1x128xf32, #tpu.memory_space<vmem>>, vector<1x128xf32>
    %c0_3 = arith.constant 0 : index
    %c0_4 = arith.constant 0 : index
    %3 = vector.load %arg3[%c0_3, %c0_4] : memref<1x128xf32, #tpu.memory_space<vmem>>, vector<1x128xf32>
    %cst = arith.constant dense<0.000000e+00> : vector<32xf32>
    %4 = vector.multi_reduction <add>, %1, %cst [1] : vector<32x128xf32> to vector<32xf32>
    %5 = vector.shape_cast %4 : vector<32xf32> to vector<32x1xf32>
    %cst_5 = arith.constant 1.280000e+02 : f32
    %6 = vector.broadcast %cst_5 : f32 to vector<32x1xf32>
    %7 = arith.divf %5, %6 : vector<32x1xf32>
    %8 = vector.broadcast %7 : vector<32x1xf32> to vector<32x128xf32>
    %9 = arith.subf %1, %8 : vector<32x128xf32>
    %10 = arith.mulf %9, %9 : vector<32x128xf32>
    %cst_6 = arith.constant dense<0.000000e+00> : vector<32xf32>
    %11 = vector.multi_reduction <add>, %10, %cst_6 [1] : vector<32x128xf32> to vector<32xf32>
    %12 = vector.shape_cast %11 : vector<32xf32> to vector<32x1xf32>
    %cst_7 = arith.constant 1.280000e+02 : f32
    %13 = vector.broadcast %cst_7 : f32 to vector<32x1xf32>
    %14 = arith.divf %12, %13 : vector<32x1xf32>
    %cst_8 = arith.constant 9.99999974E-6 : f32
    %15 = vector.broadcast %cst_8 : f32 to vector<32x1xf32>
    %16 = arith.addf %14, %15 : vector<32x1xf32>
    %17 = math.rsqrt %16 : vector<32x1xf32>
    %18 = vector.broadcast %17 : vector<32x1xf32> to vector<32x128xf32>
    %19 = arith.mulf %9, %18 : vector<32x128xf32>
    %20 = vector.broadcast %2 : vector<1x128xf32> to vector<32x128xf32>
    %21 = arith.mulf %19, %20 : vector<32x128xf32>
    %22 = vector.broadcast %3 : vector<1x128xf32> to vector<32x128xf32>
    %23 = arith.addf %21, %22 : vector<32x128xf32>
    %24 = arith.truncf %23 : vector<32x128xf32> to vector<32x128xbf16>
    %c0_9 = arith.constant 0 : index
    %c0_10 = arith.constant 0 : index
    %25 = vector.load %arg4[%c0_9, %c0_10] : memref<32x128xbf16, #tpu.memory_space<vmem>>, vector<32x128xbf16>
    tpu.vector_store %arg4[%c0_9, %c0_10], %24 {strides = array<i32>} : memref<32x128xbf16, #tpu.memory_space<vmem>>, vector<32x128xbf16>,
    return
  }
  func.func @transform_0(%arg0: i32) -> (i32, i32) {
    %c0_i32 = arith.constant 0 : i32
    %c0_i32_0 = arith.constant 0 : i32
    return %arg0, %c0_i32 : i32, i32
  }
  func.func @transform_1(%arg0: i32) -> (i32, i32) {
    %c0_i32 = arith.constant 0 : i32
    %c0_i32_0 = arith.constant 0 : i32
    %c0_i32_1 = arith.constant 0 : i32
    return %c0_i32, %c0_i32_0 : i32, i32
  }
  func.func @transform_2(%arg0: i32) -> (i32, i32) {
    %c0_i32 = arith.constant 0 : i32
    %c0_i32_0 = arith.constant 0 : i32
    %c0_i32_1 = arith.constant 0 : i32
    return %c0_i32, %c0_i32_0 : i32, i32
  }
  func.func @transform_3(%arg0: i32) -> (i32, i32) {
    %c0_i32 = arith.constant 0 : i32
    %c0_i32_0 = arith.constant 0 : i32
    return %arg0, %c0_i32 : i32, i32
  }
}

module attributes {stable_mosaic.version = 11 : i64} {
  func.func @_linear_nok_kernel(%arg0: i32, %arg1: i32, %arg2: memref<32x128xbf16, #tpu.memory_space<vmem>>, %arg3: memref<128x256xbf16, #tpu.memory_space<vmem>>, %arg4: memref<1x256xf32, #tpu.memory_space<vmem>>, %arg5: memref<32x256xbf16, #tpu.memory_space<vmem>>) attributes {dimension_semantics = [#tpu.dimension_semantics<parallel>, #tpu.dimension_semantics<parallel>], iteration_bounds = array<i64: 1, 1>, scalar_prefetch = 0 : i64, scratch_operands = 0 : i64, tpu.core_type = #tpu.core_type<tc>, window_params = [{transform_indices = @transform_0, window_bounds = array<i64: 32, 128>}, {transform_indices = @transform_1, window_bounds = array<i64: 128, 256>}, {transform_indices = @transform_2, window_bounds = array<i64: 1, 256>}, {transform_indices = @transform_3, window_bounds = array<i64: 32, 256>}]} {
    %c0 = arith.constant 0 : index
    %c0_0 = arith.constant 0 : index
    %0 = vector.load %arg2[%c0, %c0_0] : memref<32x128xbf16, #tpu.memory_space<vmem>>, vector<32x128xbf16>
    %c0_1 = arith.constant 0 : index
    %c0_2 = arith.constant 0 : index
    %1 = vector.load %arg3[%c0_1, %c0_2] : memref<128x256xbf16, #tpu.memory_space<vmem>>, vector<128x256xbf16>
    %cst = arith.constant dense<0.000000e+00> : vector<32x256xf32>
    %2 = tpu.matmul %0, %1, %cst {dimension_numbers = #tpu.dot_dimension_numbers<[1], [0], [0], [1], [0, 0, 1, 1], [], []>} : vector<32x128xbf16>, vector<128x256xbf16>, vector<32x256xf32> -> vector<32x256xf32>
    %c0_3 = arith.constant 0 : index
    %c0_4 = arith.constant 0 : index
    %3 = vector.load %arg4[%c0_3, %c0_4] : memref<1x256xf32, #tpu.memory_space<vmem>>, vector<1x256xf32>
    %4 = vector.broadcast %3 : vector<1x256xf32> to vector<32x256xf32>
    %5 = arith.addf %2, %4 : vector<32x256xf32>
    %6 = arith.truncf %5 : vector<32x256xf32> to vector<32x256xbf16>
    %c0_5 = arith.constant 0 : index
    %c0_6 = arith.constant 0 : index
    %7 = vector.load %arg5[%c0_5, %c0_6] : memref<32x256xbf16, #tpu.memory_space<vmem>>, vector<32x256xbf16>
    tpu.vector_store %arg5[%c0_5, %c0_6], %6 {strides = array<i32>} : memref<32x256xbf16, #tpu.memory_space<vmem>>, vector<32x256xbf16>,
    return
  }
  func.func @transform_0(%arg0: i32, %arg1: i32) -> (i32, i32) {
    %c0_i32 = arith.constant 0 : i32
    %c0_i32_0 = arith.constant 0 : i32
    return %arg0, %c0_i32 : i32, i32
  }
  func.func @transform_1(%arg0: i32, %arg1: i32) -> (i32, i32) {
    %c0_i32 = arith.constant 0 : i32
    %c0_i32_0 = arith.constant 0 : i32
    return %c0_i32, %arg1 : i32, i32
  }
  func.func @transform_2(%arg0: i32, %arg1: i32) -> (i32, i32) {
    %c0_i32 = arith.constant 0 : i32
    %c0_i32_0 = arith.constant 0 : i32
    return %c0_i32, %arg1 : i32, i32
  }
  func.func @transform_3(%arg0: i32, %arg1: i32) -> (i32, i32) {
    %c0_i32 = arith.constant 0 : i32
    return %arg0, %arg1 : i32, i32
  }
}

module attributes {stable_mosaic.version = 11 : i64} {
  func.func @_mha_kernel(%arg0: i32, %arg1: i32, %arg2: memref<1x8x128xbf16, #tpu.memory_space<vmem>>, %arg3: memref<1x8x128xbf16, #tpu.memory_space<vmem>>, %arg4: memref<1x8x128xbf16, #tpu.memory_space<vmem>>, %arg5: memref<1x8x128xbf16, #tpu.memory_space<vmem>>) attributes {dimension_semantics = [#tpu.dimension_semantics<parallel>, #tpu.dimension_semantics<parallel>], iteration_bounds = array<i64: 2, 1>, scalar_prefetch = 0 : i64, scratch_operands = 0 : i64, tpu.core_type = #tpu.core_type<tc>, window_params = [{transform_indices = @transform_0, window_bounds = array<i64: 1, 8, 128>}, {transform_indices = @transform_1, window_bounds = array<i64: 1, 8, 128>}, {transform_indices = @transform_2, window_bounds = array<i64: 1, 8, 128>}, {transform_indices = @transform_3, window_bounds = array<i64: 1, 8, 128>}]} {
    %c0 = arith.constant 0 : index
    %c0_0 = arith.constant 0 : index
    %c0_1 = arith.constant 0 : index
    %0 = vector.load %arg2[%c0, %c0_0, %c0_1] : memref<1x8x128xbf16, #tpu.memory_space<vmem>>, vector<1x8x128xbf16>
    %1 = vector.shape_cast %0 : vector<1x8x128xbf16> to vector<8x128xbf16>
    %c0_2 = arith.constant 0 : index
    %c0_3 = arith.constant 0 : index
    %c0_4 = arith.constant 0 : index
    %2 = vector.load %arg3[%c0_2, %c0_3, %c0_4] : memref<1x8x128xbf16, #tpu.memory_space<vmem>>, vector<1x8x128xbf16>
    %3 = vector.shape_cast %2 : vector<1x8x128xbf16> to vector<8x128xbf16>
    %c0_5 = arith.constant 0 : index
    %c0_6 = arith.constant 0 : index
    %c0_7 = arith.constant 0 : index
    %4 = vector.load %arg4[%c0_5, %c0_6, %c0_7] : memref<1x8x128xbf16, #tpu.memory_space<vmem>>, vector<1x8x128xbf16>
    %5 = vector.shape_cast %4 : vector<1x8x128xbf16> to vector<8x128xbf16>
    %6 = vector.extract_strided_slice %1 {offsets = [0, 0], sizes = [8, 32], strides = [1, 1]} : vector<8x128xbf16> to vector<8x32xbf16>
    %7 = vector.extract_strided_slice %3 {offsets = [0, 0], sizes = [8, 32], strides = [1, 1]} : vector<8x128xbf16> to vector<8x32xbf16>
    %cst = arith.constant dense<0.000000e+00> : vector<8x8xf32>
    %8 = tpu.matmul %6, %7, %cst {dimension_numbers = #tpu.dot_dimension_numbers<[1], [1], [0], [0], [0, 0, 1, 0], [], []>} : vector<8x32xbf16>, vector<8x32xbf16>, vector<8x8xf32> -> vector<8x8xf32>
    %cst_8 = arith.constant dense<0xFF800000> : vector<8xf32>
    %9 = vector.multi_reduction <maximumf>, %8, %cst_8 [1] : vector<8x8xf32> to vector<8xf32>
    %10 = vector.shape_cast %9 : vector<8xf32> to vector<8x1xf32>
    %11 = vector.broadcast %10 : vector<8x1xf32> to vector<8x8xf32>
    %12 = arith.subf %8, %11 : vector<8x8xf32>
    %13 = math.exp %12 : vector<8x8xf32>
    %cst_9 = arith.constant dense<0.000000e+00> : vector<8xf32>
    %14 = vector.multi_reduction <add>, %13, %cst_9 [1] : vector<8x8xf32> to vector<8xf32>
    %15 = vector.shape_cast %14 : vector<8xf32> to vector<8x1xf32>
    %16 = tpu.reciprocal %15 {approx = true} : vector<8x1xf32> -> vector<8x1xf32>
    %17 = vector.broadcast %16 : vector<8x1xf32> to vector<8x8xf32>
    %18 = arith.mulf %13, %17 : vector<8x8xf32>
    %19 = arith.truncf %18 : vector<8x8xf32> to vector<8x8xbf16>
    %20 = vector.extract_strided_slice %5 {offsets = [0, 0], sizes = [8, 32], strides = [1, 1]} : vector<8x128xbf16> to vector<8x32xbf16>
    %cst_10 = arith.constant dense<0.000000e+00> : vector<8x32xf32>
    %21 = tpu.matmul %19, %20, %cst_10 {dimension_numbers = #tpu.dot_dimension_numbers<[1], [0], [0], [1], [0, 0, 1, 1], [], []>} : vector<8x8xbf16>, vector<8x32xbf16>, vector<8x32xf32> -> vector<8x32xf32>
    %22 = vector.extract_strided_slice %1 {offsets = [0, 32], sizes = [8, 32], strides = [1, 1]} : vector<8x128xbf16> to vector<8x32xbf16>
    %23 = vector.extract_strided_slice %3 {offsets = [0, 32], sizes = [8, 32], strides = [1, 1]} : vector<8x128xbf16> to vector<8x32xbf16>
    %cst_11 = arith.constant dense<0.000000e+00> : vector<8x8xf32>
    %24 = tpu.matmul %22, %23, %cst_11 {dimension_numbers = #tpu.dot_dimension_numbers<[1], [1], [0], [0], [0, 0, 1, 0], [], []>} : vector<8x32xbf16>, vector<8x32xbf16>, vector<8x8xf32> -> vector<8x8xf32>
    %cst_12 = arith.constant dense<0xFF800000> : vector<8xf32>
    %25 = vector.multi_reduction <maximumf>, %24, %cst_12 [1] : vector<8x8xf32> to vector<8xf32>
    %26 = vector.shape_cast %25 : vector<8xf32> to vector<8x1xf32>
    %27 = vector.broadcast %26 : vector<8x1xf32> to vector<8x8xf32>
    %28 = arith.subf %24, %27 : vector<8x8xf32>
    %29 = math.exp %28 : vector<8x8xf32>
    %cst_13 = arith.constant dense<0.000000e+00> : vector<8xf32>
    %30 = vector.multi_reduction <add>, %29, %cst_13 [1] : vector<8x8xf32> to vector<8xf32>
    %31 = vector.shape_cast %30 : vector<8xf32> to vector<8x1xf32>
    %32 = tpu.reciprocal %31 {approx = true} : vector<8x1xf32> -> vector<8x1xf32>
    %33 = vector.broadcast %32 : vector<8x1xf32> to vector<8x8xf32>
    %34 = arith.mulf %29, %33 : vector<8x8xf32>
    %35 = arith.truncf %34 : vector<8x8xf32> to vector<8x8xbf16>
    %36 = vector.extract_strided_slice %5 {offsets = [0, 32], sizes = [8, 32], strides = [1, 1]} : vector<8x128xbf16> to vector<8x32xbf16>
    %cst_14 = arith.constant dense<0.000000e+00> : vector<8x32xf32>
    %37 = tpu.matmul %35, %36, %cst_14 {dimension_numbers = #tpu.dot_dimension_numbers<[1], [0], [0], [1], [0, 0, 1, 1], [], []>} : vector<8x8xbf16>, vector<8x32xbf16>, vector<8x32xf32> -> vector<8x32xf32>
    %38 = vector.extract_strided_slice %1 {offsets = [0, 64], sizes = [8, 32], strides = [1, 1]} : vector<8x128xbf16> to vector<8x32xbf16>
    %39 = vector.extract_strided_slice %3 {offsets = [0, 64], sizes = [8, 32], strides = [1, 1]} : vector<8x128xbf16> to vector<8x32xbf16>
    %cst_15 = arith.constant dense<0.000000e+00> : vector<8x8xf32>
    %40 = tpu.matmul %38, %39, %cst_15 {dimension_numbers = #tpu.dot_dimension_numbers<[1], [1], [0], [0], [0, 0, 1, 0], [], []>} : vector<8x32xbf16>, vector<8x32xbf16>, vector<8x8xf32> -> vector<8x8xf32>
    %cst_16 = arith.constant dense<0xFF800000> : vector<8xf32>
    %41 = vector.multi_reduction <maximumf>, %40, %cst_16 [1] : vector<8x8xf32> to vector<8xf32>
    %42 = vector.shape_cast %41 : vector<8xf32> to vector<8x1xf32>
    %43 = vector.broadcast %42 : vector<8x1xf32> to vector<8x8xf32>
    %44 = arith.subf %40, %43 : vector<8x8xf32>
    %45 = math.exp %44 : vector<8x8xf32>
    %cst_17 = arith.constant dense<0.000000e+00> : vector<8xf32>
    %46 = vector.multi_reduction <add>, %45, %cst_17 [1] : vector<8x8xf32> to vector<8xf32>
    %47 = vector.shape_cast %46 : vector<8xf32> to vector<8x1xf32>
    %48 = tpu.reciprocal %47 {approx = true} : vector<8x1xf32> -> vector<8x1xf32>
    %49 = vector.broadcast %48 : vector<8x1xf32> to vector<8x8xf32>
    %50 = arith.mulf %45, %49 : vector<8x8xf32>
    %51 = arith.truncf %50 : vector<8x8xf32> to vector<8x8xbf16>
    %52 = vector.extract_strided_slice %5 {offsets = [0, 64], sizes = [8, 32], strides = [1, 1]} : vector<8x128xbf16> to vector<8x32xbf16>
    %cst_18 = arith.constant dense<0.000000e+00> : vector<8x32xf32>
    %53 = tpu.matmul %51, %52, %cst_18 {dimension_numbers = #tpu.dot_dimension_numbers<[1], [0], [0], [1], [0, 0, 1, 1], [], []>} : vector<8x8xbf16>, vector<8x32xbf16>, vector<8x32xf32> -> vector<8x32xf32>
    %54 = vector.extract_strided_slice %1 {offsets = [0, 96], sizes = [8, 32], strides = [1, 1]} : vector<8x128xbf16> to vector<8x32xbf16>
    %55 = vector.extract_strided_slice %3 {offsets = [0, 96], sizes = [8, 32], strides = [1, 1]} : vector<8x128xbf16> to vector<8x32xbf16>
    %cst_19 = arith.constant dense<0.000000e+00> : vector<8x8xf32>
    %56 = tpu.matmul %54, %55, %cst_19 {dimension_numbers = #tpu.dot_dimension_numbers<[1], [1], [0], [0], [0, 0, 1, 0], [], []>} : vector<8x32xbf16>, vector<8x32xbf16>, vector<8x8xf32> -> vector<8x8xf32>
    %cst_20 = arith.constant dense<0xFF800000> : vector<8xf32>
    %57 = vector.multi_reduction <maximumf>, %56, %cst_20 [1] : vector<8x8xf32> to vector<8xf32>
    %58 = vector.shape_cast %57 : vector<8xf32> to vector<8x1xf32>
    %59 = vector.broadcast %58 : vector<8x1xf32> to vector<8x8xf32>
    %60 = arith.subf %56, %59 : vector<8x8xf32>
    %61 = math.exp %60 : vector<8x8xf32>
    %cst_21 = arith.constant dense<0.000000e+00> : vector<8xf32>
    %62 = vector.multi_reduction <add>, %61, %cst_21 [1] : vector<8x8xf32> to vector<8xf32>
    %63 = vector.shape_cast %62 : vector<8xf32> to vector<8x1xf32>
    %64 = tpu.reciprocal %63 {approx = true} : vector<8x1xf32> -> vector<8x1xf32>
    %65 = vector.broadcast %64 : vector<8x1xf32> to vector<8x8xf32>
    %66 = arith.mulf %61, %65 : vector<8x8xf32>
    %67 = arith.truncf %66 : vector<8x8xf32> to vector<8x8xbf16>
    %68 = vector.extract_strided_slice %5 {offsets = [0, 96], sizes = [8, 32], strides = [1, 1]} : vector<8x128xbf16> to vector<8x32xbf16>
    %cst_22 = arith.constant dense<0.000000e+00> : vector<8x32xf32>
    %69 = tpu.matmul %67, %68, %cst_22 {dimension_numbers = #tpu.dot_dimension_numbers<[1], [0], [0], [1], [0, 0, 1, 1], [], []>} : vector<8x8xbf16>, vector<8x32xbf16>, vector<8x32xf32> -> vector<8x32xf32>
    %70 = tpu.concatenate %21, %37, %53, %69 in 1 : vector<8x32xf32>, vector<8x32xf32>, vector<8x32xf32>, vector<8x32xf32> -> vector<8x128xf32>
    %71 = arith.truncf %70 : vector<8x128xf32> to vector<8x128xbf16>
    %c0_23 = arith.constant 0 : index
    %c0_24 = arith.constant 0 : index
    %c0_25 = arith.constant 0 : index
    %72 = vector.load %arg5[%c0_23, %c0_24, %c0_25] : memref<1x8x128xbf16, #tpu.memory_space<vmem>>, vector<1x8x128xbf16>
    %73 = vector.shape_cast %72 : vector<1x8x128xbf16> to vector<8x128xbf16>
    %74 = vector.shape_cast %71 : vector<8x128xbf16> to vector<1x8x128xbf16>
    tpu.vector_store %arg5[%c0_23, %c0_24, %c0_25], %74 {strides = array<i32>} : memref<1x8x128xbf16, #tpu.memory_space<vmem>>, vector<1x8x128xbf16>,
    return
  }
  func.func @transform_0(%arg0: i32, %arg1: i32) -> (i32, i32, i32) {
    %c0_i32 = arith.constant 0 : i32
    %c0_i32_0 = arith.constant 0 : i32
    return %arg0, %arg1, %c0_i32 : i32, i32, i32
  }
  func.func @transform_1(%arg0: i32, %arg1: i32) -> (i32, i32, i32) {
    %c0_i32 = arith.constant 0 : i32
    %c1_i32 = arith.constant 1 : i32
    %c0_i32_0 = arith.constant 0 : i32
    return %arg0, %c0_i32, %c1_i32 : i32, i32, i32
  }
  func.func @transform_2(%arg0: i32, %arg1: i32) -> (i32, i32, i32) {
    %c0_i32 = arith.constant 0 : i32
    %c2_i32 = arith.constant 2 : i32
    %c0_i32_0 = arith.constant 0 : i32
    return %arg0, %c0_i32, %c2_i32 : i32, i32, i32
  }
  func.func @transform_3(%arg0: i32, %arg1: i32) -> (i32, i32, i32) {
    %c0_i32 = arith.constant 0 : i32
    %c0_i32_0 = arith.constant 0 : i32
    return %arg0, %arg1, %c0_i32 : i32, i32, i32
  }
}

module attributes {stable_mosaic.version = 11 : i64} {
  func.func @_linear_nok_kernel(%arg0: i32, %arg1: i32, %arg2: memref<16x128xbf16, #tpu.memory_space<vmem>>, %arg3: memref<128x128xbf16, #tpu.memory_space<vmem>>, %arg4: memref<1x128xf32, #tpu.memory_space<vmem>>, %arg5: memref<16x128xbf16, #tpu.memory_space<vmem>>) attributes {dimension_semantics = [#tpu.dimension_semantics<parallel>, #tpu.dimension_semantics<parallel>], iteration_bounds = array<i64: 1, 3>, scalar_prefetch = 0 : i64, scratch_operands = 0 : i64, tpu.core_type = #tpu.core_type<tc>, window_params = [{transform_indices = @transform_0, window_bounds = array<i64: 16, 128>}, {transform_indices = @transform_1, window_bounds = array<i64: 128, 128>}, {transform_indices = @transform_2, window_bounds = array<i64: 1, 128>}, {transform_indices = @transform_3, window_bounds = array<i64: 16, 128>}]} {
    %c0 = arith.constant 0 : index
    %c0_0 = arith.constant 0 : index
    %0 = vector.load %arg2[%c0, %c0_0] : memref<16x128xbf16, #tpu.memory_space<vmem>>, vector<16x128xbf16>
    %c0_1 = arith.constant 0 : index
    %c0_2 = arith.constant 0 : index
    %1 = vector.load %arg3[%c0_1, %c0_2] : memref<128x128xbf16, #tpu.memory_space<vmem>>, vector<128x128xbf16>
    %cst = arith.constant dense<0.000000e+00> : vector<16x128xf32>
    %2 = tpu.matmul %0, %1, %cst {dimension_numbers = #tpu.dot_dimension_numbers<[1], [0], [0], [1], [0, 0, 1, 1], [], []>} : vector<16x128xbf16>, vector<128x128xbf16>, vector<16x128xf32> -> vector<16x128xf32>
    %c0_3 = arith.constant 0 : index
    %c0_4 = arith.constant 0 : index
    %3 = vector.load %arg4[%c0_3, %c0_4] : memref<1x128xf32, #tpu.memory_space<vmem>>, vector<1x128xf32>
    %4 = vector.broadcast %3 : vector<1x128xf32> to vector<16x128xf32>
    %5 = arith.addf %2, %4 : vector<16x128xf32>
    %6 = arith.truncf %5 : vector<16x128xf32> to vector<16x128xbf16>
    %c0_5 = arith.constant 0 : index
    %c0_6 = arith.constant 0 : index
    %7 = vector.load %arg5[%c0_5, %c0_6] : memref<16x128xbf16, #tpu.memory_space<vmem>>, vector<16x128xbf16>
    tpu.vector_store %arg5[%c0_5, %c0_6], %6 {strides = array<i32>} : memref<16x128xbf16, #tpu.memory_space<vmem>>, vector<16x128xbf16>,
    return
  }
  func.func @transform_0(%arg0: i32, %arg1: i32) -> (i32, i32) {
    %c0_i32 = arith.constant 0 : i32
    %c0_i32_0 = arith.constant 0 : i32
    return %arg0, %c0_i32 : i32, i32
  }
  func.func @transform_1(%arg0: i32, %arg1: i32) -> (i32, i32) {
    %c0_i32 = arith.constant 0 : i32
    %c0_i32_0 = arith.constant 0 : i32
    return %c0_i32, %arg1 : i32, i32
  }
  func.func @transform_2(%arg0: i32, %arg1: i32) -> (i32, i32) {
    %c0_i32 = arith.constant 0 : i32
    %c0_i32_0 = arith.constant 0 : i32
    return %c0_i32, %arg1 : i32, i32
  }
  func.func @transform_3(%arg0: i32, %arg1: i32) -> (i32, i32) {
    %c0_i32 = arith.constant 0 : i32
    return %arg0, %arg1 : i32, i32
  }
}

module attributes {stable_mosaic.version = 11 : i64} {
  func.func @_lin_res_ln_kernel(%arg0: i32, %arg1: memref<16x128xbf16, #tpu.memory_space<vmem>>, %arg2: memref<128x128xbf16, #tpu.memory_space<vmem>>, %arg3: memref<1x128xf32, #tpu.memory_space<vmem>>, %arg4: memref<16x128xbf16, #tpu.memory_space<vmem>>, %arg5: memref<1x128xf32, #tpu.memory_space<vmem>>, %arg6: memref<1x128xf32, #tpu.memory_space<vmem>>, %arg7: memref<16x128xbf16, #tpu.memory_space<vmem>>) attributes {dimension_semantics = [#tpu.dimension_semantics<parallel>], iteration_bounds = array<i64: 1>, scalar_prefetch = 0 : i64, scratch_operands = 0 : i64, tpu.core_type = #tpu.core_type<tc>, window_params = [{transform_indices = @transform_0, window_bounds = array<i64: 16, 128>}, {pipeline_mode = #tpu.pipeline_mode<synchronous>, transform_indices = @transform_1, window_bounds = array<i64: 128, 128>}, {pipeline_mode = #tpu.pipeline_mode<synchronous>, transform_indices = @transform_2, window_bounds = array<i64: 1, 128>}, {transform_indices = @transform_3, window_bounds = array<i64: 16, 128>}, {pipeline_mode = #tpu.pipeline_mode<synchronous>, transform_indices = @transform_4, window_bounds = array<i64: 1, 128>}, {pipeline_mode = #tpu.pipeline_mode<synchronous>, transform_indices = @transform_5, window_bounds = array<i64: 1, 128>}, {transform_indices = @transform_6, window_bounds = array<i64: 16, 128>}]} {
    %c0 = arith.constant 0 : index
    %c0_0 = arith.constant 0 : index
    %0 = vector.load %arg1[%c0, %c0_0] : memref<16x128xbf16, #tpu.memory_space<vmem>>, vector<16x128xbf16>
    %c0_1 = arith.constant 0 : index
    %c0_2 = arith.constant 0 : index
    %1 = vector.load %arg2[%c0_1, %c0_2] : memref<128x128xbf16, #tpu.memory_space<vmem>>, vector<128x128xbf16>
    %cst = arith.constant dense<0.000000e+00> : vector<16x128xf32>
    %2 = tpu.matmul %0, %1, %cst {dimension_numbers = #tpu.dot_dimension_numbers<[1], [0], [0], [1], [0, 0, 1, 1], [], []>} : vector<16x128xbf16>, vector<128x128xbf16>, vector<16x128xf32> -> vector<16x128xf32>
    %c0_3 = arith.constant 0 : index
    %c0_4 = arith.constant 0 : index
    %3 = vector.load %arg3[%c0_3, %c0_4] : memref<1x128xf32, #tpu.memory_space<vmem>>, vector<1x128xf32>
    %4 = vector.broadcast %3 : vector<1x128xf32> to vector<16x128xf32>
    %5 = arith.addf %2, %4 : vector<16x128xf32>
    %c0_5 = arith.constant 0 : index
    %c0_6 = arith.constant 0 : index
    %6 = vector.load %arg4[%c0_5, %c0_6] : memref<16x128xbf16, #tpu.memory_space<vmem>>, vector<16x128xbf16>
    %7 = arith.extf %6 : vector<16x128xbf16> to vector<16x128xf32>
    %8 = arith.addf %5, %7 : vector<16x128xf32>
    %c0_7 = arith.constant 0 : index
    %c0_8 = arith.constant 0 : index
    %9 = vector.load %arg5[%c0_7, %c0_8] : memref<1x128xf32, #tpu.memory_space<vmem>>, vector<1x128xf32>
    %c0_9 = arith.constant 0 : index
    %c0_10 = arith.constant 0 : index
    %10 = vector.load %arg6[%c0_9, %c0_10] : memref<1x128xf32, #tpu.memory_space<vmem>>, vector<1x128xf32>
    %cst_11 = arith.constant dense<0.000000e+00> : vector<16xf32>
    %11 = vector.multi_reduction <add>, %8, %cst_11 [1] : vector<16x128xf32> to vector<16xf32>
    %12 = vector.shape_cast %11 : vector<16xf32> to vector<16x1xf32>
    %cst_12 = arith.constant 1.280000e+02 : f32
    %13 = vector.broadcast %cst_12 : f32 to vector<16x1xf32>
    %14 = arith.divf %12, %13 : vector<16x1xf32>
    %15 = vector.broadcast %14 : vector<16x1xf32> to vector<16x128xf32>
    %16 = arith.subf %8, %15 : vector<16x128xf32>
    %17 = arith.mulf %16, %16 : vector<16x128xf32>
    %cst_13 = arith.constant dense<0.000000e+00> : vector<16xf32>
    %18 = vector.multi_reduction <add>, %17, %cst_13 [1] : vector<16x128xf32> to vector<16xf32>
    %19 = vector.shape_cast %18 : vector<16xf32> to vector<16x1xf32>
    %cst_14 = arith.constant 1.280000e+02 : f32
    %20 = vector.broadcast %cst_14 : f32 to vector<16x1xf32>
    %21 = arith.divf %19, %20 : vector<16x1xf32>
    %cst_15 = arith.constant 9.99999974E-6 : f32
    %22 = vector.broadcast %cst_15 : f32 to vector<16x1xf32>
    %23 = arith.addf %21, %22 : vector<16x1xf32>
    %24 = math.rsqrt %23 : vector<16x1xf32>
    %25 = vector.broadcast %24 : vector<16x1xf32> to vector<16x128xf32>
    %26 = arith.mulf %16, %25 : vector<16x128xf32>
    %27 = vector.broadcast %9 : vector<1x128xf32> to vector<16x128xf32>
    %28 = arith.mulf %26, %27 : vector<16x128xf32>
    %29 = vector.broadcast %10 : vector<1x128xf32> to vector<16x128xf32>
    %30 = arith.addf %28, %29 : vector<16x128xf32>
    %31 = arith.truncf %30 : vector<16x128xf32> to vector<16x128xbf16>
    %c0_16 = arith.constant 0 : index
    %c0_17 = arith.constant 0 : index
    %32 = vector.load %arg7[%c0_16, %c0_17] : memref<16x128xbf16, #tpu.memory_space<vmem>>, vector<16x128xbf16>
    tpu.vector_store %arg7[%c0_16, %c0_17], %31 {strides = array<i32>} : memref<16x128xbf16, #tpu.memory_space<vmem>>, vector<16x128xbf16>,
    return
  }
  func.func @transform_0(%arg0: i32) -> (i32, i32) {
    %c0_i32 = arith.constant 0 : i32
    %c0_i32_0 = arith.constant 0 : i32
    return %arg0, %c0_i32 : i32, i32
  }
  func.func @transform_1(%arg0: i32) -> (i32, i32) {
    %c0_i32 = arith.constant 0 : i32
    %c0_i32_0 = arith.constant 0 : i32
    %c0_i32_1 = arith.constant 0 : i32
    return %c0_i32, %c0_i32_0 : i32, i32
  }
  func.func @transform_2(%arg0: i32) -> (i32, i32) {
    %c0_i32 = arith.constant 0 : i32
    %c0_i32_0 = arith.constant 0 : i32
    %c0_i32_1 = arith.constant 0 : i32
    return %c0_i32, %c0_i32_0 : i32, i32
  }
  func.func @transform_3(%arg0: i32) -> (i32, i32) {
    %c0_i32 = arith.constant 0 : i32
    %c0_i32_0 = arith.constant 0 : i32
    return %arg0, %c0_i32 : i32, i32
  }
  func.func @transform_4(%arg0: i32) -> (i32, i32) {
    %c0_i32 = arith.constant 0 : i32
    %c0_i32_0 = arith.constant 0 : i32
    %c0_i32_1 = arith.constant 0 : i32
    return %c0_i32, %c0_i32_0 : i32, i32
  }
  func.func @transform_5(%arg0: i32) -> (i32, i32) {
    %c0_i32 = arith.constant 0 : i32
    %c0_i32_0 = arith.constant 0 : i32
    %c0_i32_1 = arith.constant 0 : i32
    return %c0_i32, %c0_i32_0 : i32, i32
  }
  func.func @transform_6(%arg0: i32) -> (i32, i32) {
    %c0_i32 = arith.constant 0 : i32
    %c0_i32_0 = arith.constant 0 : i32
    return %arg0, %c0_i32 : i32, i32
  }
}

module attributes {stable_mosaic.version = 11 : i64} {
  func.func @_linear_nok_kernel(%arg0: i32, %arg1: i32, %arg2: memref<16x128xbf16, #tpu.memory_space<vmem>>, %arg3: memref<128x128xbf16, #tpu.memory_space<vmem>>, %arg4: memref<1x128xf32, #tpu.memory_space<vmem>>, %arg5: memref<16x128xbf16, #tpu.memory_space<vmem>>) attributes {dimension_semantics = [#tpu.dimension_semantics<parallel>, #tpu.dimension_semantics<parallel>], iteration_bounds = array<i64: 1, 1>, scalar_prefetch = 0 : i64, scratch_operands = 0 : i64, tpu.core_type = #tpu.core_type<tc>, window_params = [{transform_indices = @transform_0, window_bounds = array<i64: 16, 128>}, {transform_indices = @transform_1, window_bounds = array<i64: 128, 128>}, {transform_indices = @transform_2, window_bounds = array<i64: 1, 128>}, {transform_indices = @transform_3, window_bounds = array<i64: 16, 128>}]} {
    %c0 = arith.constant 0 : index
    %c0_0 = arith.constant 0 : index
    %0 = vector.load %arg2[%c0, %c0_0] : memref<16x128xbf16, #tpu.memory_space<vmem>>, vector<16x128xbf16>
    %c0_1 = arith.constant 0 : index
    %c0_2 = arith.constant 0 : index
    %1 = vector.load %arg3[%c0_1, %c0_2] : memref<128x128xbf16, #tpu.memory_space<vmem>>, vector<128x128xbf16>
    %cst = arith.constant dense<0.000000e+00> : vector<16x128xf32>
    %2 = tpu.matmul %0, %1, %cst {dimension_numbers = #tpu.dot_dimension_numbers<[1], [0], [0], [1], [0, 0, 1, 1], [], []>} : vector<16x128xbf16>, vector<128x128xbf16>, vector<16x128xf32> -> vector<16x128xf32>
    %c0_3 = arith.constant 0 : index
    %c0_4 = arith.constant 0 : index
    %3 = vector.load %arg4[%c0_3, %c0_4] : memref<1x128xf32, #tpu.memory_space<vmem>>, vector<1x128xf32>
    %4 = vector.broadcast %3 : vector<1x128xf32> to vector<16x128xf32>
    %5 = arith.addf %2, %4 : vector<16x128xf32>
    %6 = arith.truncf %5 : vector<16x128xf32> to vector<16x128xbf16>
    %c0_5 = arith.constant 0 : index
    %c0_6 = arith.constant 0 : index
    %7 = vector.load %arg5[%c0_5, %c0_6] : memref<16x128xbf16, #tpu.memory_space<vmem>>, vector<16x128xbf16>
    tpu.vector_store %arg5[%c0_5, %c0_6], %6 {strides = array<i32>} : memref<16x128xbf16, #tpu.memory_space<vmem>>, vector<16x128xbf16>,
    return
  }
  func.func @transform_0(%arg0: i32, %arg1: i32) -> (i32, i32) {
    %c0_i32 = arith.constant 0 : i32
    %c0_i32_0 = arith.constant 0 : i32
    return %arg0, %c0_i32 : i32, i32
  }
  func.func @transform_1(%arg0: i32, %arg1: i32) -> (i32, i32) {
    %c0_i32 = arith.constant 0 : i32
    %c0_i32_0 = arith.constant 0 : i32
    return %c0_i32, %arg1 : i32, i32
  }
  func.func @transform_2(%arg0: i32, %arg1: i32) -> (i32, i32) {
    %c0_i32 = arith.constant 0 : i32
    %c0_i32_0 = arith.constant 0 : i32
    return %c0_i32, %arg1 : i32, i32
  }
  func.func @transform_3(%arg0: i32, %arg1: i32) -> (i32, i32) {
    %c0_i32 = arith.constant 0 : i32
    return %arg0, %arg1 : i32, i32
  }
}

module attributes {stable_mosaic.version = 11 : i64} {
  func.func @_mha_kernel(%arg0: i32, %arg1: i32, %arg2: memref<1x8x128xbf16, #tpu.memory_space<vmem>>, %arg3: memref<1x16x128xbf16, #tpu.memory_space<vmem>>, %arg4: memref<1x16x128xbf16, #tpu.memory_space<vmem>>, %arg5: memref<1x8x128xbf16, #tpu.memory_space<vmem>>) attributes {dimension_semantics = [#tpu.dimension_semantics<parallel>, #tpu.dimension_semantics<parallel>], iteration_bounds = array<i64: 2, 1>, scalar_prefetch = 0 : i64, scratch_operands = 0 : i64, tpu.core_type = #tpu.core_type<tc>, window_params = [{transform_indices = @transform_0, window_bounds = array<i64: 1, 8, 128>}, {transform_indices = @transform_1, window_bounds = array<i64: 1, 16, 128>}, {transform_indices = @transform_2, window_bounds = array<i64: 1, 16, 128>}, {transform_indices = @transform_3, window_bounds = array<i64: 1, 8, 128>}]} {
    %c0 = arith.constant 0 : index
    %c0_0 = arith.constant 0 : index
    %c0_1 = arith.constant 0 : index
    %0 = vector.load %arg2[%c0, %c0_0, %c0_1] : memref<1x8x128xbf16, #tpu.memory_space<vmem>>, vector<1x8x128xbf16>
    %1 = vector.shape_cast %0 : vector<1x8x128xbf16> to vector<8x128xbf16>
    %c0_2 = arith.constant 0 : index
    %c0_3 = arith.constant 0 : index
    %c0_4 = arith.constant 0 : index
    %2 = vector.load %arg3[%c0_2, %c0_3, %c0_4] : memref<1x16x128xbf16, #tpu.memory_space<vmem>>, vector<1x16x128xbf16>
    %3 = vector.shape_cast %2 : vector<1x16x128xbf16> to vector<16x128xbf16>
    %c0_5 = arith.constant 0 : index
    %c0_6 = arith.constant 0 : index
    %c0_7 = arith.constant 0 : index
    %4 = vector.load %arg4[%c0_5, %c0_6, %c0_7] : memref<1x16x128xbf16, #tpu.memory_space<vmem>>, vector<1x16x128xbf16>
    %5 = vector.shape_cast %4 : vector<1x16x128xbf16> to vector<16x128xbf16>
    %6 = vector.extract_strided_slice %1 {offsets = [0, 0], sizes = [8, 32], strides = [1, 1]} : vector<8x128xbf16> to vector<8x32xbf16>
    %7 = vector.extract_strided_slice %3 {offsets = [0, 0], sizes = [16, 32], strides = [1, 1]} : vector<16x128xbf16> to vector<16x32xbf16>
    %cst = arith.constant dense<0.000000e+00> : vector<8x16xf32>
    %8 = tpu.matmul %6, %7, %cst {dimension_numbers = #tpu.dot_dimension_numbers<[1], [1], [0], [0], [0, 0, 1, 0], [], []>} : vector<8x32xbf16>, vector<16x32xbf16>, vector<8x16xf32> -> vector<8x16xf32>
    %cst_8 = arith.constant dense<0xFF800000> : vector<8xf32>
    %9 = vector.multi_reduction <maximumf>, %8, %cst_8 [1] : vector<8x16xf32> to vector<8xf32>
    %10 = vector.shape_cast %9 : vector<8xf32> to vector<8x1xf32>
    %11 = vector.broadcast %10 : vector<8x1xf32> to vector<8x16xf32>
    %12 = arith.subf %8, %11 : vector<8x16xf32>
    %13 = math.exp %12 : vector<8x16xf32>
    %cst_9 = arith.constant dense<0.000000e+00> : vector<8xf32>
    %14 = vector.multi_reduction <add>, %13, %cst_9 [1] : vector<8x16xf32> to vector<8xf32>
    %15 = vector.shape_cast %14 : vector<8xf32> to vector<8x1xf32>
    %16 = tpu.reciprocal %15 {approx = true} : vector<8x1xf32> -> vector<8x1xf32>
    %17 = vector.broadcast %16 : vector<8x1xf32> to vector<8x16xf32>
    %18 = arith.mulf %13, %17 : vector<8x16xf32>
    %19 = arith.truncf %18 : vector<8x16xf32> to vector<8x16xbf16>
    %20 = vector.extract_strided_slice %5 {offsets = [0, 0], sizes = [16, 32], strides = [1, 1]} : vector<16x128xbf16> to vector<16x32xbf16>
    %cst_10 = arith.constant dense<0.000000e+00> : vector<8x32xf32>
    %21 = tpu.matmul %19, %20, %cst_10 {dimension_numbers = #tpu.dot_dimension_numbers<[1], [0], [0], [1], [0, 0, 1, 1], [], []>} : vector<8x16xbf16>, vector<16x32xbf16>, vector<8x32xf32> -> vector<8x32xf32>
    %22 = vector.extract_strided_slice %1 {offsets = [0, 32], sizes = [8, 32], strides = [1, 1]} : vector<8x128xbf16> to vector<8x32xbf16>
    %23 = vector.extract_strided_slice %3 {offsets = [0, 32], sizes = [16, 32], strides = [1, 1]} : vector<16x128xbf16> to vector<16x32xbf16>
    %cst_11 = arith.constant dense<0.000000e+00> : vector<8x16xf32>
    %24 = tpu.matmul %22, %23, %cst_11 {dimension_numbers = #tpu.dot_dimension_numbers<[1], [1], [0], [0], [0, 0, 1, 0], [], []>} : vector<8x32xbf16>, vector<16x32xbf16>, vector<8x16xf32> -> vector<8x16xf32>
    %cst_12 = arith.constant dense<0xFF800000> : vector<8xf32>
    %25 = vector.multi_reduction <maximumf>, %24, %cst_12 [1] : vector<8x16xf32> to vector<8xf32>
    %26 = vector.shape_cast %25 : vector<8xf32> to vector<8x1xf32>
    %27 = vector.broadcast %26 : vector<8x1xf32> to vector<8x16xf32>
    %28 = arith.subf %24, %27 : vector<8x16xf32>
    %29 = math.exp %28 : vector<8x16xf32>
    %cst_13 = arith.constant dense<0.000000e+00> : vector<8xf32>
    %30 = vector.multi_reduction <add>, %29, %cst_13 [1] : vector<8x16xf32> to vector<8xf32>
    %31 = vector.shape_cast %30 : vector<8xf32> to vector<8x1xf32>
    %32 = tpu.reciprocal %31 {approx = true} : vector<8x1xf32> -> vector<8x1xf32>
    %33 = vector.broadcast %32 : vector<8x1xf32> to vector<8x16xf32>
    %34 = arith.mulf %29, %33 : vector<8x16xf32>
    %35 = arith.truncf %34 : vector<8x16xf32> to vector<8x16xbf16>
    %36 = vector.extract_strided_slice %5 {offsets = [0, 32], sizes = [16, 32], strides = [1, 1]} : vector<16x128xbf16> to vector<16x32xbf16>
    %cst_14 = arith.constant dense<0.000000e+00> : vector<8x32xf32>
    %37 = tpu.matmul %35, %36, %cst_14 {dimension_numbers = #tpu.dot_dimension_numbers<[1], [0], [0], [1], [0, 0, 1, 1], [], []>} : vector<8x16xbf16>, vector<16x32xbf16>, vector<8x32xf32> -> vector<8x32xf32>
    %38 = vector.extract_strided_slice %1 {offsets = [0, 64], sizes = [8, 32], strides = [1, 1]} : vector<8x128xbf16> to vector<8x32xbf16>
    %39 = vector.extract_strided_slice %3 {offsets = [0, 64], sizes = [16, 32], strides = [1, 1]} : vector<16x128xbf16> to vector<16x32xbf16>
    %cst_15 = arith.constant dense<0.000000e+00> : vector<8x16xf32>
    %40 = tpu.matmul %38, %39, %cst_15 {dimension_numbers = #tpu.dot_dimension_numbers<[1], [1], [0], [0], [0, 0, 1, 0], [], []>} : vector<8x32xbf16>, vector<16x32xbf16>, vector<8x16xf32> -> vector<8x16xf32>
    %cst_16 = arith.constant dense<0xFF800000> : vector<8xf32>
    %41 = vector.multi_reduction <maximumf>, %40, %cst_16 [1] : vector<8x16xf32> to vector<8xf32>
    %42 = vector.shape_cast %41 : vector<8xf32> to vector<8x1xf32>
    %43 = vector.broadcast %42 : vector<8x1xf32> to vector<8x16xf32>
    %44 = arith.subf %40, %43 : vector<8x16xf32>
    %45 = math.exp %44 : vector<8x16xf32>
    %cst_17 = arith.constant dense<0.000000e+00> : vector<8xf32>
    %46 = vector.multi_reduction <add>, %45, %cst_17 [1] : vector<8x16xf32> to vector<8xf32>
    %47 = vector.shape_cast %46 : vector<8xf32> to vector<8x1xf32>
    %48 = tpu.reciprocal %47 {approx = true} : vector<8x1xf32> -> vector<8x1xf32>
    %49 = vector.broadcast %48 : vector<8x1xf32> to vector<8x16xf32>
    %50 = arith.mulf %45, %49 : vector<8x16xf32>
    %51 = arith.truncf %50 : vector<8x16xf32> to vector<8x16xbf16>
    %52 = vector.extract_strided_slice %5 {offsets = [0, 64], sizes = [16, 32], strides = [1, 1]} : vector<16x128xbf16> to vector<16x32xbf16>
    %cst_18 = arith.constant dense<0.000000e+00> : vector<8x32xf32>
    %53 = tpu.matmul %51, %52, %cst_18 {dimension_numbers = #tpu.dot_dimension_numbers<[1], [0], [0], [1], [0, 0, 1, 1], [], []>} : vector<8x16xbf16>, vector<16x32xbf16>, vector<8x32xf32> -> vector<8x32xf32>
    %54 = vector.extract_strided_slice %1 {offsets = [0, 96], sizes = [8, 32], strides = [1, 1]} : vector<8x128xbf16> to vector<8x32xbf16>
    %55 = vector.extract_strided_slice %3 {offsets = [0, 96], sizes = [16, 32], strides = [1, 1]} : vector<16x128xbf16> to vector<16x32xbf16>
    %cst_19 = arith.constant dense<0.000000e+00> : vector<8x16xf32>
    %56 = tpu.matmul %54, %55, %cst_19 {dimension_numbers = #tpu.dot_dimension_numbers<[1], [1], [0], [0], [0, 0, 1, 0], [], []>} : vector<8x32xbf16>, vector<16x32xbf16>, vector<8x16xf32> -> vector<8x16xf32>
    %cst_20 = arith.constant dense<0xFF800000> : vector<8xf32>
    %57 = vector.multi_reduction <maximumf>, %56, %cst_20 [1] : vector<8x16xf32> to vector<8xf32>
    %58 = vector.shape_cast %57 : vector<8xf32> to vector<8x1xf32>
    %59 = vector.broadcast %58 : vector<8x1xf32> to vector<8x16xf32>
    %60 = arith.subf %56, %59 : vector<8x16xf32>
    %61 = math.exp %60 : vector<8x16xf32>
    %cst_21 = arith.constant dense<0.000000e+00> : vector<8xf32>
    %62 = vector.multi_reduction <add>, %61, %cst_21 [1] : vector<8x16xf32> to vector<8xf32>
    %63 = vector.shape_cast %62 : vector<8xf32> to vector<8x1xf32>
    %64 = tpu.reciprocal %63 {approx = true} : vector<8x1xf32> -> vector<8x1xf32>
    %65 = vector.broadcast %64 : vector<8x1xf32> to vector<8x16xf32>
    %66 = arith.mulf %61, %65 : vector<8x16xf32>
    %67 = arith.truncf %66 : vector<8x16xf32> to vector<8x16xbf16>
    %68 = vector.extract_strided_slice %5 {offsets = [0, 96], sizes = [16, 32], strides = [1, 1]} : vector<16x128xbf16> to vector<16x32xbf16>
    %cst_22 = arith.constant dense<0.000000e+00> : vector<8x32xf32>
    %69 = tpu.matmul %67, %68, %cst_22 {dimension_numbers = #tpu.dot_dimension_numbers<[1], [0], [0], [1], [0, 0, 1, 1], [], []>} : vector<8x16xbf16>, vector<16x32xbf16>, vector<8x32xf32> -> vector<8x32xf32>
    %70 = tpu.concatenate %21, %37, %53, %69 in 1 : vector<8x32xf32>, vector<8x32xf32>, vector<8x32xf32>, vector<8x32xf32> -> vector<8x128xf32>
    %71 = arith.truncf %70 : vector<8x128xf32> to vector<8x128xbf16>
    %c0_23 = arith.constant 0 : index
    %c0_24 = arith.constant 0 : index
    %c0_25 = arith.constant 0 : index
    %72 = vector.load %arg5[%c0_23, %c0_24, %c0_25] : memref<1x8x128xbf16, #tpu.memory_space<vmem>>, vector<1x8x128xbf16>
    %73 = vector.shape_cast %72 : vector<1x8x128xbf16> to vector<8x128xbf16>
    %74 = vector.shape_cast %71 : vector<8x128xbf16> to vector<1x8x128xbf16>
    tpu.vector_store %arg5[%c0_23, %c0_24, %c0_25], %74 {strides = array<i32>} : memref<1x8x128xbf16, #tpu.memory_space<vmem>>, vector<1x8x128xbf16>,
    return
  }
  func.func @transform_0(%arg0: i32, %arg1: i32) -> (i32, i32, i32) {
    %c0_i32 = arith.constant 0 : i32
    %c0_i32_0 = arith.constant 0 : i32
    return %arg0, %arg1, %c0_i32 : i32, i32, i32
  }
  func.func @transform_1(%arg0: i32, %arg1: i32) -> (i32, i32, i32) {
    %c0_i32 = arith.constant 0 : i32
    %c0_i32_0 = arith.constant 0 : i32
    %c0_i32_1 = arith.constant 0 : i32
    return %arg0, %c0_i32, %c0_i32_0 : i32, i32, i32
  }
  func.func @transform_2(%arg0: i32, %arg1: i32) -> (i32, i32, i32) {
    %c0_i32 = arith.constant 0 : i32
    %c1_i32 = arith.constant 1 : i32
    %c0_i32_0 = arith.constant 0 : i32
    return %arg0, %c0_i32, %c1_i32 : i32, i32, i32
  }
  func.func @transform_3(%arg0: i32, %arg1: i32) -> (i32, i32, i32) {
    %c0_i32 = arith.constant 0 : i32
    %c0_i32_0 = arith.constant 0 : i32
    return %arg0, %arg1, %c0_i32 : i32, i32, i32
  }
}

module attributes {stable_mosaic.version = 11 : i64} {
  func.func @_ffn_res_ln_single_kernel(%arg0: i32, %arg1: memref<16x128xbf16, #tpu.memory_space<vmem>>, %arg2: memref<128x256xbf16, #tpu.memory_space<vmem>>, %arg3: memref<1x256xf32, #tpu.memory_space<vmem>>, %arg4: memref<256x128xbf16, #tpu.memory_space<vmem>>, %arg5: memref<1x128xf32, #tpu.memory_space<vmem>>, %arg6: memref<1x128xf32, #tpu.memory_space<vmem>>, %arg7: memref<1x128xf32, #tpu.memory_space<vmem>>, %arg8: memref<16x128xbf16, #tpu.memory_space<vmem>>) attributes {dimension_semantics = [#tpu.dimension_semantics<parallel>], iteration_bounds = array<i64: 1>, scalar_prefetch = 0 : i64, scratch_operands = 0 : i64, tpu.core_type = #tpu.core_type<tc>, window_params = [{transform_indices = @transform_0, window_bounds = array<i64: 16, 128>}, {pipeline_mode = #tpu.pipeline_mode<synchronous>, transform_indices = @transform_1, window_bounds = array<i64: 128, 256>}, {pipeline_mode = #tpu.pipeline_mode<synchronous>, transform_indices = @transform_2, window_bounds = array<i64: 1, 256>}, {pipeline_mode = #tpu.pipeline_mode<synchronous>, transform_indices = @transform_3, window_bounds = array<i64: 256, 128>}, {pipeline_mode = #tpu.pipeline_mode<synchronous>, transform_indices = @transform_4, window_bounds = array<i64: 1, 128>}, {pipeline_mode = #tpu.pipeline_mode<synchronous>, transform_indices = @transform_5, window_bounds = array<i64: 1, 128>}, {pipeline_mode = #tpu.pipeline_mode<synchronous>, transform_indices = @transform_6, window_bounds = array<i64: 1, 128>}, {transform_indices = @transform_7, window_bounds = array<i64: 16, 128>}]} {
    %c0 = arith.constant 0 : index
    %c0_0 = arith.constant 0 : index
    %0 = vector.load %arg1[%c0, %c0_0] : memref<16x128xbf16, #tpu.memory_space<vmem>>, vector<16x128xbf16>
    %c0_1 = arith.constant 0 : index
    %c0_2 = arith.constant 0 : index
    %1 = vector.load %arg2[%c0_1, %c0_2] : memref<128x256xbf16, #tpu.memory_space<vmem>>, vector<128x256xbf16>
    %cst = arith.constant dense<0.000000e+00> : vector<16x256xf32>
    %2 = tpu.matmul %0, %1, %cst {dimension_numbers = #tpu.dot_dimension_numbers<[1], [0], [0], [1], [0, 0, 1, 1], [], []>} : vector<16x128xbf16>, vector<128x256xbf16>, vector<16x256xf32> -> vector<16x256xf32>
    %c0_3 = arith.constant 0 : index
    %c0_4 = arith.constant 0 : index
    %3 = vector.load %arg3[%c0_3, %c0_4] : memref<1x256xf32, #tpu.memory_space<vmem>>, vector<1x256xf32>
    %4 = vector.broadcast %3 : vector<1x256xf32> to vector<16x256xf32>
    %5 = arith.addf %2, %4 : vector<16x256xf32>
    %cst_5 = arith.constant 0.000000e+00 : f32
    %6 = vector.broadcast %cst_5 : f32 to vector<16x256xf32>
    %7 = arith.maximumf %5, %6 : vector<16x256xf32>
    %8 = arith.truncf %7 : vector<16x256xf32> to vector<16x256xbf16>
    %c0_6 = arith.constant 0 : index
    %c0_7 = arith.constant 0 : index
    %9 = vector.load %arg4[%c0_6, %c0_7] : memref<256x128xbf16, #tpu.memory_space<vmem>>, vector<256x128xbf16>
    %cst_8 = arith.constant dense<0.000000e+00> : vector<16x128xf32>
    %10 = tpu.matmul %8, %9, %cst_8 {dimension_numbers = #tpu.dot_dimension_numbers<[1], [0], [0], [1], [0, 0, 1, 1], [], []>} : vector<16x256xbf16>, vector<256x128xbf16>, vector<16x128xf32> -> vector<16x128xf32>
    %c0_9 = arith.constant 0 : index
    %c0_10 = arith.constant 0 : index
    %11 = vector.load %arg5[%c0_9, %c0_10] : memref<1x128xf32, #tpu.memory_space<vmem>>, vector<1x128xf32>
    %12 = vector.broadcast %11 : vector<1x128xf32> to vector<16x128xf32>
    %13 = arith.addf %10, %12 : vector<16x128xf32>
    %14 = arith.extf %0 : vector<16x128xbf16> to vector<16x128xf32>
    %15 = arith.addf %13, %14 : vector<16x128xf32>
    %c0_11 = arith.constant 0 : index
    %c0_12 = arith.constant 0 : index
    %16 = vector.load %arg6[%c0_11, %c0_12] : memref<1x128xf32, #tpu.memory_space<vmem>>, vector<1x128xf32>
    %c0_13 = arith.constant 0 : index
    %c0_14 = arith.constant 0 : index
    %17 = vector.load %arg7[%c0_13, %c0_14] : memref<1x128xf32, #tpu.memory_space<vmem>>, vector<1x128xf32>
    %cst_15 = arith.constant dense<0.000000e+00> : vector<16xf32>
    %18 = vector.multi_reduction <add>, %15, %cst_15 [1] : vector<16x128xf32> to vector<16xf32>
    %19 = vector.shape_cast %18 : vector<16xf32> to vector<16x1xf32>
    %cst_16 = arith.constant 1.280000e+02 : f32
    %20 = vector.broadcast %cst_16 : f32 to vector<16x1xf32>
    %21 = arith.divf %19, %20 : vector<16x1xf32>
    %22 = vector.broadcast %21 : vector<16x1xf32> to vector<16x128xf32>
    %23 = arith.subf %15, %22 : vector<16x128xf32>
    %24 = arith.mulf %23, %23 : vector<16x128xf32>
    %cst_17 = arith.constant dense<0.000000e+00> : vector<16xf32>
    %25 = vector.multi_reduction <add>, %24, %cst_17 [1] : vector<16x128xf32> to vector<16xf32>
    %26 = vector.shape_cast %25 : vector<16xf32> to vector<16x1xf32>
    %cst_18 = arith.constant 1.280000e+02 : f32
    %27 = vector.broadcast %cst_18 : f32 to vector<16x1xf32>
    %28 = arith.divf %26, %27 : vector<16x1xf32>
    %cst_19 = arith.constant 9.99999974E-6 : f32
    %29 = vector.broadcast %cst_19 : f32 to vector<16x1xf32>
    %30 = arith.addf %28, %29 : vector<16x1xf32>
    %31 = math.rsqrt %30 : vector<16x1xf32>
    %32 = vector.broadcast %31 : vector<16x1xf32> to vector<16x128xf32>
    %33 = arith.mulf %23, %32 : vector<16x128xf32>
    %34 = vector.broadcast %16 : vector<1x128xf32> to vector<16x128xf32>
    %35 = arith.mulf %33, %34 : vector<16x128xf32>
    %36 = vector.broadcast %17 : vector<1x128xf32> to vector<16x128xf32>
    %37 = arith.addf %35, %36 : vector<16x128xf32>
    %38 = arith.truncf %37 : vector<16x128xf32> to vector<16x128xbf16>
    %c0_20 = arith.constant 0 : index
    %c0_21 = arith.constant 0 : index
    %39 = vector.load %arg8[%c0_20, %c0_21] : memref<16x128xbf16, #tpu.memory_space<vmem>>, vector<16x128xbf16>
    tpu.vector_store %arg8[%c0_20, %c0_21], %38 {strides = array<i32>} : memref<16x128xbf16, #tpu.memory_space<vmem>>, vector<16x128xbf16>,
    return
  }
  func.func @transform_0(%arg0: i32) -> (i32, i32) {
    %c0_i32 = arith.constant 0 : i32
    %c0_i32_0 = arith.constant 0 : i32
    return %arg0, %c0_i32 : i32, i32
  }
  func.func @transform_1(%arg0: i32) -> (i32, i32) {
    %c0_i32 = arith.constant 0 : i32
    %c0_i32_0 = arith.constant 0 : i32
    %c0_i32_1 = arith.constant 0 : i32
    return %c0_i32, %c0_i32_0 : i32, i32
  }
  func.func @transform_2(%arg0: i32) -> (i32, i32) {
    %c0_i32 = arith.constant 0 : i32
    %c0_i32_0 = arith.constant 0 : i32
    %c0_i32_1 = arith.constant 0 : i32
    return %c0_i32, %c0_i32_0 : i32, i32
  }
  func.func @transform_3(%arg0: i32) -> (i32, i32) {
    %c0_i32 = arith.constant 0 : i32
    %c0_i32_0 = arith.constant 0 : i32
    %c0_i32_1 = arith.constant 0 : i32
    return %c0_i32, %c0_i32_0 : i32, i32
  }
  func.func @transform_4(%arg0: i32) -> (i32, i32) {
    %c0_i32 = arith.constant 0 : i32
    %c0_i32_0 = arith.constant 0 : i32
    %c0_i32_1 = arith.constant 0 : i32
    return %c0_i32, %c0_i32_0 : i32, i32
  }
  func.func @transform_5(%arg0: i32) -> (i32, i32) {
    %c0_i32 = arith.constant 0 : i32
    %c0_i32_0 = arith.constant 0 : i32
    %c0_i32_1 = arith.constant 0 : i32
    return %c0_i32, %c0_i32_0 : i32, i32
  }
  func.func @transform_6(%arg0: i32) -> (i32, i32) {
    %c0_i32 = arith.constant 0 : i32
    %c0_i32_0 = arith.constant 0 : i32
    %c0_i32_1 = arith.constant 0 : i32
    return %c0_i32, %c0_i32_0 : i32, i32
  }
  func.func @transform_7(%arg0: i32) -> (i32, i32) {
    %c0_i32 = arith.constant 0 : i32
    %c0_i32_0 = arith.constant 0 : i32
    return %arg0, %c0_i32 : i32, i32
  }
}

module attributes {stable_mosaic.version = 11 : i64} {
  func.func @_ln_linear_kernel(%arg0: i32, %arg1: i32, %arg2: memref<16x128xbf16, #tpu.memory_space<vmem>>, %arg3: memref<1x128xf32, #tpu.memory_space<vmem>>, %arg4: memref<1x128xf32, #tpu.memory_space<vmem>>, %arg5: memref<128x256xbf16, #tpu.memory_space<vmem>>, %arg6: memref<1x256xf32, #tpu.memory_space<vmem>>, %arg7: memref<16x256xf32, #tpu.memory_space<vmem>>) attributes {dimension_semantics = [#tpu.dimension_semantics<parallel>, #tpu.dimension_semantics<parallel>], iteration_bounds = array<i64: 1, 1>, scalar_prefetch = 0 : i64, scratch_operands = 0 : i64, tpu.core_type = #tpu.core_type<tc>, window_params = [{transform_indices = @transform_0, window_bounds = array<i64: 16, 128>}, {pipeline_mode = #tpu.pipeline_mode<synchronous>, transform_indices = @transform_1, window_bounds = array<i64: 1, 128>}, {pipeline_mode = #tpu.pipeline_mode<synchronous>, transform_indices = @transform_2, window_bounds = array<i64: 1, 128>}, {transform_indices = @transform_3, window_bounds = array<i64: 128, 256>}, {transform_indices = @transform_4, window_bounds = array<i64: 1, 256>}, {transform_indices = @transform_5, window_bounds = array<i64: 16, 256>}]} {
    %c0 = arith.constant 0 : index
    %c0_0 = arith.constant 0 : index
    %0 = vector.load %arg2[%c0, %c0_0] : memref<16x128xbf16, #tpu.memory_space<vmem>>, vector<16x128xbf16>
    %1 = arith.extf %0 : vector<16x128xbf16> to vector<16x128xf32>
    %c0_1 = arith.constant 0 : index
    %c0_2 = arith.constant 0 : index
    %2 = vector.load %arg3[%c0_1, %c0_2] : memref<1x128xf32, #tpu.memory_space<vmem>>, vector<1x128xf32>
    %c0_3 = arith.constant 0 : index
    %c0_4 = arith.constant 0 : index
    %3 = vector.load %arg4[%c0_3, %c0_4] : memref<1x128xf32, #tpu.memory_space<vmem>>, vector<1x128xf32>
    %cst = arith.constant dense<0.000000e+00> : vector<16xf32>
    %4 = vector.multi_reduction <add>, %1, %cst [1] : vector<16x128xf32> to vector<16xf32>
    %5 = vector.shape_cast %4 : vector<16xf32> to vector<16x1xf32>
    %cst_5 = arith.constant 1.280000e+02 : f32
    %6 = vector.broadcast %cst_5 : f32 to vector<16x1xf32>
    %7 = arith.divf %5, %6 : vector<16x1xf32>
    %8 = vector.broadcast %7 : vector<16x1xf32> to vector<16x128xf32>
    %9 = arith.subf %1, %8 : vector<16x128xf32>
    %10 = arith.mulf %9, %9 : vector<16x128xf32>
    %cst_6 = arith.constant dense<0.000000e+00> : vector<16xf32>
    %11 = vector.multi_reduction <add>, %10, %cst_6 [1] : vector<16x128xf32> to vector<16xf32>
    %12 = vector.shape_cast %11 : vector<16xf32> to vector<16x1xf32>
    %cst_7 = arith.constant 1.280000e+02 : f32
    %13 = vector.broadcast %cst_7 : f32 to vector<16x1xf32>
    %14 = arith.divf %12, %13 : vector<16x1xf32>
    %cst_8 = arith.constant 9.99999974E-6 : f32
    %15 = vector.broadcast %cst_8 : f32 to vector<16x1xf32>
    %16 = arith.addf %14, %15 : vector<16x1xf32>
    %17 = math.rsqrt %16 : vector<16x1xf32>
    %18 = vector.broadcast %17 : vector<16x1xf32> to vector<16x128xf32>
    %19 = arith.mulf %9, %18 : vector<16x128xf32>
    %20 = vector.broadcast %2 : vector<1x128xf32> to vector<16x128xf32>
    %21 = arith.mulf %19, %20 : vector<16x128xf32>
    %22 = vector.broadcast %3 : vector<1x128xf32> to vector<16x128xf32>
    %23 = arith.addf %21, %22 : vector<16x128xf32>
    %24 = arith.truncf %23 : vector<16x128xf32> to vector<16x128xbf16>
    %c0_9 = arith.constant 0 : index
    %c0_10 = arith.constant 0 : index
    %25 = vector.load %arg5[%c0_9, %c0_10] : memref<128x256xbf16, #tpu.memory_space<vmem>>, vector<128x256xbf16>
    %cst_11 = arith.constant dense<0.000000e+00> : vector<16x256xf32>
    %26 = tpu.matmul %24, %25, %cst_11 {dimension_numbers = #tpu.dot_dimension_numbers<[1], [0], [0], [1], [0, 0, 1, 1], [], []>} : vector<16x128xbf16>, vector<128x256xbf16>, vector<16x256xf32> -> vector<16x256xf32>
    %c0_12 = arith.constant 0 : index
    %c0_13 = arith.constant 0 : index
    %27 = vector.load %arg6[%c0_12, %c0_13] : memref<1x256xf32, #tpu.memory_space<vmem>>, vector<1x256xf32>
    %28 = vector.broadcast %27 : vector<1x256xf32> to vector<16x256xf32>
    %29 = arith.addf %26, %28 : vector<16x256xf32>
    %c0_14 = arith.constant 0 : index
    %c0_15 = arith.constant 0 : index
    %30 = vector.load %arg7[%c0_14, %c0_15] : memref<16x256xf32, #tpu.memory_space<vmem>>, vector<16x256xf32>
    tpu.vector_store %arg7[%c0_14, %c0_15], %29 {strides = array<i32>} : memref<16x256xf32, #tpu.memory_space<vmem>>, vector<16x256xf32>,
    return
  }
  func.func @transform_0(%arg0: i32, %arg1: i32) -> (i32, i32) {
    %c0_i32 = arith.constant 0 : i32
    %c0_i32_0 = arith.constant 0 : i32
    return %arg0, %c0_i32 : i32, i32
  }
  func.func @transform_1(%arg0: i32, %arg1: i32) -> (i32, i32) {
    %c0_i32 = arith.constant 0 : i32
    %c0_i32_0 = arith.constant 0 : i32
    %c0_i32_1 = arith.constant 0 : i32
    return %c0_i32, %c0_i32_0 : i32, i32
  }
  func.func @transform_2(%arg0: i32, %arg1: i32) -> (i32, i32) {
    %c0_i32 = arith.constant 0 : i32
    %c0_i32_0 = arith.constant 0 : i32
    %c0_i32_1 = arith.constant 0 : i32
    return %c0_i32, %c0_i32_0 : i32, i32
  }
  func.func @transform_3(%arg0: i32, %arg1: i32) -> (i32, i32) {
    %c0_i32 = arith.constant 0 : i32
    %c0_i32_0 = arith.constant 0 : i32
    return %c0_i32, %arg1 : i32, i32
  }
  func.func @transform_4(%arg0: i32, %arg1: i32) -> (i32, i32) {
    %c0_i32 = arith.constant 0 : i32
    %c0_i32_0 = arith.constant 0 : i32
    return %c0_i32, %arg1 : i32, i32
  }
  func.func @transform_5(%arg0: i32, %arg1: i32) -> (i32, i32) {
    %c0_i32 = arith.constant 0 : i32
    return %arg0, %arg1 : i32, i32
  }
}

</mosaic_0001>

<bundles_post_ra>
// kernel: transformer_model_forward.28
= control target key start
LH: loop header
LB: loop body
LE: loop exit
PB: predicated region body
PF: predicated region fallthrough
CT: control target
= control target key end

     0   :  { %s438_s1 = inlined_call_operand.vmem [shape: bf16[128,128], index: 1, kind: input, shape index: {}]   ;;  %s439_s0 = inlined_call_operand.vmem [shape: bf16[32,128], index: 0, kind: input, shape index: {}]   ;;  %s440_s3 = inlined_call_operand.vmem [shape: bf16[32,128], index: 3, kind: input, shape index: {}]   ;;  %s441_s2 = inlined_call_operand.vmem [shape: f32[1,128], index: 2, kind: input, shape index: {}]   ;;  %s442_s4 = inlined_call_operand.vmem [shape: f32[1,128], index: 4, kind: input, shape index: {}]   ;;  %s443_s5 = inlined_call_operand.vmem [shape: f32[1,128], index: 5, kind: input, shape index: {}]   ;;  %s444_s6 = inlined_call_operand.vmem [shape: bf16[32,128], index: 6, kind: output, shape index: {}]  }
   0x1   :  { %v334_v0 = vld [vmem:[%s438_s1 + $0x38] sm:$0xff]   ;;  %v335_v1 = vld [vmem:[%s438_s1 + $0x30] sm:$0xff]   ;;  %v336_v2 = vld [vmem:[%s438_s1 + $0x28] sm:$0xff]  }
   0x2   :  { %314 = vmatprep.subr.bf16.mxu0 %v334_v0  ;;  %v337_v3 = vld [vmem:[%s438_s1 + $0x20] sm:$0xff]   ;;  %v338_v5 = vld [vmem:[%s438_s1 + $0x18] sm:$0xff]   ;;  %v339_v6 = vld [vmem:[%s438_s1 + $0x10] sm:$0xff]  }
   0x3   :  { %315 = vmatpush3.bf16.msra.mxu0 %v334_v0  ;;  %v342_v4 = vld [vmem:[%s439_s0] sm:$0xff]   ;;  %v340_v7 = vld [vmem:[%s438_s1 + $0x8] sm:$0xff]  }
   0x4   :  { %316 = vmatprep.subr.bf16.mxu0 %v335_v1  ;;  %330 = vmatprep.mubr.bf16.mxu0 %v342_v4  ;;  %v341_v8 = vld [vmem:[%s438_s1] sm:$0xff]   ;;  %v343_v9 = vld [vmem:[%s439_s0 + $0x8] sm:$0xff]  }
   0x5   :  { %v302_v10 = vld [vmem:[%s440_s3 + $0x8] sm:$0xff]   ;;  %v263_v11 = vld [vmem:[%s441_s2] ss:$0 sm:$0xff] }
   0x6   :  { %v285_v12 = vld [vmem:[%s440_s3] sm:$0xff]   ;;  %v290_v13 = vunpack.c.l.bf16 %v302_v10  ;;  %v291_v20 = vunpack.c.h.bf16 %v302_v10 }
   0x7   :  { %317 = vmatpush3.bf16.msra.mxu0 %v335_v1  ;;  %v286_v16 = vunpack.c.l.bf16 %v285_v12  ;;  %v287_v24 = vunpack.c.h.bf16 %v285_v12  ;;  %v274_v59 = vld [vmem:[%s442_s4] ss:$0 sm:$0xff] }
   0x8   :  { %318 = vmatprep.subr.bf16.mxu0 %v336_v2  ;;  %v275_v0 = vld [vmem:[%s443_s5] ss:$0 sm:$0xff] }
   0xb   :  { %319 = vmatpush3.bf16.msra.mxu0 %v336_v2 }
   0xc   :  { %320 = vmatprep.subr.bf16.mxu0 %v337_v3 }
   0xf   :  { %321 = vmatpush3.bf16.msra.mxu0 %v337_v3 }
  0x10   :  { %322 = vmatprep.subr.bf16.mxu0 %v338_v5 }
  0x13   :  { %323 = vmatpush3.bf16.msra.mxu0 %v338_v5 }
  0x14   :  { %324 = vmatprep.subr.bf16.mxu0 %v339_v6 }
  0x17   :  { %325 = vmatpush3.bf16.msra.mxu0 %v339_v6 }
  0x18   :  { %326 = vmatprep.subr.bf16.mxu0 %v340_v7 }
  0x1b   :  { %327 = vmatpush3.bf16.msra.mxu0 %v340_v7 }
  0x1c   :  { %328 = vmatprep.subr.bf16.mxu0 %v341_v8 }
  0x1f   :  { %329 = vmatpush3.bf16.msra.mxu0 %v341_v8 }
  0x22   :  { %331 = vmatmul.mubr.bf16.vlgmr.msra.gmra.mxu0 %v343_v9 }
  0xe2   :  { %v332_v14 = vpop.f32.mrf.mxu0 }
  0xe3   :  { %v154_v15 = vadd.f32 %v332_v14, %v263_v11 }
  0xe4   :  { %v145_v17 = vpop.f32.mrf.mxu0 }
  0xe5   :  { %v146_v18 = vadd.f32 %v263_v11, %v145_v17  ;;  %v170_v19 = vadd.f32 %v290_v13, %v154_v15 }
  0xe6   :  { %v333_v21 = vpop.f32.mrf.mxu0 }
  0xe7   :  { %v157_v22 = vadd.f32 %v333_v21, %v263_v11  ;;  %178 = vadd.xlane.f32.xlu1 %v170_v19  ;;  %v168_v23 = vadd.f32 %v286_v16, %v146_v18 }
  0xe8   :  { %v148_v25 = vpop.f32.mrf.mxu0 }
  0xe9   :  { %v149_v26 = vadd.f32 %v263_v11, %v148_v25  ;;  %174 = vadd.xlane.f32.xlu0 %v168_v23  ;;  %v171_v27 = vadd.f32 %v291_v20, %v157_v22 }
  0xeb   :  { %180 = vadd.xlane.f32.xlu1 %v171_v27  ;;  %v169_v28 = vadd.f32 %v287_v24, %v149_v26 }
  0xed   :  { %176 = vadd.xlane.f32.xlu0 %v169_v28 }
 0x170   :  { %v179_v29 = vpop.xlane.xlu1 %178 }
 0x171   :  { %v185_v31 = vmul.f32 0.0078125, %v179_v29 }
 0x172   :  { %v175_v30 = vpop.xlane.xlu0 %174 }
 0x173   :  { %v183_v32 = vmul.f32 0.0078125, %v175_v30  ;;  %v189_v36 = vsub.f32 %v170_v19, %v185_v31 }
 0x174   :  { %v181_v33 = vpop.xlane.xlu1 %180 }
 0x175   :  { %v187_v34 = vsub.f32 %v168_v23, %v183_v32  ;;  %v186_v37 = vmul.f32 0.0078125, %v181_v33  ;;  %v193_v42 = vmul.f32 %v189_v36, %v189_v36 }
 0x176   :  { %v177_v35 = vpop.xlane.xlu0 %176 }
 0x177   :  { %v184_v38 = vmul.f32 0.0078125, %v177_v35  ;;  %v191_v39 = vmul.f32 %v187_v34, %v187_v34  ;;  %v190_v41 = vsub.f32 %v171_v27, %v186_v37 }
 0x179   :  { %v188_v40 = vsub.f32 %v169_v28, %v184_v38  ;;  %195 = vadd.xlane.f32.xlu0 %v191_v39  ;;  %v194_v44 = vmul.f32 %v190_v41, %v190_v41 }
 0x17b   :  { %v192_v43 = vmul.f32 %v188_v40, %v188_v40 }
 0x17d   :  { %199 = vadd.xlane.f32.xlu0 %v193_v42  ;;  %197 = vadd.xlane.f32.xlu1 %v192_v43 }
 0x181   :  { %201 = vadd.xlane.f32.xlu1 %v194_v44 }
 0x202   :  { %v196_v45 = vpop.xlane.xlu0 %195 }
 0x203   :  { %v203_v46 = vmul.f32 0.0078125, %v196_v45 }
 0x205   :  { %v207_v47 = vadd.f32 1e-05, %v203_v46 }
 0x206   :  { %v198_v48 = vpop.xlane.xlu1 %197  ;;  %v200_v49 = vpop.xlane.xlu0 %199 }
 0x207   :  { %344 = vrsqrt.f32 %v207_v47  ;;  %v204_v50 = vmul.f32 0.0078125, %v198_v48  ;;  %v205_v51 = vmul.f32 0.0078125, %v200_v49 }
 0x209   :  { %v208_v52 = vadd.f32 1e-05, %v204_v50  ;;  %v209_v53 = vadd.f32 1e-05, %v205_v51 }
 0x20a   :  { %v202_v54 = vpop.xlane.xlu1 %201 }
 0x20b   :  { %346 = vrsqrt.f32 %v208_v52  ;;  %v206_v55 = vmul.f32 0.0078125, %v202_v54 }
 0x20c   :  { %348 = vrsqrt.f32 %v209_v53 }
 0x20d   :  { %v210_v56 = vadd.f32 1e-05, %v206_v55 }
 0x20f   :  { %350 = vrsqrt.f32 %v210_v56 }
 0x214   :  { %v345_v57 = vpop.eup %344 }
 0x215   :  { %v215_v58 = vmul.f32 %v345_v57, %v187_v34 }
 0x217   :  { %v225_v62 = vmul.f32 %v274_v59, %v215_v58 }
 0x218   :  { %v347_v60 = vpop.eup %346 }
 0x219   :  { %v349_v61 = vpop.eup %348  ;;  %v216_v63 = vmul.f32 %v347_v60, %v188_v40  ;;  %v235_v4 = vadd.f32 %v275_v0, %v225_v62 }
 0x21a   :  { %v217_v1 = vmul.f32 %v349_v61, %v189_v36 }
 0x21b   :  { %v226_v2 = vmul.f32 %v274_v59, %v216_v63 }
 0x21c   :  { %v351_v3 = vpop.eup %350  ;;  %v227_v6 = vmul.f32 %v274_v59, %v217_v1 }
 0x21d   :  { %v236_v5 = vadd.f32 %v275_v0, %v226_v2  ;;  %v218_v7 = vmul.f32 %v351_v3, %v190_v41 }
 0x21e   :  { %v237_v10 = vadd.f32 %v275_v0, %v227_v6 }
 0x21f   :  { %v295_v8 = vpack.c.bf16 %v236_v5, %v235_v4  ;;  %v228_v9 = vmul.f32 %v274_v59, %v218_v7 }
 0x221   :  { %296 = vst [vmem:[%s444_s6] sm:$0xff] %v295_v8   ;;  %v238_v11 = vadd.f32 %v275_v0, %v228_v9 }
 0x223   :  { %v300_v12 = vpack.c.bf16 %v238_v11, %v237_v10 }
 0x225   :  { %303 = vst [vmem:[%s444_s6 + $0x8] sm:$0xff] %v300_v12  }

// kernel: transformer_model_forward.26
= control target key start
LH: loop header
LB: loop body
LE: loop exit
PB: predicated region body
PF: predicated region fallthrough
CT: control target
= control target key end

     0   :  { %s816_s12 = smov 0   ;;  %s818_s13 = smov 0   ;;  %s921_s0 = inlined_call_operand.vmem [shape: bf16[32,128], index: 0, kind: input, shape index: {}]   ;;  %s922_s1 = inlined_call_operand.vmem [shape: bf16[128,384], index: 1, kind: input, shape index: {}]   ;;  %s923_s2 = inlined_call_operand.vmem [shape: f32[1,384], index: 2, kind: input, shape index: {}]   ;;  %s924_s3 = inlined_call_operand.vmem [shape: bf16[32,384], index: 3, kind: output, shape index: {}]  }
   0x1   :  { %s820_s14 = smov 0   ;;  %s822_s15 = smov 0  }
   0x2   :  { %s824_s16 = smov 0  }
   0x3 LB: > { %s22_s17 = sadd.s32 1, %s790_s15  ;;  %s632_s18 = sadd.s32 4294967295, %s794_s16   ;;  %s794_s16 = sphi %s824_s16, %s13_s16   ;;  %s790_s15 = sphi %s822_s15, %s929_s15   ;;  %s786_s14 = sphi %s820_s14, %s928_s14   ;;  %s782_s13 = sphi %s818_s13, %s927_s13   ;;  %s778_s12 = sphi %s816_s12, %s926_s12  }
   0x4   : > { %p23_p0 = scmp.ge.s32.totalorder %s22_s17, 3  ;;  %p65_p1 = scmp.ne.s32.totalorder %s782_s13, %s778_s12 }
   0x5   : > { %p66_p2 = scmp.eq.s32.totalorder %s794_s16, 0  ;;  %p123_p4 = scmp.eq.s32.totalorder %s632_s18, 2 }
   0x6   : > { %s931_s17 = smov (%p23_p0, %s22_s17), 0  ;;  %s58_s20 = sadd.s32 1, %s782_s13 }
   0x7   : > { %p67_p3 = por %p66_p2, %p65_p1  ;;  %s55_s19 = ssub.s32 %s790_s15, %s931_s17 }
   0x8   : > { %p56_p5 = scmp.eq.s32.totalorder %s55_s19, 0  ;;  %p851_p6 = por %p123_p4, %p65_p1 }
   0x9   : > { %p636_p7 = scmp.ge.s32.totalorder %s794_s16, 3 }
   0xa   : > { %s856_s22 = scalar_select %p56_p5, %s782_s13, %s58_s20  }
   0xb   : > { %154 = sbr.rel (%p636_p7) target bundleno = 30 (0x1e), region = 20 }
  0x10   : > { %157 = sbr.rel (!%p67_p3) target bundleno = 30 (0x1e), region = 24  ;;  %s159_s23 = sand.u32 (%p67_p3), 1, %s782_s13  }
  0x11   : > { %s638_s24 = sshll.u32 (%p67_p3), %s790_s15, 2  ;;  %s637_s25 = sshll.u32 (%p67_p3), %s159_s23, 6 }
  0x12   : > { %s864_s28 = scalar_lea.vmem (%p67_p3), %s922_s1, %s638_s24  ;;  %s161_s29 = scalar_lea.vmem (%p67_p3), [#allocation2], %s637_s25 }
  0x13   : > { %v180_v0 = vld [vmem:[%s864_s28] sm:$0xf] (%p67_p3)  ;;  %v182_v1 = vld [vmem:[%s864_s28 + $0xc] sm:$0xf] (%p67_p3)  ;;  %v184_v2 = vld [vmem:[%s864_s28 + $0x18] sm:$0xf] (%p67_p3) }
  0x14   : > { %181 = vst [vmem:[%s161_s29] sm:$0xf] (%p67_p3), %v180_v0  ;;  %183 = vst [vmem:[%s161_s29 + $0x4] sm:$0xf] (%p67_p3), %v182_v1  ;;  %v186_v3 = vld [vmem:[%s864_s28 + $0x24] sm:$0xf] (%p67_p3) }
  0x15   : > { %v188_v4 = vld [vmem:[%s864_s28 + $0x30] sm:$0xf]  ;;  %185 = vst [vmem:[%s161_s29 + $0x8] sm:$0xf] %v184_v2  ;;  %187 = vst [vmem:[%s161_s29 + $0xc] sm:$0xf] %v186_v3 }
  0x16   : > { %189 = vst [vmem:[%s161_s29 + $0x10] sm:$0xf] %v188_v4  ;;  %v190_v5 = vld [vmem:[%s864_s28 + $0x3c] sm:$0xf]  ;;  %v192_v6 = vld [vmem:[%s864_s28 + $0x48] sm:$0xf] }
  0x17   : > { %v194_v7 = vld [vmem:[%s864_s28 + $0x54] sm:$0xf]  ;;  %191 = vst [vmem:[%s161_s29 + $0x14] sm:$0xf] %v190_v5  ;;  %193 = vst [vmem:[%s161_s29 + $0x18] sm:$0xf] %v192_v6 }
  0x18   : > { %195 = vst [vmem:[%s161_s29 + $0x1c] sm:$0xf] %v194_v7  ;;  %v196_v8 = vld [vmem:[%s864_s28 + $0x60] sm:$0xf]  ;;  %v198_v9 = vld [vmem:[%s864_s28 + $0x6c] sm:$0xf] }
  0x19   : > { %v200_v10 = vld [vmem:[%s864_s28 + $0x78] sm:$0xf]  ;;  %197 = vst [vmem:[%s161_s29 + $0x20] sm:$0xf] %v196_v8  ;;  %199 = vst [vmem:[%s161_s29 + $0x24] sm:$0xf] %v198_v9 }
  0x1a   : > { %201 = vst [vmem:[%s161_s29 + $0x28] sm:$0xf] %v200_v10  ;;  %v202_v11 = vld [vmem:[%s864_s28 + $0x84] sm:$0xf]  ;;  %v204_v12 = vld [vmem:[%s864_s28 + $0x90] sm:$0xf] }
  0x1b   : > { %v206_v13 = vld [vmem:[%s864_s28 + $0x9c] sm:$0xf]  ;;  %203 = vst [vmem:[%s161_s29 + $0x2c] sm:$0xf] %v202_v11  ;;  %205 = vst [vmem:[%s161_s29 + $0x30] sm:$0xf] %v204_v12 }
  0x1c   : > { %207 = vst [vmem:[%s161_s29 + $0x34] sm:$0xf] %v206_v13  ;;  %v208_v14 = vld [vmem:[%s864_s28 + $0xa8] sm:$0xf]  ;;  %v210_v15 = vld [vmem:[%s864_s28 + $0xb4] sm:$0xf] }
  0x1d   : > { %209 = vst [vmem:[%s161_s29 + $0x38] sm:$0xf] %v208_v14  ;;  %211 = vst [vmem:[%s161_s29 + $0x3c] sm:$0xf] %v210_v15 }
  0x1e PF: > { %p639_p8 = scmp.ge.s32.totalorder %s794_s16, 1  ;;  %p272_p9 = scmp.lt.s32.totalorder %s794_s16, 4 }
  0x20   : > { %p273_p10 = pnand %p639_p8, %p272_p9 }
  0x21   : > { %s279_s30 = sand.u32 (!%p273_p10), 1, %s778_s12   ;;  %p315_p11 = scmp.lt.s32.totalorder (!%p273_p10), %s786_s14, 2 }
  0x22   : > { %276 = sbr.rel (%p273_p10) target bundleno = 284 (0x11c), region = 69  ;;  %s640_s6 = sshll.u32 (!%p273_p10), %s279_s30, 6 }
  0x23   : > { %s281_s7 = scalar_lea.vmem (!%p273_p10), [#allocation2], %s640_s6  ;;  %s641_s20 = sshll.u32 (!%p273_p10), %s279_s30, 4 }
  0x24   : > { %s308_s23 = scalar_lea.vmem (!%p273_p10), [#allocation3], %s641_s20 }
  0x27   : > { %v754_v16 = vld [vmem:[%s921_s0] sm:$0xff]   ;;  %v746_v17 = vld [vmem:[%s281_s7 + $0x38] sm:$0xff]   ;;  %v747_v18 = vld [vmem:[%s281_s7 + $0x30] sm:$0xff]   ;;  %s316_s10 = scalar_select %p315_p11, %s786_s14, 2 }
  0x28   : > { %702 = vmatprep.mubr.bf16.mxu0 %v754_v16  ;;  %686 = vmatprep.subr.bf16.mxu0 %v746_v17  ;;  %v748_v19 = vld [vmem:[%s281_s7 + $0x28] sm:$0xff]   ;;  %v749_v20 = vld [vmem:[%s281_s7 + $0x20] sm:$0xff]   ;;  %v750_v21 = vld [vmem:[%s281_s7 + $0x18] sm:$0xff]   ;;  %s658_s24 = sshll.u32 (%p851_p6), %s786_s14, 2 }
  0x29   : > { %687 = vmatpush3.bf16.msra.mxu0 %v746_v17  ;;  %v751_v22 = vld [vmem:[%s281_s7 + $0x10] sm:$0xff]   ;;  %v752_v23 = vld [vmem:[%s281_s7 + $0x8] sm:$0xff]   ;;  %v753_v24 = vld [vmem:[%s281_s7] sm:$0xff]   ;;  %s317_s19 = scalar_lea.vmem %s923_s2, %s316_s10  ;;  %s487_s26 = scalar_lea.vmem (%p851_p6), %s924_s3, %s658_s24 }
  0x2a   : > { %688 = vmatprep.subr.bf16.mxu0 %v747_v18  ;;  %v755_v25 = vld [vmem:[%s921_s0 + $0x8] sm:$0xff]   ;;  %v642_v27 = vld [vmem:[%s317_s19] ss:$0 sm:$0xff] }
  0x2d   : > { %689 = vmatpush3.bf16.msra.mxu0 %v747_v18 }
  0x2e   : > { %690 = vmatprep.subr.bf16.mxu0 %v748_v19 }
  0x31   : > { %691 = vmatpush3.bf16.msra.mxu0 %v748_v19 }
  0x32   : > { %692 = vmatprep.subr.bf16.mxu0 %v749_v20 }
  0x35   : > { %693 = vmatpush3.bf16.msra.mxu0 %v749_v20 }
  0x36   : > { %694 = vmatprep.subr.bf16.mxu0 %v750_v21 }
  0x39   : > { %695 = vmatpush3.bf16.msra.mxu0 %v750_v21 }
  0x3a   : > { %696 = vmatprep.subr.bf16.mxu0 %v751_v22 }
  0x3d   : > { %697 = vmatpush3.bf16.msra.mxu0 %v751_v22 }
  0x3e   : > { %698 = vmatprep.subr.bf16.mxu0 %v752_v23 }
  0x41   : > { %699 = vmatpush3.bf16.msra.mxu0 %v752_v23 }
  0x42   : > { %700 = vmatprep.subr.bf16.mxu0 %v753_v24 }
  0x45   : > { %701 = vmatpush3.bf16.msra.mxu0 %v753_v24 }
  0x48   : > { %703 = vmatmul.mubr.bf16.vlgmr.msra.gmra.mxu0 %v755_v25 }
 0x108   : > { %v704_v26 = vpop.f32.mrf.mxu0 }
 0x109   : > { %v450_v30 = vadd.f32 %v704_v26, %v642_v27 }
 0x10a   : > { %v441_v28 = vpop.f32.mrf.mxu0 }
 0x10b   : > { %v442_v33 = vadd.f32 %v642_v27, %v441_v28 }
 0x10c   : > { %v705_v29 = vpop.f32.mrf.mxu0 }
 0x10d   : > { %v453_v31 = vadd.f32 %v705_v29, %v642_v27 }
 0x10e   : > { %v444_v32 = vpop.f32.mrf.mxu0 }
 0x10f   : > { %v673_v34 = vpack.c.bf16 %v453_v31, %v450_v30  ;;  %v445_v35 = vadd.f32 %v642_v27, %v444_v32  ;;  %482 = sbr.rel (!%p851_p6) target bundleno = 284 (0x11c), region = 77 }
 0x111   : > { %675 = vst [vmem:[%s308_s23 + $0x8] sm:$0xff] %v673_v34   ;;  %v668_v36 = vpack.c.bf16 %v445_v35, %v442_v33 }
 0x113   : > { %669 = vst [vmem:[%s308_s23] sm:$0xff] %v668_v36  }
 0x118   : > { %v508_v39 = vld [vmem:[%s308_s23 + $0x8] sm:$0xf]  ;;  %v510_v40 = vld [vmem:[%s308_s23 + $0xc] sm:$0xf] }
 0x119   : > { %509 = vst [vmem:[%s487_s26 + $0x18] sm:$0xf] %v508_v39  ;;  %511 = vst [vmem:[%s487_s26 + $0x24] sm:$0xf] %v510_v40 }
 0x11a   : > { %v504_v37 = vld [vmem:[%s308_s23] sm:$0xf]  ;;  %v506_v38 = vld [vmem:[%s308_s23 + $0x4] sm:$0xf] }
 0x11b   : > { %505 = vst [vmem:[%s487_s26] sm:$0xf] %v504_v37  ;;  %507 = vst [vmem:[%s487_s26 + $0xc] sm:$0xf] %v506_v38 }
 0x11c PF: > { %s13_s16 = sadd.s32 1, %s794_s16   ;;  %s926_s12 = smov %s782_s13 }
 0x11d   : > { %p10_p12 = scmp.ge.s32.totalorder %s13_s16, 5   ;;  %s927_s13 = smov %s856_s22 }
 0x11e   : > { %s928_s14 = smov %s790_s15  ;;  %s929_s15 = smov %s931_s17 }
 0x11f   :  { %12 = sbr.rel (!%p10_p12) target bundleno = 3 (0x3), region = 155 }

// kernel: transformer_model_forward.27
= control target key start
LH: loop header
LB: loop body
LE: loop exit
PB: predicated region body
PF: predicated region fallthrough
CT: control target
= control target key end

     0   :  { %s1328_s12 = smov 0   ;;  %s1330_s13 = smov 0   ;;  %s1497_s0 = inlined_call_operand.vmem [shape: bf16[2,16,384], index: 0, kind: input, shape index: {}, may-alias: {0,1,2}]   ;;  %s1498_s1 = inlined_call_operand.vmem [shape: bf16[2,16,384], index: 1, kind: input, shape index: {}, may-alias: {0,1,2}]   ;;  %s1499_s2 = inlined_call_operand.vmem [shape: bf16[2,16,384], index: 2, kind: input, shape index: {}, may-alias: {0,1,2}]   ;;  %s1500_s3 = inlined_call_operand.vmem [shape: bf16[2,16,128], index: 3, kind: output, shape index: {}]  }
   0x1   :  { %s1332_s14 = smov 0   ;;  %s1334_s15 = smov 0  }
   0x2   :  { %s1336_s16 = smov 0  }
   0x3 LB: > { %s25_s17 = sadd.s32 1, %s1297_s15  ;;  %p41_p1 = scmp.ne.s32.totalorder %s1289_s13, %s1285_s12  ;;  %s1301_s16 = sphi %s1336_s16, %s13_s16   ;;  %s1297_s15 = sphi %s1334_s15, %s1505_s15   ;;  %s1293_s14 = sphi %s1332_s14, %s1504_s14   ;;  %s1289_s13 = sphi %s1330_s13, %s1503_s13   ;;  %s1285_s12 = sphi %s1328_s12, %s1502_s12  }
   0x4   : > { %p27_p0 = scmp.ge.s32.totalorder %s25_s17, 2  ;;  %p42_p2 = scmp.eq.s32.totalorder %s1301_s16, 0 }
   0x5   : > { %s34_s20 = sadd.s32 1, %s1289_s13  ;;  %p1063_p5 = scmp.ge.s32.totalorder %s1301_s16, 2 }
   0x6   : > { %s1507_s17 = smov (%p27_p0, %s25_s17), 0  ;;  %p1359_p3 = por %p42_p2, %p41_p1 }
   0x7   : > { %s29_s19 = ssub.s32 %s1297_s15, %s1507_s17  ;;  %147 = sbr.rel (%p1063_p5) target bundleno = 30 (0x1e), region = 16 }
   0x8   : > { %p32_p4 = scmp.eq.s32.totalorder %s29_s19, 0 }
   0xa   : > { %s1367_s21 = scalar_select %p32_p4, %s1289_s13, %s34_s20  }
   0xc   : > { %150 = sbr.rel (!%p1359_p3) target bundleno = 18 (0x12), region = 20  ;;  %s152_s22 = sand.u32 (%p1359_p3), 1, %s1289_s13  }
   0xd   : > { %s1167_s23 = smul.u32 (%p1359_p3), 24, %s1297_s15  ;;  %s1064_s24 = sshll.u32 (%p1359_p3), %s152_s22, 3 }
   0xe   : > { %s154_s28 = scalar_lea.vmem (%p1359_p3), [#allocation2], %s1064_s24 }
   0xf   : > { %s160_s27 = scalar_lea.vmem (%p1359_p3), %s1497_s0, %s1167_s23 }
  0x10   : > { %v177_v0 = vld [vmem:[%s160_s27] sm:$0xf] (%p1359_p3)  ;;  %v179_v1 = vld [vmem:[%s160_s27 + $0xc] sm:$0xf] (%p1359_p3) }
  0x11   : > { %178 = vst [vmem:[%s154_s28] sm:$0xf] %v177_v0  ;;  %180 = vst [vmem:[%s154_s28 + $0x4] sm:$0xf] %v179_v1 }
  0x12 PF: > { %208 = sbr.rel (!%p1359_p3) target bundleno = 24 (0x18), region = 61  ;;  %s210_s29 = sand.u32 (%p1359_p3), 1, %s1289_s13  }
  0x13   : > { %s1067_s30 = smul.u32 (%p1359_p3), 24, %s1297_s15  ;;  %s1066_s4 = sshll.u32 (%p1359_p3), %s210_s29, 3 }
  0x14   : > { %s212_s8 = scalar_lea.vmem (%p1359_p3), [#allocation3], %s1066_s4 }
  0x15   : > { %s971_s7 = scalar_lea.vmem (%p1359_p3), %s1498_s1, %s1067_s30 }
  0x16   : > { %v1068_v2 = vld [vmem:[%s971_s7 + $0x4] sm:$0xf] (%p1359_p3)  ;;  %v1069_v3 = vld [vmem:[%s971_s7 + $0x10] sm:$0xf] (%p1359_p3) }
  0x17   : > { %234 = vst [vmem:[%s212_s8] sm:$0xf] %v1068_v2  ;;  %236 = vst [vmem:[%s212_s8 + $0x4] sm:$0xf] %v1069_v3 }
  0x18 PF: > { %264 = sbr.rel (!%p1359_p3) target bundleno = 30 (0x1e), region = 102  ;;  %s266_s9 = sand.u32 (%p1359_p3), 1, %s1289_s13  }
  0x19   : > { %s1071_s10 = smul.u32 (%p1359_p3), 24, %s1297_s15  ;;  %s1070_s11 = sshll.u32 (%p1359_p3), %s266_s9, 3 }
  0x1a   : > { %s268_s23 = scalar_lea.vmem (%p1359_p3), [#allocation4], %s1070_s11 }
  0x1b   : > { %s977_s22 = scalar_lea.vmem (%p1359_p3), %s1499_s2, %s1071_s10 }
  0x1c   : > { %v1072_v4 = vld [vmem:[%s977_s22 + $0x8] sm:$0xf] (%p1359_p3)  ;;  %v1073_v5 = vld [vmem:[%s977_s22 + $0x14] sm:$0xf] (%p1359_p3) }
  0x1d   : > { %290 = vst [vmem:[%s268_s23] sm:$0xf] %v1072_v4  ;;  %292 = vst [vmem:[%s268_s23 + $0x4] sm:$0xf] %v1073_v5 }
  0x1e PF: > { %p1074_p6 = scmp.ge.s32.totalorder %s1301_s16, 1  ;;  %p319_p7 = scmp.lt.s32.totalorder %s1301_s16, 3 }
  0x20   : > { %p320_p8 = pnand %p1074_p6, %p319_p7 }
  0x21   : > { %s326_s18 = sand.u32 (!%p320_p8), 1, %s1285_s12   ;;  %s1305_s26 = smov (!%p320_p8), 96  }
  0x22   : > { %323 = sbr.rel (%p320_p8) target bundleno = 1460 (0x5b4), region = 143  ;;  %s1395_s24 = sshll.u32 (!%p320_p8), %s326_s18, 3 }
  0x23   : > { %s335_s25 = scalar_lea.vmem (!%p320_p8), [#allocation3], %s1395_s24  ;;  %s328_s12 = scalar_lea.vmem (!%p320_p8), [#allocation2], %s1395_s24 }
  0x24   : > { %s1306_s27 = smov (!%p320_p8), 32   ;;  %s342_s28 = scalar_lea.vmem (!%p320_p8), [#allocation4], %s1395_s24 }
  0x25   : > { %s1307_s29 = smov (!%p320_p8), 64   ;;  %p377_p9 = scmp.lt.s32.totalorder (!%p320_p8), %s1293_s14, 1 }
  0x27   : > { %v1303_v6 = vmov 0.0   ;;  %vm1304_vm0 = vmmov 0   ;;  %vm403_vm1 = vcmask 261120   ;;  %v1228_v7 = vld [vmem:[%s335_s25] sm:$0xff]   ;;  %v1229_v9 = vld [vmem:[%s328_s12] sm:$0xff]   ;;  %vm451_vm2 = vcmask 130048  }
  0x28   : > { %1119 = vmatprep.subr.bf16.mxu0 %v1303_v6  ;;  %1121 = vmatprep.mubr.msk.bf16.mxu0 %vm1304_vm0, %v1303_v6  ;;  %v408_v8 = vsel %vm403_vm1, %v1228_v7, 0  ;;  %v1416_v26 = vld [vmem:[%s342_s28] sm:$0xff]   ;;  %s1509_s14 = smov (!%p377_p9, %s1293_s14), 1  ;;  %vm914_vm3 = vcmask 523264   ;;  %vm917_vm4 = vcmask 785408  }
  0x29   : > { %1125 = vmatprep.subr.bf16.mxu1 %v1303_v6  ;;  %1127 = vmatprep.mubr.msk.bf16.mxu1 %vm1304_vm0, %v1303_v6  ;;  %s1095_s30 = sshll.u32 %s1509_s14, 3 }
  0x2a   : > { %1120 = vmatpush3.bf16.xpose.msra.mxu0 %v408_v8  ;;  %1126 = vmatpush3.bf16.msra.mxu1 %v1416_v26  ;;  %s384_s6 = scalar_lea.vmem %s1500_s3, %s1095_s30 }
  0x2b   : > { %1137 = vmatprep.subr.bf16.mxu0 %v1303_v6  ;;  %1131 = vmatprep.subr.bf16.mxu1 %v1303_v6 }
  0x31   : > { %1122 = vmatmul.mubr.msk.bf16.vlgmr.msra.gmra.mxu0 %vm403_vm1, %v1229_v9 }
  0x32   : > { %1139 = vmatprep.mubr.msk.bf16.mxu0 %vm1304_vm0, %v1303_v6 }
  0xf1   : > { %v444_v10 = vpop.f32.mrf.mxu0 }
  0xf2   : > { %v452_v11 = vsel %vm451_vm2, %v444_v10, -inf }
  0xf3   : > { %453 = vmax.xlane.f32.xlu0 %v452_v11  ;;  %v1123_v12 = vpop.f32.mrf.mxu0 }
  0xf5   : > { %v447_v13 = vpop.f32.mrf.mxu0 }
  0xf6   : > { %v455_v14 = vsel %vm451_vm2, %v447_v13, -inf }
  0xf7   : > { %456 = vmax.xlane.f32.xlu0 %v455_v14  ;;  %v1124_v15 = vpop.f32.mrf.mxu0 }
 0x10d   : > { %527 = vrot.lane.b32.xlu0 %v1228_v7, %s1305_s26 }
 0x111   : > { %769 = vrot.lane.b32.xlu0 %v1228_v7, %s1306_s27 }
 0x17c   : > { %v454_v16 = vpop.xlane.xlu0 %453 }
 0x17d   : > { %v458_v17 = vsub.f32 %v444_v10, %v454_v16 }
 0x17f   : > { %v460_v18 = vmul.f32 1.442695, %v458_v17 }
 0x180   : > { %v457_v19 = vpop.xlane.xlu0 %456 }
 0x181   : > { %1231 = vpow2.f32 %v460_v18  ;;  %v459_v20 = vsub.f32 %v447_v13, %v457_v19 }
 0x183   : > { %v462_v21 = vmul.f32 1.442695, %v459_v20 }
 0x184   : > { %v528_v31 = vpop.permute.xlu0 %527 }
 0x185   : > { %1233 = vpow2.f32 %v462_v21  ;;  %v533_v35 = vsel %vm403_vm1, %v528_v31, 0 }
 0x188   : > { %v770_v39 = vpop.permute.xlu0 %769 }
 0x189   : > { %v775_v41 = vsel %vm403_vm1, %v770_v39, 0 }
 0x18e   : > { %v1232_v22 = vpop.eup %1231 }
 0x18f   : > { %v464_v23 = vsel %vm451_vm2, %v1232_v22, 0.0 }
 0x190   : > { %465 = vadd.xlane.f32.xlu1 %v464_v23 }
 0x192   : > { %v1234_v24 = vpop.eup %1233 }
 0x193   : > { %v467_v25 = vsel %vm451_vm2, %v1234_v24, 0.0 }
 0x194   : > { %468 = vadd.xlane.f32.xlu1 %v467_v25 }
 0x1a5   : > { %525 = vrot.lane.b32.xlu1 %v1229_v9, %s1305_s26 }
 0x1a9   : > { %648 = vrot.lane.b32.xlu1 %v1228_v7, %s1307_s29 }
 0x1ad   : > { %646 = vrot.lane.b32.xlu1 %v1229_v9, %s1307_s29 }
 0x1b1   : > { %767 = vrot.lane.b32.xlu1 %v1229_v9, %s1306_s27 }
 0x219   : > { %v466_v27 = vpop.xlane.xlu1 %465 }
 0x21a   : > { %1235 = vrcp.f32 %v466_v27 }
 0x21d   : > { %v469_v28 = vpop.xlane.xlu1 %468 }
 0x21e   : > { %1237 = vrcp.f32 %v469_v28 }
 0x221   : > { %v526_v34 = vpop.permute.xlu1 %525 }
 0x225   : > { %v649_v37 = vpop.permute.xlu1 %648 }
 0x226   : > { %v654_v38 = vsel %vm403_vm1, %v649_v37, 0 }
 0x227   : > { %v1236_v29 = vpop.eup %1235 }
 0x228   : > { %v472_v32 = vmul.f32 %v1236_v29, %v1232_v22 }
 0x229   : > { %v647_v40 = vpop.permute.xlu1 %646 }
 0x22b   : > { %v1238_v30 = vpop.eup %1237 }
 0x22c   : > { %v473_v33 = vmul.f32 %v1238_v30, %v1234_v24 }
 0x22d   : > { %v768_v42 = vpop.permute.xlu1 %767 }
 0x22e   : > { %v474_v36 = vpack.c.bf16 %v473_v33, %v472_v32 }
 0x230   : > { %1128 = vmatmul.mubr.msk.bf16.vlgmr.msra.gmra.mxu1 %vm451_vm2, %v474_v36 }
 0x231   : > { %1132 = vmatpush3.bf16.xpose.msra.mxu1 %v533_v35  ;;  %1133 = vmatprep.mubr.msk.bf16.mxu1 %vm1304_vm0, %v1303_v6 }
 0x232   : > { %1143 = vmatprep.subr.bf16.mxu1 %v1303_v6 }
 0x238   : > { %1134 = vmatmul.mubr.msk.bf16.vlgmr.msra.gmra.mxu1 %vm403_vm1, %v526_v34 }
 0x239   : > { %1144 = vmatpush3.bf16.xpose.msra.mxu1 %v654_v38  ;;  %1145 = vmatprep.mubr.msk.bf16.mxu1 %vm1304_vm0, %v1303_v6 }
 0x23a   : > { %1155 = vmatprep.subr.bf16.mxu1 %v1303_v6 }
 0x240   : > { %1146 = vmatmul.mubr.msk.bf16.vlgmr.msra.gmra.mxu1 %vm403_vm1, %v647_v40 }
 0x241   : > { %1156 = vmatpush3.bf16.xpose.msra.mxu1 %v775_v41  ;;  %1157 = vmatprep.mubr.msk.bf16.mxu1 %vm1304_vm0, %v1303_v6 }
 0x248   : > { %1158 = vmatmul.mubr.msk.bf16.vlgmr.msra.gmra.mxu1 %vm403_vm1, %v768_v42 }
 0x2f0   : > { %v1439_v43 = vpop.f32.mrf.mxu1 }
 0x2f2   : > { %v1129_v44 = vpop.f32.mrf.mxu1 }
 0x2f4   : > { %v1441_v45 = vpop.f32.mrf.mxu1 }
 0x2f6   : > { %v1130_v46 = vpop.f32.mrf.mxu1 }
 0x2f8   : > { %v569_v47 = vpop.f32.mrf.mxu1 }
 0x2f9   : > { %v576_v48 = vsel %vm451_vm2, %v569_v47, -inf }
 0x2fa   : > { %577 = vmax.xlane.f32.xlu0 %v576_v48  ;;  %v1135_v49 = vpop.f32.mrf.mxu1 }
 0x2fc   : > { %v572_v50 = vpop.f32.mrf.mxu1 }
 0x2fd   : > { %v579_v51 = vsel %vm451_vm2, %v572_v50, -inf }
 0x2fe   : > { %580 = vmax.xlane.f32.xlu1 %v579_v51  ;;  %v1136_v52 = vpop.f32.mrf.mxu1 }
 0x300   : > { %v690_v53 = vpop.f32.mrf.mxu1 }
 0x301   : > { %v697_v54 = vsel %vm451_vm2, %v690_v53, -inf }
 0x302   : > { %698 = vmax.xlane.f32.xlu0 %v697_v54  ;;  %v1147_v55 = vpop.f32.mrf.mxu1 }
 0x304   : > { %v693_v56 = vpop.f32.mrf.mxu1 }
 0x305   : > { %v700_v57 = vsel %vm451_vm2, %v693_v56, -inf }
 0x306   : > { %701 = vmax.xlane.f32.xlu0 %v700_v57  ;;  %v1148_v58 = vpop.f32.mrf.mxu1 }
 0x308   : > { %v811_v59 = vpop.f32.mrf.mxu1 }
 0x309   : > { %v818_v60 = vsel %vm451_vm2, %v811_v59, -inf }
 0x30a   : > { %819 = vmax.xlane.f32.xlu0 %v818_v60  ;;  %v1159_v61 = vpop.f32.mrf.mxu1 }
 0x30c   : > { %v814_v62 = vpop.f32.mrf.mxu1 }
 0x30d   : > { %v821_v63 = vsel %vm451_vm2, %v814_v62, -inf }
 0x30e   : > { %822 = vmax.xlane.f32.xlu1 %v821_v63  ;;  %v1160_v0 = vpop.f32.mrf.mxu1 }
 0x383   : > { %v578_v1 = vpop.xlane.xlu0 %577 }
 0x384   : > { %v582_v2 = vsub.f32 %v569_v47, %v578_v1 }
 0x386   : > { %v584_v3 = vmul.f32 1.442695, %v582_v2 }
 0x387   : > { %v581_v4 = vpop.xlane.xlu1 %580 }
 0x388   : > { %1239 = vpow2.f32 %v584_v3  ;;  %v583_v5 = vsub.f32 %v572_v50, %v581_v4 }
 0x38a   : > { %v586_v7 = vmul.f32 1.442695, %v583_v5 }
 0x38b   : > { %v699_v8 = vpop.xlane.xlu0 %698 }
 0x38c   : > { %1241 = vpow2.f32 %v586_v7  ;;  %v703_v9 = vsub.f32 %v690_v53, %v699_v8 }
 0x38e   : > { %v705_v10 = vmul.f32 1.442695, %v703_v9 }
 0x38f   : > { %v702_v11 = vpop.xlane.xlu0 %701 }
 0x390   : > { %1243 = vpow2.f32 %v705_v10  ;;  %v704_v12 = vsub.f32 %v693_v56, %v702_v11 }
 0x392   : > { %v707_v13 = vmul.f32 1.442695, %v704_v12 }
 0x393   : > { %v820_v14 = vpop.xlane.xlu0 %819 }
 0x394   : > { %1245 = vpow2.f32 %v707_v13  ;;  %v824_v15 = vsub.f32 %v811_v59, %v820_v14 }
 0x395   : > { %v1240_v16 = vpop.eup %1239 }
 0x396   : > { %v826_v17 = vmul.f32 1.442695, %v824_v15  ;;  %v588_v18 = vsel %vm451_vm2, %v1240_v16, 0.0 }
 0x397   : > { %589 = vadd.xlane.f32.xlu0 %v588_v18  ;;  %v823_v28 = vpop.xlane.xlu1 %822 }
 0x398   : > { %1247 = vpow2.f32 %v826_v17  ;;  %v825_v29 = vsub.f32 %v814_v62, %v823_v28 }
 0x399   : > { %v1242_v19 = vpop.eup %1241 }
 0x39a   : > { %v591_v20 = vsel %vm451_vm2, %v1242_v19, 0.0  ;;  %v828_v30 = vmul.f32 1.442695, %v825_v29 }
 0x39b   : > { %592 = vadd.xlane.f32.xlu1 %v591_v20 }
 0x39c   : > { %1249 = vpow2.f32 %v828_v30 }
 0x39d   : > { %v1244_v21 = vpop.eup %1243 }
 0x39e   : > { %v709_v22 = vsel %vm451_vm2, %v1244_v21, 0.0 }
 0x39f   : > { %710 = vadd.xlane.f32.xlu0 %v709_v22 }
 0x3a1   : > { %v1246_v23 = vpop.eup %1245 }
 0x3a2   : > { %v712_v24 = vsel %vm451_vm2, %v1246_v23, 0.0 }
 0x3a3   : > { %713 = vadd.xlane.f32.xlu1 %v712_v24 }
 0x3a5   : > { %v1248_v25 = vpop.eup %1247 }
 0x3a6   : > { %v830_v27 = vsel %vm451_vm2, %v1248_v25, 0.0 }
 0x3a7   : > { %831 = vadd.xlane.f32.xlu0 %v830_v27 }
 0x3a9   : > { %v1250_v31 = vpop.eup %1249 }
 0x3aa   : > { %v833_v32 = vsel %vm451_vm2, %v1250_v31, 0.0 }
 0x3b4   : > { %720 = vrot.lane.b32.xlu1 %v1416_v26, %s1307_s29 }
 0x3bd   : > { %599 = vrot.lane.b32.xlu0 %v1416_v26, %s1305_s26 }
 0x3d8   : > { %834 = vadd.xlane.f32.xlu1 %v833_v32 }
 0x3e9   : > { %841 = vrot.lane.b32.xlu1 %v1416_v26, %s1306_s27 }
 0x420   : > { %v590_v33 = vpop.xlane.xlu0 %589 }
 0x421   : > { %1251 = vrcp.f32 %v590_v33 }
 0x424   : > { %v593_v34 = vpop.xlane.xlu1 %592 }
 0x425   : > { %1253 = vrcp.f32 %v593_v34 }
 0x428   : > { %v711_v35 = vpop.xlane.xlu0 %710 }
 0x429   : > { %1255 = vrcp.f32 %v711_v35 }
 0x42c   : > { %v714_v36 = vpop.xlane.xlu1 %713 }
 0x42d   : > { %1257 = vrcp.f32 %v714_v36 }
 0x42e   : > { %v1252_v37 = vpop.eup %1251 }
 0x42f   : > { %v596_v40 = vmul.f32 %v1252_v37, %v1240_v16 }
 0x430   : > { %v832_v38 = vpop.xlane.xlu0 %831  ;;  %v721_v26 = vpop.permute.xlu1 %720 }
 0x431   : > { %1259 = vrcp.f32 %v832_v38 }
 0x432   : > { %v1254_v39 = vpop.eup %1253 }
 0x433   : > { %v597_v41 = vmul.f32 %v1254_v39, %v1242_v19 }
 0x434   : > { %v600_v42 = vpop.permute.xlu0 %599 }
 0x435   : > { %1138 = vmatpush3.bf16.msra.mxu0 %v600_v42  ;;  %v598_v44 = vpack.c.bf16 %v597_v41, %v596_v40 }
 0x436   : > { %1149 = vmatprep.subr.bf16.mxu0 %v1303_v6  ;;  %v1256_v46 = vpop.eup %1255 }
 0x437   : > { %v717_v48 = vmul.f32 %v1256_v46, %v1244_v21 }
 0x438   : > { %1140 = vmatmul.mubr.msk.bf16.vlgmr.msra.gmra.mxu0 %vm451_vm2, %v598_v44 }
 0x439   : > { %1150 = vmatpush3.bf16.msra.mxu0 %v721_v26  ;;  %1151 = vmatprep.mubr.msk.bf16.mxu0 %vm1304_vm0, %v1303_v6 }
 0x43a   : > { %v1258_v47 = vpop.eup %1257  ;;  %1161 = vmatprep.subr.bf16.mxu0 %v1303_v6 }
 0x43b   : > { %v718_v49 = vmul.f32 %v1258_v47, %v1246_v23 }
 0x43d   : > { %v719_v50 = vpack.c.bf16 %v718_v49, %v717_v48 }
 0x43e   : > { %v1260_v53 = vpop.eup %1259 }
 0x43f   : > { %v838_v55 = vmul.f32 %v1260_v53, %v1248_v25 }
 0x440   : > { %1152 = vmatmul.mubr.msk.bf16.vlgmr.msra.gmra.mxu0 %vm451_vm2, %v719_v50 }
 0x441   : > { %1163 = vmatprep.mubr.msk.bf16.mxu0 %vm1304_vm0, %v1303_v6 }
 0x461   : > { %v835_v51 = vpop.xlane.xlu1 %834 }
 0x462   : > { %1261 = vrcp.f32 %v835_v51 }
 0x465   : > { %v842_v52 = vpop.permute.xlu1 %841 }
 0x466   : > { %1162 = vmatpush3.bf16.msra.mxu0 %v842_v52 }
 0x46f   : > { %v1262_v54 = vpop.eup %1261 }
 0x470   : > { %v839_v56 = vmul.f32 %v1262_v54, %v1250_v31 }
 0x472   : > { %v840_v57 = vpack.c.bf16 %v839_v56, %v838_v55 }
 0x474   : > { %1164 = vmatmul.mubr.msk.bf16.vlgmr.msra.gmra.mxu0 %vm451_vm2, %v840_v57 }
 0x4f8   : > { %v639_v58 = vpop.f32.mrf.mxu0 }
 0x4fa   : > { %v1141_v59 = vpop.f32.mrf.mxu0 }
 0x4fc   : > { %v642_v60 = vpop.f32.mrf.mxu0 }
 0x4fd   : > { %v1213_v61 = vpack.i.bf16 %v642_v60, %v639_v58 }
 0x4fe   : > { %v1142_v62 = vpop.f32.mrf.mxu0 }
 0x4ff   : > { %1214 = vrot.lane.b32.xlu1 %v1213_v61, %s1306_s27 }
 0x500   : > { %v760_v6 = vpop.f32.mrf.mxu0 }
 0x502   : > { %v1153_v63 = vpop.f32.mrf.mxu0 }
 0x504   : > { %v763_v0 = vpop.f32.mrf.mxu0 }
 0x505   : > { %v1218_v1 = vpack.i.bf16 %v763_v0, %v760_v6 }
 0x506   : > { %v1154_v2 = vpop.f32.mrf.mxu0 }
 0x507   : > { %1219 = vrot.lane.b32.xlu0 %v1218_v1, %s1307_s29 }
 0x534   : > { %v881_v3 = vpop.f32.mrf.mxu0 }
 0x536   : > { %v1165_v4 = vpop.f32.mrf.mxu0 }
 0x538   : > { %v884_v5 = vpop.f32.mrf.mxu0 }
 0x539   : > { %v1223_v7 = vpack.i.bf16 %v884_v5, %v881_v3 }
 0x53a   : > { %v1166_v8 = vpop.f32.mrf.mxu0 }
 0x53b   : > { %1224 = vrot.lane.b32.xlu1 %v1223_v7, %s1305_s26 }
 0x571   : > { %v1215_v9 = vpop.permute.xlu1 %1214 }
 0x572   : > { %v1217_v11 = vunpack.i.h.bf16 %v1215_v9  ;;  %v1216_v12 = vunpack.i.l.bf16 %v1215_v9 }
 0x574   : > { %v913_v16 = vsel %vm403_vm1, %v1441_v45, %v1217_v11  ;;  %v912_v17 = vsel %vm403_vm1, %v1439_v43, %v1216_v12 }
 0x579   : > { %v1220_v10 = vpop.permute.xlu0 %1219 }
 0x57a   : > { %v1222_v13 = vunpack.i.h.bf16 %v1220_v10  ;;  %v1221_v14 = vunpack.i.l.bf16 %v1220_v10 }
 0x57c   : > { %v916_v20 = vsel %vm914_vm3, %v913_v16, %v1222_v13  ;;  %v915_v21 = vsel %vm914_vm3, %v912_v17, %v1221_v14 }
 0x5ad   : > { %v1225_v15 = vpop.permute.xlu1 %1224 }
 0x5ae   : > { %v1227_v18 = vunpack.i.h.bf16 %v1225_v15  ;;  %v1226_v19 = vunpack.i.l.bf16 %v1225_v15 }
 0x5b0   : > { %v919_v22 = vsel %vm917_vm4, %v916_v20, %v1227_v18  ;;  %v918_v23 = vsel %vm917_vm4, %v915_v21, %v1226_v19 }
 0x5b1   : > { %v1101_v24 = vpack.c.bf16 %v919_v22, %v918_v23 }
 0x5b3   : > { %1102 = vst [vmem:[%s384_s6] sm:$0xff] %v1101_v24  }
 0x5b4 PF: > { %s13_s16 = sadd.s32 1, %s1301_s16   ;;  %s1502_s12 = smov %s1289_s13 }
 0x5b5   : > { %p10_p10 = scmp.ge.s32.totalorder %s13_s16, 4   ;;  %s1503_s13 = smov %s1367_s21 }
 0x5b6   : > { %s1504_s14 = smov %s1297_s15  ;;  %s1505_s15 = smov %s1507_s17 }
 0x5b7   :  { %12 = sbr.rel (!%p10_p10) target bundleno = 3 (0x3), region = 206 }

// kernel: transformer_model_forward.29
= control target key start
LH: loop header
LB: loop body
LE: loop exit
PB: predicated region body
PF: predicated region fallthrough
CT: control target
= control target key end

     0   :  { %v636_v1 = vmov 0   ;;  %v49_v35 = vlaneseq  ;;  %s807_s1 = inlined_call_operand.vmem [shape: bf16[128,256], index: 1, kind: input, shape index: {}]   ;;  %s808_s3 = inlined_call_operand.vmem [shape: bf16[256,128], index: 3, kind: input, shape index: {}]   ;;  %s809_s0 = inlined_call_operand.vmem [shape: bf16[32,128], index: 0, kind: input, shape index: {}]   ;;  %s810_s2 = inlined_call_operand.vmem [shape: f32[1,256], index: 2, kind: input, shape index: {}]   ;;  %s811_s4 = inlined_call_operand.vmem [shape: f32[1,128], index: 4, kind: input, shape index: {}]   ;;  %s812_s5 = inlined_call_operand.vmem [shape: f32[1,128], index: 5, kind: input, shape index: {}]   ;;  %s813_s6 = inlined_call_operand.vmem [shape: f32[1,128], index: 6, kind: input, shape index: {}]   ;;  %s814_s7 = inlined_call_operand.vmem [shape: bf16[32,128], index: 7, kind: output, shape index: {}]  }
   0x1   :  { %v584_v0 = vld [vmem:[%s807_s1 + $0x74] ss:$8 sps:$4 sm:$0xff]   ;;  %183 = vmatprep.mubr.bf16.mxu0 %v636_v1  ;;  %v586_v2 = vld [vmem:[%s807_s1 + $0x70] ss:$8 sps:$4 sm:$0xff]   ;;  %v587_v3 = vld [vmem:[%s807_s1 + $0x64] ss:$8 sps:$4 sm:$0xff]  }
   0x2   :  { %151 = vmatprep.subr.bf16.mxu0 %v584_v0  ;;  %v589_v4 = vld [vmem:[%s807_s1 + $0x60] ss:$8 sps:$4 sm:$0xff]   ;;  %v590_v5 = vld [vmem:[%s807_s1 + $0x54] ss:$8 sps:$4 sm:$0xff]   ;;  %v592_v6 = vld [vmem:[%s807_s1 + $0x50] ss:$8 sps:$4 sm:$0xff]  }
   0x3   :  { %152 = vmatpush1.bf16.msra.mxu0 %v586_v2  ;;  %v593_v7 = vld [vmem:[%s807_s1 + $0x44] ss:$8 sps:$4 sm:$0xff]   ;;  %v595_v8 = vld [vmem:[%s807_s1 + $0x40] ss:$8 sps:$4 sm:$0xff]   ;;  %v596_v9 = vld [vmem:[%s807_s1 + $0x34] ss:$8 sps:$4 sm:$0xff]  }
   0x4   :  { %153 = vmatprep.subr.bf16.mxu0 %v587_v3  ;;  %v610_v10 = vld [vmem:[%s808_s3 + $0x78] sm:$0xff]   ;;  %v599_v13 = vld [vmem:[%s807_s1 + $0x24] ss:$8 sps:$4 sm:$0xff]   ;;  %v612_v14 = vld [vmem:[%s808_s3 + $0x70] sm:$0xff]   ;;  %v50_v36 = vshrl.u32 %v49_v35, 7 }
   0x5   :  { %v598_v11 = vld [vmem:[%s807_s1 + $0x30] ss:$8 sps:$4 sm:$0xff]   ;;  %555 = vmatprep.subr.bf16.mxu1 %v610_v10  ;;  %v614_v16 = vld [vmem:[%s808_s3 + $0x68] sm:$0xff]   ;;  %v602_v18 = vld [vmem:[%s807_s1 + $0x14] ss:$8 sps:$4 sm:$0xff]  }
   0x6   :  { %v611_v12 = vld [vmem:[%s808_s3 + $0x38] sm:$0xff]   ;;  %v613_v15 = vld [vmem:[%s808_s3 + $0x30] sm:$0xff]   ;;  %v601_v17 = vld [vmem:[%s807_s1 + $0x20] ss:$8 sps:$4 sm:$0xff]   ;;  %v55_v37 = vsub.s32 1, %v50_v36  ;;  %v51_v38 = vsub.s32 0, %v50_v36 }
   0x7   :  { %154 = vmatpush1.bf16.msra.mxu0 %v589_v4  ;;  %556 = vmatpush3.bf16.msra.mxu1 %v611_v12  ;;  %v615_v19 = vld [vmem:[%s808_s3 + $0x28] sm:$0xff]   ;;  %v616_v20 = vld [vmem:[%s808_s3 + $0x60] sm:$0xff]   ;;  %v604_v21 = vld [vmem:[%s807_s1 + $0x10] ss:$8 sps:$4 sm:$0xff]  }
   0x8   :  { %155 = vmatprep.subr.bf16.mxu0 %v590_v5  ;;  %557 = vmatprep.subr.bf16.mxu1 %v612_v14  ;;  %v617_v22 = vld [vmem:[%s808_s3 + $0x20] sm:$0xff]   ;;  %v618_v24 = vld [vmem:[%s808_s3 + $0x58] sm:$0xff]   ;;  %v764_v28 = vld [vmem:[%s809_s0 + $0x8] sm:$0xff]  }
   0x9   :  { %v605_v23 = vld [vmem:[%s807_s1 + $0x4] ss:$8 sps:$4 sm:$0xff]   ;;  %v607_v25 = vld [vmem:[%s807_s1] ss:$8 sps:$4 sm:$0xff]   ;;  %v619_v27 = vld [vmem:[%s808_s3 + $0x18] sm:$0xff]  }
   0xa   :  { %v755_v26 = vld [vmem:[%s809_s0] sm:$0xff]   ;;  %v620_v29 = vld [vmem:[%s808_s3 + $0x50] sm:$0xff]   ;;  %v622_v31 = vld [vmem:[%s808_s3 + $0x48] sm:$0xff]  }
   0xb   :  { %156 = vmatpush1.bf16.msra.mxu0 %v592_v6  ;;  %558 = vmatpush3.bf16.msra.mxu1 %v613_v15  ;;  %v621_v30 = vld [vmem:[%s808_s3 + $0x10] sm:$0xff]   ;;  %v623_v32 = vld [vmem:[%s808_s3 + $0x8] sm:$0xff]   ;;  %v624_v33 = vld [vmem:[%s808_s3 + $0x40] sm:$0xff]   ;;  %v400_v10 = vunpack.c.l.bf16 %v755_v26 }
   0xc   :  { %157 = vmatprep.subr.bf16.mxu0 %v593_v7  ;;  %559 = vmatprep.subr.bf16.mxu1 %v614_v16  ;;  %v625_v34 = vld [vmem:[%s808_s3] sm:$0xff]   ;;  %v401_v16 = vunpack.c.h.bf16 %v755_v26 }
   0xd   :  { %v47_v39 = vld [vmem:[%s810_s2] sm:$0x3] }
   0xe   :  { %v56_v41 = vrot.slane %v47_v39, %v55_v37  ;;  %v52_v42 = vrot.slane %v47_v39, %v51_v38  ;;  %v517_v7 = vld [vmem:[%s811_s4] ss:$0 sm:$0xff] }
   0xf   :  { %158 = vmatpush1.bf16.msra.mxu0 %v595_v8  ;;  %560 = vmatpush3.bf16.msra.mxu1 %v615_v19 }
  0x10   :  { %159 = vmatprep.subr.bf16.mxu0 %v596_v9  ;;  %561 = vmatprep.subr.bf16.mxu1 %v616_v20 }
  0x13   :  { %160 = vmatpush1.bf16.msra.mxu0 %v598_v11  ;;  %562 = vmatpush3.bf16.msra.mxu1 %v617_v22  ;;  %v402_v22 = vunpack.c.l.bf16 %v764_v28 }
  0x14   :  { %161 = vmatprep.subr.bf16.mxu0 %v599_v13  ;;  %563 = vmatprep.subr.bf16.mxu1 %v618_v24 }
  0x17   :  { %162 = vmatpush1.bf16.msra.mxu0 %v601_v17  ;;  %564 = vmatpush3.bf16.msra.mxu1 %v619_v27 }
  0x18   :  { %163 = vmatprep.subr.bf16.mxu0 %v602_v18  ;;  %565 = vmatprep.subr.bf16.mxu1 %v620_v29 }
  0x1b   :  { %164 = vmatpush1.bf16.msra.mxu0 %v604_v21  ;;  %566 = vmatpush3.bf16.msra.mxu1 %v621_v30  ;;  %v403_v30 = vunpack.c.h.bf16 %v764_v28 }
  0x1c   :  { %165 = vmatprep.subr.bf16.mxu0 %v605_v23  ;;  %567 = vmatprep.subr.bf16.mxu1 %v622_v31 }
  0x1f   :  { %166 = vmatpush1.bf16.msra.mxu0 %v607_v25  ;;  %568 = vmatpush3.bf16.msra.mxu1 %v623_v32 }
  0x20   :  { %569 = vmatprep.subr.bf16.mxu1 %v624_v33 }
  0x22   :  { %184 = vmatmul.mubr.bf16.vlgmr.msra.gmra.mxu0 %v755_v26 }
  0x23   :  { %193 = vmatprep.mubr.bf16.mxu0 %v636_v1  ;;  %570 = vmatpush3.bf16.msra.mxu1 %v625_v34 }
  0x2a   :  { %194 = vmatmul.mubr.bf16.gmra.mxu0 %v764_v28 }
  0xe2   :  { %v185_v40 = vpop.f32.mrf.mxu0 }
  0xe3   :  { %v186_v47 = vadd.f32 %v185_v40, %v52_v42 }
  0xe4   :  { %v187_v43 = vpop.f32.mrf.mxu0 }
  0xe5   :  { %v188_v45 = vadd.f32 %v187_v43, %v56_v41  ;;  %v204_v54 = vmax.f32 %v186_v47, 0.0 }
  0xe6   :  { %v189_v44 = vpop.f32.mrf.mxu0 }
  0xe7   :  { %v190_v46 = vadd.f32 %v189_v44, %v52_v42  ;;  %v205_v52 = vmax.f32 %v188_v45, 0.0 }
  0xe8   :  { %v191_v48 = vpop.f32.mrf.mxu0 }
  0xe9   :  { %v192_v49 = vadd.f32 %v191_v48, %v56_v41  ;;  %v206_v50 = vmax.f32 %v190_v46, 0.0 }
  0xea   :  { %v195_v51 = vpop.f32.mrf.mxu0 }
  0xeb   :  { %v207_v53 = vmax.f32 %v192_v49, 0.0  ;;  %v212_v57 = vpack.c.bf16 %v206_v50, %v204_v54  ;;  %v196_v61 = vadd.f32 %v195_v51, %v52_v42 }
  0xec   :  { %v197_v55 = vpop.f32.mrf.mxu0 }
  0xed   :  { %v213_v56 = vpack.c.bf16 %v207_v53, %v205_v52  ;;  %v198_v59 = vadd.f32 %v197_v55, %v56_v41  ;;  %v208_v3 = vmax.f32 %v196_v61, 0.0  ;;  %v534_v61 = vld [vmem:[%s812_s5] ss:$0 sm:$0xff] }
  0xee   :  { %v199_v58 = vpop.f32.mrf.mxu0 }
  0xef   :  { %v200_v60 = vadd.f32 %v199_v58, %v52_v42  ;;  %383 = vmatprep.mubr.bf16.mxu1 %v213_v56  ;;  %v209_v1 = vmax.f32 %v198_v59, 0.0 }
  0xf0   :  { %v201_v62 = vpop.f32.mrf.mxu0  ;;  %384 = vmatmul.mubr.bf16.vlgmr.msra.gmra.mxu1 %v212_v57 }
  0xf1   :  { %v202_v63 = vadd.f32 %v201_v62, %v56_v41  ;;  %v210_v0 = vmax.f32 %v200_v60, 0.0 }
  0xf3   :  { %v211_v2 = vmax.f32 %v202_v63, 0.0  ;;  %v214_v5 = vpack.c.bf16 %v210_v0, %v208_v3 }
  0xf5   :  { %v215_v4 = vpack.c.bf16 %v211_v2, %v209_v1  ;;  %v535_v1 = vld [vmem:[%s813_s6] ss:$0 sm:$0xff] }
  0xf7   :  { %391 = vmatprep.mubr.bf16.mxu1 %v215_v4 }
  0xf8   :  { %392 = vmatmul.mubr.bf16.gmra.mxu1 %v214_v5 }
 0x1b0   :  { %v571_v6 = vpop.f32.mrf.mxu1 }
 0x1b2   :  { %v572_v8 = vpop.f32.mrf.mxu1 }
 0x1b3   :  { %v573_v9 = vadd.f32 %v572_v8, %v571_v6 }
 0x1b4   :  { %v574_v11 = vpop.f32.mrf.mxu1 }
 0x1b5   :  { %v386_v12 = vadd.f32 %v573_v9, %v517_v7 }
 0x1b6   :  { %v575_v13 = vpop.f32.mrf.mxu1 }
 0x1b7   :  { %v576_v14 = vadd.f32 %v575_v13, %v574_v11  ;;  %v404_v15 = vadd.f32 %v400_v10, %v386_v12 }
 0x1b8   :  { %v577_v17 = vpop.f32.mrf.mxu1 }
 0x1b9   :  { %v389_v18 = vadd.f32 %v576_v14, %v517_v7  ;;  %410 = vadd.xlane.f32.xlu0 %v404_v15 }
 0x1ba   :  { %v578_v19 = vpop.f32.mrf.mxu1 }
 0x1bb   :  { %v579_v20 = vadd.f32 %v578_v19, %v577_v17  ;;  %v405_v21 = vadd.f32 %v401_v16, %v389_v18 }
 0x1bc   :  { %v580_v23 = vpop.f32.mrf.mxu1 }
 0x1bd   :  { %v394_v24 = vadd.f32 %v579_v20, %v517_v7  ;;  %412 = vadd.xlane.f32.xlu0 %v405_v21 }
 0x1be   :  { %v581_v25 = vpop.f32.mrf.mxu1 }
 0x1bf   :  { %v582_v27 = vadd.f32 %v581_v25, %v580_v23  ;;  %v406_v29 = vadd.f32 %v402_v22, %v394_v24 }
 0x1c1   :  { %v397_v31 = vadd.f32 %v582_v27, %v517_v7  ;;  %414 = vadd.xlane.f32.xlu1 %v406_v29 }
 0x1c3   :  { %v407_v32 = vadd.f32 %v403_v30, %v397_v31 }
 0x1c5   :  { %416 = vadd.xlane.f32.xlu1 %v407_v32 }
 0x242   :  { %v411_v26 = vpop.xlane.xlu0 %410 }
 0x243   :  { %v419_v33 = vmul.f32 0.0078125, %v411_v26 }
 0x245   :  { %v423_v34 = vsub.f32 %v404_v15, %v419_v33 }
 0x246   :  { %v413_v35 = vpop.xlane.xlu0 %412 }
 0x247   :  { %v420_v36 = vmul.f32 0.0078125, %v413_v35  ;;  %v427_v37 = vmul.f32 %v423_v34, %v423_v34 }
 0x249   :  { %v424_v38 = vsub.f32 %v405_v21, %v420_v36  ;;  %431 = vadd.xlane.f32.xlu0 %v427_v37 }
 0x24a   :  { %v415_v39 = vpop.xlane.xlu1 %414 }
 0x24b   :  { %v421_v40 = vmul.f32 0.0078125, %v415_v39  ;;  %v428_v41 = vmul.f32 %v424_v38, %v424_v38 }
 0x24d   :  { %v425_v42 = vsub.f32 %v406_v29, %v421_v40  ;;  %433 = vadd.xlane.f32.xlu1 %v428_v41 }
 0x24e   :  { %v417_v43 = vpop.xlane.xlu1 %416 }
 0x24f   :  { %v422_v44 = vmul.f32 0.0078125, %v417_v43  ;;  %v429_v28 = vmul.f32 %v425_v42, %v425_v42 }
 0x251   :  { %v426_v45 = vsub.f32 %v407_v32, %v422_v44  ;;  %435 = vadd.xlane.f32.xlu0 %v429_v28 }
 0x253   :  { %v430_v46 = vmul.f32 %v426_v45, %v426_v45 }
 0x255   :  { %437 = vadd.xlane.f32.xlu1 %v430_v46 }
 0x2d2   :  { %v432_v47 = vpop.xlane.xlu0 %431 }
 0x2d3   :  { %v439_v48 = vmul.f32 0.0078125, %v432_v47 }
 0x2d5   :  { %v443_v49 = vadd.f32 1e-05, %v439_v48 }
 0x2d6   :  { %v434_v50 = vpop.xlane.xlu1 %433 }
 0x2d7   :  { %628 = vrsqrt.f32 %v443_v49  ;;  %v440_v51 = vmul.f32 0.0078125, %v434_v50 }
 0x2d9   :  { %v444_v52 = vadd.f32 1e-05, %v440_v51 }
 0x2da   :  { %v436_v53 = vpop.xlane.xlu0 %435 }
 0x2db   :  { %630 = vrsqrt.f32 %v444_v52  ;;  %v441_v54 = vmul.f32 0.0078125, %v436_v53 }
 0x2dd   :  { %v445_v55 = vadd.f32 1e-05, %v441_v54 }
 0x2de   :  { %v438_v56 = vpop.xlane.xlu1 %437 }
 0x2df   :  { %632 = vrsqrt.f32 %v445_v55  ;;  %v442_v57 = vmul.f32 0.0078125, %v438_v56 }
 0x2e1   :  { %v446_v58 = vadd.f32 1e-05, %v442_v57 }
 0x2e3   :  { %634 = vrsqrt.f32 %v446_v58 }
 0x2e4   :  { %v629_v59 = vpop.eup %628 }
 0x2e5   :  { %v451_v60 = vmul.f32 %v629_v59, %v423_v34 }
 0x2e7   :  { %v461_v63 = vmul.f32 %v534_v61, %v451_v60 }
 0x2e8   :  { %v631_v62 = vpop.eup %630 }
 0x2e9   :  { %v452_v0 = vmul.f32 %v631_v62, %v424_v38  ;;  %v471_v4 = vadd.f32 %v535_v1, %v461_v63 }
 0x2eb   :  { %v462_v2 = vmul.f32 %v534_v61, %v452_v0 }
 0x2ec   :  { %v633_v3 = vpop.eup %632 }
 0x2ed   :  { %v472_v5 = vadd.f32 %v535_v1, %v462_v2  ;;  %v453_v6 = vmul.f32 %v633_v3, %v425_v42 }
 0x2ef   :  { %v547_v7 = vpack.c.bf16 %v472_v5, %v471_v4  ;;  %v463_v9 = vmul.f32 %v534_v61, %v453_v6 }
 0x2f0   :  { %v635_v8 = vpop.eup %634 }
 0x2f1   :  { %548 = vst [vmem:[%s814_s7] sm:$0xff] %v547_v7   ;;  %v454_v10 = vmul.f32 %v635_v8, %v426_v45  ;;  %v473_v12 = vadd.f32 %v535_v1, %v463_v9 }
 0x2f3   :  { %v464_v11 = vmul.f32 %v534_v61, %v454_v10 }
 0x2f5   :  { %v474_v13 = vadd.f32 %v535_v1, %v464_v11 }
 0x2f7   :  { %v552_v14 = vpack.c.bf16 %v474_v13, %v473_v12 }
 0x2f9   :  { %554 = vst [vmem:[%s814_s7 + $0x8] sm:$0xff] %v552_v14  }

// kernel: transformer_model_forward.34
= control target key start
LH: loop header
LB: loop body
LE: loop exit
PB: predicated region body
PF: predicated region fallthrough
CT: control target
= control target key end

     0   :  { %s189_s0 = inlined_call_operand.vmem [shape: bf16[32,128], index: 0, kind: input, shape index: {}]   ;;  %s190_s1 = inlined_call_operand.vmem [shape: f32[1,128], index: 1, kind: input, shape index: {}]   ;;  %s191_s2 = inlined_call_operand.vmem [shape: f32[1,128], index: 2, kind: input, shape index: {}]   ;;  %s192_s3 = inlined_call_operand.vmem [shape: bf16[32,128], index: 3, kind: output, shape index: {}]  }
   0x1   :  { %v124_v0 = vld [vmem:[%s189_s0] sm:$0xff]   ;;  %v141_v1 = vld [vmem:[%s189_s0 + $0x8] sm:$0xff]  }
   0x2   :  { %v125_v2 = vunpack.c.l.bf16 %v124_v0  ;;  %v129_v3 = vunpack.c.l.bf16 %v141_v1  ;;  %v126_v4 = vunpack.c.h.bf16 %v124_v0  ;;  %v130_v5 = vunpack.c.h.bf16 %v141_v1  ;;  %v113_v36 = vld [vmem:[%s190_s1] ss:$0 sm:$0xff] }
   0x3   :  { %v114_v41 = vld [vmem:[%s191_s2] ss:$0 sm:$0xff] }
   0x4   :  { %24 = vadd.xlane.f32.xlu0 %v125_v2  ;;  %28 = vadd.xlane.f32.xlu1 %v129_v3 }
   0x8   :  { %26 = vadd.xlane.f32.xlu0 %v126_v4  ;;  %30 = vadd.xlane.f32.xlu1 %v130_v5 }
  0x8d   :  { %v25_v6 = vpop.xlane.xlu0 %24  ;;  %v29_v7 = vpop.xlane.xlu1 %28 }
  0x8e   :  { %v33_v8 = vmul.f32 0.0078125, %v25_v6  ;;  %v35_v9 = vmul.f32 0.0078125, %v29_v7 }
  0x90   :  { %v37_v10 = vsub.f32 %v125_v2, %v33_v8  ;;  %v39_v11 = vsub.f32 %v129_v3, %v35_v9 }
  0x91   :  { %v27_v12 = vpop.xlane.xlu0 %26  ;;  %v31_v13 = vpop.xlane.xlu1 %30 }
  0x92   :  { %v34_v14 = vmul.f32 0.0078125, %v27_v12  ;;  %v41_v15 = vmul.f32 %v37_v10, %v37_v10  ;;  %v36_v16 = vmul.f32 0.0078125, %v31_v13  ;;  %v43_v19 = vmul.f32 %v39_v11, %v39_v11 }
  0x94   :  { %v38_v17 = vsub.f32 %v126_v4, %v34_v14  ;;  %45 = vadd.xlane.f32.xlu0 %v41_v15  ;;  %v40_v18 = vsub.f32 %v130_v5, %v36_v16 }
  0x96   :  { %v42_v20 = vmul.f32 %v38_v17, %v38_v17  ;;  %v44_v21 = vmul.f32 %v40_v18, %v40_v18 }
  0x98   :  { %49 = vadd.xlane.f32.xlu0 %v43_v19  ;;  %47 = vadd.xlane.f32.xlu1 %v42_v20 }
  0x9c   :  { %51 = vadd.xlane.f32.xlu1 %v44_v21 }
 0x11d   :  { %v46_v22 = vpop.xlane.xlu0 %45 }
 0x11e   :  { %v53_v23 = vmul.f32 0.0078125, %v46_v22 }
 0x120   :  { %v57_v24 = vadd.f32 1e-05, %v53_v23 }
 0x121   :  { %v48_v25 = vpop.xlane.xlu1 %47  ;;  %v50_v26 = vpop.xlane.xlu0 %49 }
 0x122   :  { %143 = vrsqrt.f32 %v57_v24  ;;  %v54_v27 = vmul.f32 0.0078125, %v48_v25  ;;  %v55_v28 = vmul.f32 0.0078125, %v50_v26 }
 0x124   :  { %v58_v29 = vadd.f32 1e-05, %v54_v27  ;;  %v59_v30 = vadd.f32 1e-05, %v55_v28 }
 0x125   :  { %v52_v31 = vpop.xlane.xlu1 %51 }
 0x126   :  { %145 = vrsqrt.f32 %v58_v29  ;;  %v56_v32 = vmul.f32 0.0078125, %v52_v31 }
 0x127   :  { %147 = vrsqrt.f32 %v59_v30 }
 0x128   :  { %v60_v33 = vadd.f32 1e-05, %v56_v32 }
 0x12a   :  { %149 = vrsqrt.f32 %v60_v33 }
 0x12f   :  { %v144_v34 = vpop.eup %143 }
 0x130   :  { %v65_v35 = vmul.f32 %v144_v34, %v37_v10 }
 0x132   :  { %v75_v39 = vmul.f32 %v113_v36, %v65_v35 }
 0x133   :  { %v146_v37 = vpop.eup %145 }
 0x134   :  { %v148_v38 = vpop.eup %147  ;;  %v66_v40 = vmul.f32 %v146_v37, %v38_v17  ;;  %v85_v45 = vadd.f32 %v114_v41, %v75_v39 }
 0x135   :  { %v67_v42 = vmul.f32 %v148_v38, %v39_v11 }
 0x136   :  { %v76_v43 = vmul.f32 %v113_v36, %v66_v40 }
 0x137   :  { %v150_v44 = vpop.eup %149  ;;  %v77_v47 = vmul.f32 %v113_v36, %v67_v42 }
 0x138   :  { %v86_v46 = vadd.f32 %v114_v41, %v76_v43  ;;  %v68_v48 = vmul.f32 %v150_v44, %v40_v18 }
 0x139   :  { %v87_v51 = vadd.f32 %v114_v41, %v77_v47 }
 0x13a   :  { %v134_v49 = vpack.c.bf16 %v86_v46, %v85_v45  ;;  %v78_v50 = vmul.f32 %v113_v36, %v68_v48 }
 0x13c   :  { %135 = vst [vmem:[%s192_s3] sm:$0xff] %v134_v49   ;;  %v88_v52 = vadd.f32 %v114_v41, %v78_v50 }
 0x13e   :  { %v139_v53 = vpack.c.bf16 %v88_v52, %v87_v51 }
 0x140   :  { %142 = vst [vmem:[%s192_s3 + $0x8] sm:$0xff] %v139_v53  }

// kernel: transformer_model_forward.39
= control target key start
LH: loop header
LB: loop body
LE: loop exit
PB: predicated region body
PF: predicated region fallthrough
CT: control target
= control target key end

     0   :  { %v293_v1 = vmov 0   ;;  %v37_v19 = vlaneseq  ;;  %s383_s1 = inlined_call_operand.vmem [shape: bf16[128,256], index: 1, kind: input, shape index: {}]   ;;  %s384_s0 = inlined_call_operand.vmem [shape: bf16[32,128], index: 0, kind: input, shape index: {}]   ;;  %s385_s2 = inlined_call_operand.vmem [shape: f32[1,256], index: 2, kind: input, shape index: {}]   ;;  %s386_s3 = inlined_call_operand.vmem [shape: bf16[32,256], index: 3, kind: output, shape index: {}]  }
   0x1   :  { %v267_v0 = vld [vmem:[%s383_s1 + $0x74] ss:$8 sps:$4 sm:$0xff]   ;;  %171 = vmatprep.mubr.bf16.mxu0 %v293_v1  ;;  %181 = vmatprep.mubr.bf16.mxu1 %v293_v1  ;;  %v269_v2 = vld [vmem:[%s383_s1 + $0x70] ss:$8 sps:$4 sm:$0xff]   ;;  %v270_v3 = vld [vmem:[%s383_s1 + $0x64] ss:$8 sps:$4 sm:$0xff]  }
   0x2   :  { %139 = vmatprep.subr.bf16.mxu0 %v267_v0  ;;  %250 = vmatprep.subr.bf16.mxu1 %v267_v0  ;;  %v272_v4 = vld [vmem:[%s383_s1 + $0x60] ss:$8 sps:$4 sm:$0xff]   ;;  %v273_v5 = vld [vmem:[%s383_s1 + $0x54] ss:$8 sps:$4 sm:$0xff]   ;;  %v275_v6 = vld [vmem:[%s383_s1 + $0x50] ss:$8 sps:$4 sm:$0xff]  }
   0x3   :  { %140 = vmatpush1.bf16.msra.mxu0 %v269_v2  ;;  %258 = vmatpush1.bf16.msra.mxu1 %v269_v2  ;;  %v276_v7 = vld [vmem:[%s383_s1 + $0x44] ss:$8 sps:$4 sm:$0xff]   ;;  %v278_v8 = vld [vmem:[%s383_s1 + $0x40] ss:$8 sps:$4 sm:$0xff]   ;;  %v279_v9 = vld [vmem:[%s383_s1 + $0x34] ss:$8 sps:$4 sm:$0xff]  }
   0x4   :  { %141 = vmatprep.subr.bf16.mxu0 %v270_v3  ;;  %251 = vmatprep.subr.bf16.mxu1 %v270_v3  ;;  %v281_v10 = vld [vmem:[%s383_s1 + $0x30] ss:$8 sps:$4 sm:$0xff]   ;;  %v282_v11 = vld [vmem:[%s383_s1 + $0x24] ss:$8 sps:$4 sm:$0xff]   ;;  %v284_v12 = vld [vmem:[%s383_s1 + $0x20] ss:$8 sps:$4 sm:$0xff]  }
   0x5   :  { %v285_v13 = vld [vmem:[%s383_s1 + $0x14] ss:$8 sps:$4 sm:$0xff]   ;;  %v287_v14 = vld [vmem:[%s383_s1 + $0x10] ss:$8 sps:$4 sm:$0xff]   ;;  %v288_v15 = vld [vmem:[%s383_s1 + $0x4] ss:$8 sps:$4 sm:$0xff]  }
   0x6   :  { %v290_v16 = vld [vmem:[%s383_s1] ss:$8 sps:$4 sm:$0xff]   ;;  %v38_v20 = vshrl.u32 %v37_v19, 7 }
   0x7   :  { %142 = vmatpush1.bf16.msra.mxu0 %v272_v4  ;;  %259 = vmatpush1.bf16.msra.mxu1 %v272_v4  ;;  %v291_v17 = vld [vmem:[%s384_s0] sm:$0xff]   ;;  %v292_v18 = vld [vmem:[%s384_s0 + $0x8] sm:$0xff]  }
   0x8   :  { %143 = vmatprep.subr.bf16.mxu0 %v273_v5  ;;  %252 = vmatprep.subr.bf16.mxu1 %v273_v5  ;;  %v39_v21 = vsub.s32 0, %v38_v20  ;;  %v43_v22 = vsub.s32 1, %v38_v20  ;;  %v35_v23 = vld [vmem:[%s385_s2] sm:$0x3] }
   0xa   :  { %v40_v24 = vrot.slane %v35_v23, %v39_v21  ;;  %v44_v25 = vrot.slane %v35_v23, %v43_v22 }
   0xb   :  { %144 = vmatpush1.bf16.msra.mxu0 %v275_v6  ;;  %260 = vmatpush1.bf16.msra.mxu1 %v275_v6 }
   0xc   :  { %145 = vmatprep.subr.bf16.mxu0 %v276_v7  ;;  %253 = vmatprep.subr.bf16.mxu1 %v276_v7 }
   0xf   :  { %146 = vmatpush1.bf16.msra.mxu0 %v278_v8  ;;  %261 = vmatpush1.bf16.msra.mxu1 %v278_v8 }
  0x10   :  { %147 = vmatprep.subr.bf16.mxu0 %v279_v9  ;;  %254 = vmatprep.subr.bf16.mxu1 %v279_v9 }
  0x13   :  { %148 = vmatpush1.bf16.msra.mxu0 %v281_v10  ;;  %262 = vmatpush1.bf16.msra.mxu1 %v281_v10 }
  0x14   :  { %149 = vmatprep.subr.bf16.mxu0 %v282_v11  ;;  %255 = vmatprep.subr.bf16.mxu1 %v282_v11 }
  0x17   :  { %150 = vmatpush1.bf16.msra.mxu0 %v284_v12  ;;  %263 = vmatpush1.bf16.msra.mxu1 %v284_v12 }
  0x18   :  { %151 = vmatprep.subr.bf16.mxu0 %v285_v13  ;;  %256 = vmatprep.subr.bf16.mxu1 %v285_v13 }
  0x1b   :  { %152 = vmatpush1.bf16.msra.mxu0 %v287_v14  ;;  %264 = vmatpush1.bf16.msra.mxu1 %v287_v14 }
  0x1c   :  { %153 = vmatprep.subr.bf16.mxu0 %v288_v15  ;;  %257 = vmatprep.subr.bf16.mxu1 %v288_v15 }
  0x1f   :  { %154 = vmatpush1.bf16.msra.mxu0 %v290_v16  ;;  %265 = vmatpush1.bf16.msra.mxu1 %v290_v16 }
  0x22   :  { %172 = vmatmul.mubr.bf16.vlgmr.msra.gmra.mxu0 %v291_v17  ;;  %182 = vmatmul.mubr.bf16.vlgmr.msra.gmra.mxu1 %v292_v18 }
  0xe2   :  { %v173_v26 = vpop.f32.mrf.mxu0  ;;  %v183_v27 = vpop.f32.mrf.mxu1 }
  0xe3   :  { %v174_v30 = vadd.f32 %v173_v26, %v40_v24  ;;  %v184_v31 = vadd.f32 %v183_v27, %v40_v24 }
  0xe4   :  { %v175_v28 = vpop.f32.mrf.mxu0  ;;  %v185_v29 = vpop.f32.mrf.mxu1 }
  0xe5   :  { %v176_v32 = vadd.f32 %v175_v28, %v44_v25  ;;  %v186_v33 = vadd.f32 %v185_v29, %v44_v25 }
  0xe6   :  { %v177_v34 = vpop.f32.mrf.mxu0  ;;  %v187_v35 = vpop.f32.mrf.mxu1 }
  0xe7   :  { %v246_v36 = vpack.c.bf16 %v176_v32, %v174_v30  ;;  %v248_v37 = vpack.c.bf16 %v186_v33, %v184_v31  ;;  %v178_v40 = vadd.f32 %v177_v34, %v40_v24  ;;  %v188_v41 = vadd.f32 %v187_v35, %v40_v24 }
  0xe8   :  { %v179_v38 = vpop.f32.mrf.mxu0  ;;  %v189_v39 = vpop.f32.mrf.mxu1 }
  0xe9   :  { %216 = vst [vmem:[%s386_s3] sm:$0xff] %v246_v36  ;;  %218 = vst [vmem:[%s386_s3 + $0x10] sm:$0xff] %v248_v37  ;;  %v180_v42 = vadd.f32 %v179_v38, %v44_v25  ;;  %v190_v43 = vadd.f32 %v189_v39, %v44_v25 }
  0xeb   :  { %v247_v44 = vpack.c.bf16 %v180_v42, %v178_v40  ;;  %v249_v45 = vpack.c.bf16 %v190_v43, %v188_v41 }
  0xed   :  { %217 = vst [vmem:[%s386_s3 + $0x8] sm:$0xff] %v247_v44  ;;  %219 = vst [vmem:[%s386_s3 + $0x18] sm:$0xff] %v249_v45 }

// kernel: transformer_model_forward.35
= control target key start
LH: loop header
LB: loop body
LE: loop exit
PB: predicated region body
PF: predicated region fallthrough
CT: control target
= control target key end

     0   :  { %s773_s12 = smov 0   ;;  %s775_s13 = smov 0   ;;  %s875_s0 = inlined_call_operand.vmem [shape: bf16[16,128], index: 0, kind: input, shape index: {}]   ;;  %s876_s1 = inlined_call_operand.vmem [shape: bf16[128,384], index: 1, kind: input, shape index: {}]   ;;  %s877_s2 = inlined_call_operand.vmem [shape: f32[1,384], index: 2, kind: input, shape index: {}]   ;;  %s878_s3 = inlined_call_operand.vmem [shape: bf16[16,384], index: 3, kind: output, shape index: {}]  }
   0x1   :  { %s777_s14 = smov 0   ;;  %s779_s15 = smov 0  }
   0x2   :  { %s781_s16 = smov 0  }
   0x3 LB: > { %s22_s17 = sadd.s32 1, %s745_s15  ;;  %s598_s18 = sadd.s32 4294967295, %s749_s16   ;;  %s749_s16 = sphi %s781_s16, %s13_s16   ;;  %s745_s15 = sphi %s779_s15, %s883_s15   ;;  %s741_s14 = sphi %s777_s14, %s882_s14   ;;  %s737_s13 = sphi %s775_s13, %s881_s13   ;;  %s733_s12 = sphi %s773_s12, %s880_s12  }
   0x4   : > { %p23_p0 = scmp.ge.s32.totalorder %s22_s17, 3  ;;  %p65_p1 = scmp.ne.s32.totalorder %s737_s13, %s733_s12 }
   0x5   : > { %p66_p2 = scmp.eq.s32.totalorder %s749_s16, 0  ;;  %p123_p4 = scmp.eq.s32.totalorder %s598_s18, 2 }
   0x6   : > { %s885_s17 = smov (%p23_p0, %s22_s17), 0  ;;  %s58_s20 = sadd.s32 1, %s737_s13 }
   0x7   : > { %p67_p3 = por %p66_p2, %p65_p1  ;;  %s55_s19 = ssub.s32 %s745_s15, %s885_s17 }
   0x8   : > { %p56_p5 = scmp.eq.s32.totalorder %s55_s19, 0  ;;  %p808_p6 = por %p123_p4, %p65_p1 }
   0x9   : > { %p602_p7 = scmp.ge.s32.totalorder %s749_s16, 3 }
   0xa   : > { %s813_s22 = scalar_select %p56_p5, %s737_s13, %s58_s20  }
   0xb   : > { %154 = sbr.rel (%p602_p7) target bundleno = 30 (0x1e), region = 20 }
  0x10   : > { %157 = sbr.rel (!%p67_p3) target bundleno = 30 (0x1e), region = 24  ;;  %s159_s23 = sand.u32 (%p67_p3), 1, %s737_s13  }
  0x11   : > { %s604_s24 = sshll.u32 (%p67_p3), %s745_s15, 2  ;;  %s603_s25 = sshll.u32 (%p67_p3), %s159_s23, 6 }
  0x12   : > { %s821_s28 = scalar_lea.vmem (%p67_p3), %s876_s1, %s604_s24  ;;  %s161_s29 = scalar_lea.vmem (%p67_p3), [#allocation2], %s603_s25 }
  0x13   : > { %v180_v0 = vld [vmem:[%s821_s28] sm:$0xf] (%p67_p3)  ;;  %v182_v1 = vld [vmem:[%s821_s28 + $0xc] sm:$0xf] (%p67_p3)  ;;  %v184_v2 = vld [vmem:[%s821_s28 + $0x18] sm:$0xf] (%p67_p3) }
  0x14   : > { %181 = vst [vmem:[%s161_s29] sm:$0xf] (%p67_p3), %v180_v0  ;;  %183 = vst [vmem:[%s161_s29 + $0x4] sm:$0xf] (%p67_p3), %v182_v1  ;;  %v186_v3 = vld [vmem:[%s821_s28 + $0x24] sm:$0xf] (%p67_p3) }
  0x15   : > { %v188_v4 = vld [vmem:[%s821_s28 + $0x30] sm:$0xf]  ;;  %185 = vst [vmem:[%s161_s29 + $0x8] sm:$0xf] %v184_v2  ;;  %187 = vst [vmem:[%s161_s29 + $0xc] sm:$0xf] %v186_v3 }
  0x16   : > { %189 = vst [vmem:[%s161_s29 + $0x10] sm:$0xf] %v188_v4  ;;  %v190_v5 = vld [vmem:[%s821_s28 + $0x3c] sm:$0xf]  ;;  %v192_v6 = vld [vmem:[%s821_s28 + $0x48] sm:$0xf] }
  0x17   : > { %v194_v7 = vld [vmem:[%s821_s28 + $0x54] sm:$0xf]  ;;  %191 = vst [vmem:[%s161_s29 + $0x14] sm:$0xf] %v190_v5  ;;  %193 = vst [vmem:[%s161_s29 + $0x18] sm:$0xf] %v192_v6 }
  0x18   : > { %195 = vst [vmem:[%s161_s29 + $0x1c] sm:$0xf] %v194_v7  ;;  %v196_v8 = vld [vmem:[%s821_s28 + $0x60] sm:$0xf]  ;;  %v198_v9 = vld [vmem:[%s821_s28 + $0x6c] sm:$0xf] }
  0x19   : > { %v200_v10 = vld [vmem:[%s821_s28 + $0x78] sm:$0xf]  ;;  %197 = vst [vmem:[%s161_s29 + $0x20] sm:$0xf] %v196_v8  ;;  %199 = vst [vmem:[%s161_s29 + $0x24] sm:$0xf] %v198_v9 }
  0x1a   : > { %201 = vst [vmem:[%s161_s29 + $0x28] sm:$0xf] %v200_v10  ;;  %v202_v11 = vld [vmem:[%s821_s28 + $0x84] sm:$0xf]  ;;  %v204_v12 = vld [vmem:[%s821_s28 + $0x90] sm:$0xf] }
  0x1b   : > { %v206_v13 = vld [vmem:[%s821_s28 + $0x9c] sm:$0xf]  ;;  %203 = vst [vmem:[%s161_s29 + $0x2c] sm:$0xf] %v202_v11  ;;  %205 = vst [vmem:[%s161_s29 + $0x30] sm:$0xf] %v204_v12 }
  0x1c   : > { %207 = vst [vmem:[%s161_s29 + $0x34] sm:$0xf] %v206_v13  ;;  %v208_v14 = vld [vmem:[%s821_s28 + $0xa8] sm:$0xf]  ;;  %v210_v15 = vld [vmem:[%s821_s28 + $0xb4] sm:$0xf] }
  0x1d   : > { %209 = vst [vmem:[%s161_s29 + $0x38] sm:$0xf] %v208_v14  ;;  %211 = vst [vmem:[%s161_s29 + $0x3c] sm:$0xf] %v210_v15 }
  0x1e PF: > { %p605_p8 = scmp.ge.s32.totalorder %s749_s16, 1  ;;  %p272_p9 = scmp.lt.s32.totalorder %s749_s16, 4 }
  0x20   : > { %p273_p10 = pnand %p605_p8, %p272_p9 }
  0x21   : > { %s279_s30 = sand.u32 (!%p273_p10), 1, %s733_s12   ;;  %p315_p11 = scmp.lt.s32.totalorder (!%p273_p10), %s741_s14, 2 }
  0x22   : > { %276 = sbr.rel (%p273_p10) target bundleno = 282 (0x11a), region = 69  ;;  %s606_s4 = sshll.u32 (!%p273_p10), %s279_s30, 6 }
  0x23   : > { %s281_s5 = scalar_lea.vmem (!%p273_p10), [#allocation2], %s606_s4  ;;  %s607_s18 = sshll.u32 (!%p273_p10), %s279_s30, 3 }
  0x24   : > { %s308_s19 = scalar_lea.vmem (!%p273_p10), [#allocation3], %s607_s18 }
  0x27   : > { %v751_v16 = vmov 0.0   ;;  %vm752_vm0 = vmmov 0   ;;  %v702_v17 = vld [vmem:[%s281_s5 + $0x38] sm:$0xff]   ;;  %v703_v18 = vld [vmem:[%s281_s5 + $0x30] sm:$0xff]   ;;  %v704_v19 = vld [vmem:[%s281_s5 + $0x28] sm:$0xff]   ;;  %s316_s8 = scalar_select %p315_p11, %s741_s14, 2 }
  0x28   : > { %640 = vmatprep.subr.bf16.mxu0 %v751_v16  ;;  %656 = vmatprep.mubr.msk.bf16.mxu0 %vm752_vm0, %v751_v16  ;;  %v705_v20 = vld [vmem:[%s281_s5 + $0x20] sm:$0xff]   ;;  %v706_v21 = vld [vmem:[%s281_s5 + $0x18] sm:$0xff]   ;;  %v707_v22 = vld [vmem:[%s281_s5 + $0x10] sm:$0xff]   ;;  %s621_s20 = sshll.u32 (%p808_p6), %s741_s14, 2 }
  0x29   : > { %641 = vmatpush3.bf16.msra.mxu0 %v702_v17  ;;  %v708_v23 = vld [vmem:[%s281_s5 + $0x8] sm:$0xff]   ;;  %v709_v24 = vld [vmem:[%s281_s5] sm:$0xff]   ;;  %s317_s11 = scalar_lea.vmem %s877_s2, %s316_s8  ;;  %s461_s25 = scalar_lea.vmem (%p808_p6), %s878_s3, %s621_s20 }
  0x2a   : > { %642 = vmatprep.subr.bf16.mxu0 %v751_v16  ;;  %v710_v25 = vld [vmem:[%s875_s0] sm:$0xff]  }
  0x2b   : > { %v608_v27 = vld [vmem:[%s317_s11] ss:$0 sm:$0xff] }
  0x2d   : > { %643 = vmatpush3.bf16.msra.mxu0 %v703_v18 }
  0x2e   : > { %644 = vmatprep.subr.bf16.mxu0 %v751_v16 }
  0x31   : > { %645 = vmatpush3.bf16.msra.mxu0 %v704_v19 }
  0x32   : > { %646 = vmatprep.subr.bf16.mxu0 %v751_v16 }
  0x35   : > { %647 = vmatpush3.bf16.msra.mxu0 %v705_v20 }
  0x36   : > { %648 = vmatprep.subr.bf16.mxu0 %v751_v16 }
  0x39   : > { %649 = vmatpush3.bf16.msra.mxu0 %v706_v21 }
  0x3a   : > { %650 = vmatprep.subr.bf16.mxu0 %v751_v16 }
  0x3d   : > { %651 = vmatpush3.bf16.msra.mxu0 %v707_v22 }
  0x3e   : > { %652 = vmatprep.subr.bf16.mxu0 %v751_v16 }
  0x41   : > { %653 = vmatpush3.bf16.msra.mxu0 %v708_v23 }
  0x42   : > { %654 = vmatprep.subr.bf16.mxu0 %v751_v16 }
  0x45   : > { %655 = vmatpush3.bf16.msra.mxu0 %v709_v24 }
  0x48   : > { %657 = vmatmul.mubr.bf16.vlgmr.msra.gmra.mxu0 %v710_v25 }
 0x108   : > { %v433_v26 = vpop.f32.mrf.mxu0 }
 0x109   : > { %v434_v30 = vadd.f32 %v608_v27, %v433_v26 }
 0x10a   : > { %v658_v28 = vpop.f32.mrf.mxu0 }
 0x10c   : > { %v436_v29 = vpop.f32.mrf.mxu0 }
 0x10d   : > { %v437_v31 = vadd.f32 %v608_v27, %v436_v29  ;;  %456 = sbr.rel (!%p808_p6) target bundleno = 282 (0x11a), region = 77 }
 0x10e   : > { %v659_v32 = vpop.f32.mrf.mxu0 }
 0x10f   : > { %v629_v33 = vpack.c.bf16 %v437_v31, %v434_v30 }
 0x111   : > { %630 = vst [vmem:[%s308_s19] sm:$0xff] %v629_v33  }
 0x118   : > { %v478_v34 = vld [vmem:[%s308_s19] sm:$0xf]  ;;  %v480_v35 = vld [vmem:[%s308_s19 + $0x4] sm:$0xf] }
 0x119   : > { %479 = vst [vmem:[%s461_s25] sm:$0xf] %v478_v34  ;;  %481 = vst [vmem:[%s461_s25 + $0xc] sm:$0xf] %v480_v35 }
 0x11a PF: > { %s13_s16 = sadd.s32 1, %s749_s16   ;;  %s880_s12 = smov %s737_s13 }
 0x11b   : > { %p10_p12 = scmp.ge.s32.totalorder %s13_s16, 5   ;;  %s881_s13 = smov %s813_s22 }
 0x11c   : > { %s882_s14 = smov %s745_s15  ;;  %s883_s15 = smov %s885_s17 }
 0x11d   :  { %12 = sbr.rel (!%p10_p12) target bundleno = 3 (0x3), region = 155 }

// kernel: transformer_model_forward.36
= control target key start
LH: loop header
LB: loop body
LE: loop exit
PB: predicated region body
PF: predicated region fallthrough
CT: control target
= control target key end

     0   :  { %s1020_s12 = smov 0   ;;  %s1022_s13 = smov 0   ;;  %s1137_s0 = inlined_call_operand.vmem [shape: bf16[2,8,384], index: 0, kind: input, shape index: {}, may-alias: {0,1,2}]   ;;  %s1138_s1 = inlined_call_operand.vmem [shape: bf16[2,8,384], index: 1, kind: input, shape index: {}, may-alias: {0,1,2}]   ;;  %s1139_s2 = inlined_call_operand.vmem [shape: bf16[2,8,384], index: 2, kind: input, shape index: {}, may-alias: {0,1,2}]   ;;  %s1140_s3 = inlined_call_operand.vmem [shape: bf16[2,8,128], index: 3, kind: output, shape index: {}]  }
   0x1   :  { %s1024_s14 = smov 0  }
   0x2 LB: > { %s25_s15 = sadd.s32 1, %s989_s13  ;;  %p838_p0 = scmp.ge.s32.totalorder %s993_s14, 1  ;;  %s993_s14 = sphi %s1024_s14, %s13_s14   ;;  %s989_s13 = sphi %s1022_s13, %s1142_s13   ;;  %s985_s12 = sphi %s1020_s12, %s1141_s12  }
   0x3   : > { %p27_p1 = scmp.ge.s32.totalorder %s25_s15, 2  ;;  %p179_p2 = scmp.lt.s32.totalorder %s993_s14, 3 }
   0x5   : > { %s1144_s15 = smov (%p27_p1, %s25_s15), 0  ;;  %p180_p3 = pnand %p838_p0, %p179_p2 }
   0x6   : > { %p221_p4 = scmp.lt.s32.totalorder (!%p180_p3), %s985_s12, 1  ;;  %s997_s23 = smov (!%p180_p3), 96  }
   0x7   : > { %183 = sbr.rel (%p180_p3) target bundleno = 1412 (0x584), region = 32  ;;  %s998_s24 = smov (!%p180_p3), 64  }
   0x8   : > { %s999_s25 = smov (!%p180_p3), 32  }
   0xc   : > { %v995_v0 = vmov 0.0   ;;  %vm996_vm0 = vmmov 0   ;;  %s1146_s12 = smov (!%p221_p4, %s985_s12), 1  ;;  %vm253_vm1 = vcmask 261120   ;;  %vm300_vm2 = vcmask 64512  }
   0xd   : > { %874 = vmatprep.subr.bf16.mxu0 %v995_v0  ;;  %876 = vmatprep.mubr.msk.bf16.mxu0 %vm996_vm0, %v995_v0  ;;  %s1047_s16 = smul.u32 12, %s1146_s12  ;;  %vm316_vm3 = vcmask 1043456   ;;  %vm712_vm4 = vcmask 523264   ;;  %s842_s29 = sshll.u32 %s1146_s12, 2  ;;  %vm714_vm5 = vcmask 785408  }
   0xe   : > { %880 = vmatprep.subr.bf16.mxu1 %v995_v0  ;;  %882 = vmatprep.mubr.msk.bf16.mxu1 %vm996_vm0, %v995_v0  ;;  %s248_s5 = scalar_lea.vmem %s1140_s3, %s842_s29 }
   0xf   : > { %s779_s19 = scalar_lea.vmem %s1138_s1, %s1047_s16  ;;  %s229_s22 = scalar_lea.vmem %s1137_s0, %s1047_s16 }
  0x10   : > { %v843_v1 = vld [vmem:[%s779_s19 + $0x4] sm:$0xf]  ;;  %v250_v3 = vld [vmem:[%s229_s22] sm:$0xf]  ;;  %s783_s28 = scalar_lea.vmem %s1139_s2, %s1047_s16 }
  0x11   : > { %v258_v2 = vsel %vm253_vm1, %v843_v1, 0  ;;  %v848_v9 = vcombine.low %v843_v1, %v843_v1  ;;  %v847_v10 = vcombine.low %v250_v3, %v250_v3  ;;  %v1073_v16 = vld [vmem:[%s783_s28 + $0x8] sm:$0xf] }
  0x12   : > { %875 = vmatpush3.bf16.xpose.msra.mxu0 %v258_v2  ;;  %v318_v17 = vsel %vm316_vm3, %v1073_v16, 0  ;;  %v850_v60 = vcombine.low %v1073_v16, %v1073_v16 }
  0x13   : > { %892 = vmatprep.subr.bf16.mxu0 %v995_v0  ;;  %368 = vrot.lane.b32.xlu1 %v848_v9, %s997_s23 }
  0x14   : > { %881 = vmatpush3.bf16.msra.mxu1 %v318_v17 }
  0x15   : > { %886 = vmatprep.subr.bf16.mxu1 %v995_v0 }
  0x17   : > { %363 = vrot.lane.b32.xlu1 %v847_v10, %s997_s23 }
  0x19   : > { %877 = vmatmul.mubr.msk.bf16.vlgmr.msra.gmra.mxu0 %vm253_vm1, %v250_v3 }
  0x1a   : > { %894 = vmatprep.mubr.msk.bf16.mxu0 %vm996_vm0, %v995_v0 }
  0x1b   : > { %479 = vrot.lane.b32.xlu1 %v847_v10, %s998_s24 }
  0x1f   : > { %591 = vrot.lane.b32.xlu1 %v848_v9, %s999_s25 }
  0x23   : > { %589 = vrot.lane.b32.xlu1 %v847_v10, %s999_s25 }
  0x85   : > { %v369_v20 = vpop.permute.xlu1 %368 }
  0x86   : > { %v374_v22 = vsel %vm253_vm1, %v369_v20, 0 }
  0x89   : > { %v364_v24 = vpop.permute.xlu1 %363 }
  0x8d   : > { %v480_v26 = vpop.permute.xlu1 %479 }
  0x91   : > { %v592_v28 = vpop.permute.xlu1 %591 }
  0x92   : > { %v597_v29 = vsel %vm253_vm1, %v592_v28, 0 }
  0x95   : > { %v590_v30 = vpop.permute.xlu1 %589 }
  0xd9   : > { %v294_v4 = vpop.f32.mrf.mxu0 }
  0xda   : > { %v301_v5 = vsel %vm300_vm2, %v294_v4, -inf }
  0xdb   : > { %302 = vmax.xlane.f32.xlu0 %v301_v5  ;;  %v878_v6 = vpop.f32.mrf.mxu0 }
  0xdd   : > { %v297_v7 = vpop.f32.mrf.mxu0 }
  0xdf   : > { %v879_v8 = vpop.f32.mrf.mxu0 }
 0x164   : > { %v303_v11 = vpop.xlane.xlu0 %302 }
 0x165   : > { %v304_v12 = vsub.f32 %v294_v4, %v303_v11 }
 0x167   : > { %v305_v13 = vmul.f32 1.442695, %v304_v12 }
 0x169   : > { %955 = vpow2.f32 %v305_v13 }
 0x176   : > { %v956_v14 = vpop.eup %955 }
 0x177   : > { %v307_v15 = vsel %vm300_vm2, %v956_v14, 0.0 }
 0x178   : > { %308 = vadd.xlane.f32.xlu0 %v307_v15 }
 0x18e   : > { %481 = vrot.lane.b32.xlu0 %v848_v9, %s998_s24 }
 0x201   : > { %v309_v18 = vpop.xlane.xlu0 %308 }
 0x202   : > { %957 = vrcp.f32 %v309_v18 }
 0x205   : > { %v482_v25 = vpop.permute.xlu0 %481 }
 0x206   : > { %v487_v27 = vsel %vm253_vm1, %v482_v25, 0 }
 0x20f   : > { %v958_v19 = vpop.eup %957 }
 0x210   : > { %v311_v21 = vmul.f32 %v958_v19, %v956_v14 }
 0x212   : > { %v312_v23 = vpack.c.bf16 %v311_v21, %v311_v21 }
 0x214   : > { %883 = vmatmul.mubr.msk.bf16.vlgmr.msra.gmra.mxu1 %vm300_vm2, %v312_v23 }
 0x215   : > { %887 = vmatpush3.bf16.xpose.msra.mxu1 %v374_v22  ;;  %888 = vmatprep.mubr.msk.bf16.mxu1 %vm996_vm0, %v995_v0 }
 0x216   : > { %898 = vmatprep.subr.bf16.mxu1 %v995_v0 }
 0x21c   : > { %889 = vmatmul.mubr.msk.bf16.vlgmr.msra.gmra.mxu1 %vm253_vm1, %v364_v24 }
 0x21d   : > { %899 = vmatpush3.bf16.xpose.msra.mxu1 %v487_v27  ;;  %900 = vmatprep.mubr.msk.bf16.mxu1 %vm996_vm0, %v995_v0 }
 0x21e   : > { %910 = vmatprep.subr.bf16.mxu1 %v995_v0 }
 0x224   : > { %901 = vmatmul.mubr.msk.bf16.vlgmr.msra.gmra.mxu1 %vm253_vm1, %v480_v26 }
 0x225   : > { %911 = vmatpush3.bf16.xpose.msra.mxu1 %v597_v29  ;;  %912 = vmatprep.mubr.msk.bf16.mxu1 %vm996_vm0, %v995_v0 }
 0x22c   : > { %913 = vmatmul.mubr.msk.bf16.vlgmr.msra.gmra.mxu1 %vm253_vm1, %v590_v30 }
 0x2d4   : > { %v1094_v31 = vpop.f32.mrf.mxu1 }
 0x2d6   : > { %v884_v32 = vpop.f32.mrf.mxu1 }
 0x2d8   : > { %v357_v33 = vpop.f32.mrf.mxu1 }
 0x2da   : > { %v885_v34 = vpop.f32.mrf.mxu1 }
 0x2dc   : > { %v410_v35 = vpop.f32.mrf.mxu1 }
 0x2dd   : > { %v416_v36 = vsel %vm300_vm2, %v410_v35, -inf }
 0x2de   : > { %417 = vmax.xlane.f32.xlu1 %v416_v36  ;;  %v890_v37 = vpop.f32.mrf.mxu1 }
 0x2e0   : > { %v413_v38 = vpop.f32.mrf.mxu1 }
 0x2e2   : > { %v891_v39 = vpop.f32.mrf.mxu1 }
 0x2e4   : > { %v523_v40 = vpop.f32.mrf.mxu1 }
 0x2e5   : > { %v529_v41 = vsel %vm300_vm2, %v523_v40, -inf }
 0x2e6   : > { %530 = vmax.xlane.f32.xlu0 %v529_v41  ;;  %v902_v42 = vpop.f32.mrf.mxu1 }
 0x2e8   : > { %v526_v43 = vpop.f32.mrf.mxu1 }
 0x2ea   : > { %v903_v44 = vpop.f32.mrf.mxu1 }
 0x2ec   : > { %v633_v45 = vpop.f32.mrf.mxu1 }
 0x2ed   : > { %v639_v46 = vsel %vm300_vm2, %v633_v45, -inf }
 0x2ee   : > { %640 = vmax.xlane.f32.xlu1 %v639_v46  ;;  %v914_v47 = vpop.f32.mrf.mxu1 }
 0x2f0   : > { %v636_v48 = vpop.f32.mrf.mxu1 }
 0x2f2   : > { %v915_v49 = vpop.f32.mrf.mxu1 }
 0x367   : > { %v418_v50 = vpop.xlane.xlu1 %417 }
 0x368   : > { %v419_v51 = vsub.f32 %v410_v35, %v418_v50 }
 0x36a   : > { %v420_v52 = vmul.f32 1.442695, %v419_v51 }
 0x36c   : > { %959 = vpow2.f32 %v420_v52 }
 0x36f   : > { %v531_v53 = vpop.xlane.xlu0 %530 }
 0x370   : > { %v532_v54 = vsub.f32 %v523_v40, %v531_v53 }
 0x372   : > { %v533_v55 = vmul.f32 1.442695, %v532_v54 }
 0x374   : > { %961 = vpow2.f32 %v533_v55 }
 0x377   : > { %v641_v61 = vpop.xlane.xlu1 %640 }
 0x378   : > { %v642_v62 = vsub.f32 %v633_v45, %v641_v61 }
 0x379   : > { %v960_v56 = vpop.eup %959 }
 0x37a   : > { %v422_v57 = vsel %vm300_vm2, %v960_v56, 0.0  ;;  %v643_v63 = vmul.f32 1.442695, %v642_v62 }
 0x37b   : > { %423 = vadd.xlane.f32.xlu1 %v422_v57 }
 0x37c   : > { %963 = vpow2.f32 %v643_v63 }
 0x381   : > { %v962_v58 = vpop.eup %961 }
 0x382   : > { %v535_v59 = vsel %vm300_vm2, %v962_v58, 0.0 }
 0x383   : > { %536 = vadd.xlane.f32.xlu0 %v535_v59 }
 0x389   : > { %v964_v1 = vpop.eup %963 }
 0x38a   : > { %v645_v2 = vsel %vm300_vm2, %v964_v1, 0.0 }
 0x38c   : > { %541 = vrot.lane.b32.xlu1 %v850_v60, %s998_s24 }
 0x399   : > { %431 = vrot.lane.b32.xlu0 %v850_v60, %s997_s23 }
 0x3b0   : > { %646 = vadd.xlane.f32.xlu1 %v645_v2 }
 0x3c1   : > { %651 = vrot.lane.b32.xlu1 %v850_v60, %s999_s25 }
 0x404   : > { %v424_v3 = vpop.xlane.xlu1 %423 }
 0x405   : > { %965 = vrcp.f32 %v424_v3 }
 0x408   : > { %v542_v9 = vpop.permute.xlu1 %541 }
 0x409   : > { %v547_v11 = vsel %vm316_vm3, %v542_v9, 0 }
 0x40c   : > { %v537_v4 = vpop.xlane.xlu0 %536 }
 0x40d   : > { %967 = vrcp.f32 %v537_v4 }
 0x410   : > { %v432_v5 = vpop.permute.xlu0 %431 }
 0x411   : > { %v437_v6 = vsel %vm316_vm3, %v432_v5, 0 }
 0x412   : > { %v966_v7 = vpop.eup %965  ;;  %893 = vmatpush3.bf16.msra.mxu0 %v437_v6 }
 0x413   : > { %904 = vmatprep.subr.bf16.mxu0 %v995_v0  ;;  %v426_v8 = vmul.f32 %v966_v7, %v960_v56 }
 0x415   : > { %v427_v10 = vpack.c.bf16 %v426_v8, %v426_v8 }
 0x417   : > { %895 = vmatmul.mubr.msk.bf16.vlgmr.msra.gmra.mxu0 %vm300_vm2, %v427_v10 }
 0x418   : > { %905 = vmatpush3.bf16.msra.mxu0 %v547_v11  ;;  %906 = vmatprep.mubr.msk.bf16.mxu0 %vm996_vm0, %v995_v0 }
 0x419   : > { %916 = vmatprep.subr.bf16.mxu0 %v995_v0 }
 0x41a   : > { %v968_v12 = vpop.eup %967 }
 0x41b   : > { %v539_v13 = vmul.f32 %v968_v12, %v962_v58 }
 0x41d   : > { %v540_v14 = vpack.c.bf16 %v539_v13, %v539_v13 }
 0x41f   : > { %907 = vmatmul.mubr.msk.bf16.vlgmr.msra.gmra.mxu0 %vm300_vm2, %v540_v14 }
 0x420   : > { %918 = vmatprep.mubr.msk.bf16.mxu0 %vm996_vm0, %v995_v0 }
 0x439   : > { %v647_v15 = vpop.xlane.xlu1 %646 }
 0x43a   : > { %969 = vrcp.f32 %v647_v15 }
 0x43d   : > { %v652_v16 = vpop.permute.xlu1 %651 }
 0x43e   : > { %v657_v17 = vsel %vm316_vm3, %v652_v16, 0 }
 0x43f   : > { %917 = vmatpush3.bf16.msra.mxu0 %v657_v17 }
 0x447   : > { %v970_v18 = vpop.eup %969 }
 0x448   : > { %v649_v19 = vmul.f32 %v970_v18, %v964_v1 }
 0x44a   : > { %v650_v20 = vpack.c.bf16 %v649_v19, %v649_v19 }
 0x44c   : > { %919 = vmatmul.mubr.msk.bf16.vlgmr.msra.gmra.mxu0 %vm300_vm2, %v650_v20 }
 0x4d7   : > { %v473_v21 = vpop.f32.mrf.mxu0 }
 0x4d8   : > { %700 = vrot.lane.b32.xlu0 %v473_v21, %s999_s25 }
 0x4d9   : > { %v896_v22 = vpop.f32.mrf.mxu0 }
 0x4db   : > { %v476_v23 = vpop.f32.mrf.mxu0 }
 0x4dd   : > { %v897_v24 = vpop.f32.mrf.mxu0 }
 0x4df   : > { %v583_v25 = vpop.f32.mrf.mxu0 }
 0x4e0   : > { %704 = vrot.lane.b32.xlu1 %v583_v25, %s998_s24 }
 0x4e1   : > { %v908_v0 = vpop.f32.mrf.mxu0 }
 0x4e3   : > { %v586_v26 = vpop.f32.mrf.mxu0 }
 0x4e5   : > { %v909_v27 = vpop.f32.mrf.mxu0 }
 0x50c   : > { %v693_v28 = vpop.f32.mrf.mxu0 }
 0x50d   : > { %708 = vrot.lane.b32.xlu0 %v693_v28, %s997_s23 }
 0x50e   : > { %v920_v29 = vpop.f32.mrf.mxu0 }
 0x510   : > { %v696_v30 = vpop.f32.mrf.mxu0 }
 0x512   : > { %v921_v32 = vpop.f32.mrf.mxu0 }
 0x54a   : > { %v701_v33 = vpop.permute.xlu0 %700 }
 0x54b   : > { %v711_v35 = vsel %vm253_vm1, %v1094_v31, %v701_v33 }
 0x552   : > { %v705_v34 = vpop.permute.xlu1 %704 }
 0x553   : > { %v713_v36 = vsel %vm712_vm4, %v711_v35, %v705_v34 }
 0x57f   : > { %v709_v37 = vpop.permute.xlu0 %708 }
 0x580   : > { %v715_v38 = vsel %vm714_vm5, %v713_v36, %v709_v37 }
 0x581   : > { %v716_v39 = vpack.c.bf16 %v715_v38, %v715_v38 }
 0x583   : > { %717 = vst [vmem:[%s248_s5] sm:$0xf] %v716_v39 }
 0x584 PF: > { %s13_s14 = sadd.s32 1, %s993_s14   ;;  %s1141_s12 = smov %s989_s13 }
 0x585   : > { %p10_p5 = scmp.ge.s32.totalorder %s13_s14, 4   ;;  %s1142_s13 = smov %s1144_s15 }
 0x587   :  { %12 = sbr.rel (!%p10_p5) target bundleno = 2 (0x2), region = 68 }

// kernel: transformer_model_forward.38
= control target key start
LH: loop header
LB: loop body
LE: loop exit
PB: predicated region body
PF: predicated region fallthrough
CT: control target
= control target key end

     0   :  { %v208_v0 = vmov 0.0   ;;  %vm209_vm0 = vmmov 0   ;;  %s263_s1 = inlined_call_operand.vmem [shape: bf16[128,128], index: 1, kind: input, shape index: {}]   ;;  %s264_s0 = inlined_call_operand.vmem [shape: bf16[16,128], index: 0, kind: input, shape index: {}]   ;;  %s265_s2 = inlined_call_operand.vmem [shape: f32[1,128], index: 2, kind: input, shape index: {}]   ;;  %s266_s3 = inlined_call_operand.vmem [shape: bf16[16,128], index: 3, kind: output, shape index: {}]  }
   0x1   :  { %177 = vmatprep.subr.bf16.mxu0 %v208_v0  ;;  %v199_v1 = vld [vmem:[%s263_s1 + $0x38] sm:$0xff]   ;;  %193 = vmatprep.mubr.msk.bf16.mxu0 %vm209_vm0, %v208_v0  ;;  %v200_v2 = vld [vmem:[%s263_s1 + $0x30] sm:$0xff]   ;;  %v201_v3 = vld [vmem:[%s263_s1 + $0x28] sm:$0xff]  }
   0x2   :  { %178 = vmatpush3.bf16.msra.mxu0 %v199_v1  ;;  %v202_v4 = vld [vmem:[%s263_s1 + $0x20] sm:$0xff]   ;;  %v203_v5 = vld [vmem:[%s263_s1 + $0x18] sm:$0xff]   ;;  %v204_v6 = vld [vmem:[%s263_s1 + $0x10] sm:$0xff]  }
   0x3   :  { %179 = vmatprep.subr.bf16.mxu0 %v208_v0  ;;  %v205_v7 = vld [vmem:[%s263_s1 + $0x8] sm:$0xff]   ;;  %v206_v8 = vld [vmem:[%s263_s1] sm:$0xff]  }
   0x4   :  { %v207_v9 = vld [vmem:[%s264_s0] sm:$0xff]  }
   0x5   :  { %v149_v11 = vld [vmem:[%s265_s2] ss:$0 sm:$0xff] }
   0x6   :  { %180 = vmatpush3.bf16.msra.mxu0 %v200_v2 }
   0x7   :  { %181 = vmatprep.subr.bf16.mxu0 %v208_v0 }
   0xa   :  { %182 = vmatpush3.bf16.msra.mxu0 %v201_v3 }
   0xb   :  { %183 = vmatprep.subr.bf16.mxu0 %v208_v0 }
   0xe   :  { %184 = vmatpush3.bf16.msra.mxu0 %v202_v4 }
   0xf   :  { %185 = vmatprep.subr.bf16.mxu0 %v208_v0 }
  0x12   :  { %186 = vmatpush3.bf16.msra.mxu0 %v203_v5 }
  0x13   :  { %187 = vmatprep.subr.bf16.mxu0 %v208_v0 }
  0x16   :  { %188 = vmatpush3.bf16.msra.mxu0 %v204_v6 }
  0x17   :  { %189 = vmatprep.subr.bf16.mxu0 %v208_v0 }
  0x1a   :  { %190 = vmatpush3.bf16.msra.mxu0 %v205_v7 }
  0x1b   :  { %191 = vmatprep.subr.bf16.mxu0 %v208_v0 }
  0x1e   :  { %192 = vmatpush3.bf16.msra.mxu0 %v206_v8 }
  0x21   :  { %194 = vmatmul.mubr.bf16.vlgmr.msra.gmra.mxu0 %v207_v9 }
  0xe1   :  { %v128_v10 = vpop.f32.mrf.mxu0 }
  0xe2   :  { %v129_v14 = vadd.f32 %v149_v11, %v128_v10 }
  0xe3   :  { %v195_v12 = vpop.f32.mrf.mxu0 }
  0xe5   :  { %v131_v13 = vpop.f32.mrf.mxu0 }
  0xe6   :  { %v132_v15 = vadd.f32 %v149_v11, %v131_v13 }
  0xe7   :  { %v196_v16 = vpop.f32.mrf.mxu0 }
  0xe8   :  { %v166_v17 = vpack.c.bf16 %v132_v15, %v129_v14 }
  0xea   :  { %167 = vst [vmem:[%s266_s3] sm:$0xff] %v166_v17  }

// kernel: transformer_model_forward.37
= control target key start
LH: loop header
LB: loop body
LE: loop exit
PB: predicated region body
PF: predicated region fallthrough
CT: control target
= control target key end

     0   :  { %v274_v0 = vmov 0.0   ;;  %vm275_vm0 = vmmov 0   ;;  %s353_s1 = inlined_call_operand.vmem [shape: bf16[128,128], index: 1, kind: input, shape index: {}]   ;;  %s354_s0 = inlined_call_operand.vmem [shape: bf16[16,128], index: 0, kind: input, shape index: {}]   ;;  %s355_s3 = inlined_call_operand.vmem [shape: bf16[16,128], index: 3, kind: input, shape index: {}]   ;;  %s356_s2 = inlined_call_operand.vmem [shape: f32[1,128], index: 2, kind: input, shape index: {}]   ;;  %s357_s4 = inlined_call_operand.vmem [shape: f32[1,128], index: 4, kind: input, shape index: {}]   ;;  %s358_s5 = inlined_call_operand.vmem [shape: f32[1,128], index: 5, kind: input, shape index: {}]   ;;  %s359_s6 = inlined_call_operand.vmem [shape: bf16[16,128], index: 6, kind: output, shape index: {}]  }
   0x1   :  { %239 = vmatprep.subr.bf16.mxu0 %v274_v0  ;;  %v261_v1 = vld [vmem:[%s353_s1 + $0x38] sm:$0xff]   ;;  %255 = vmatprep.mubr.msk.bf16.mxu0 %vm275_vm0, %v274_v0  ;;  %v262_v2 = vld [vmem:[%s353_s1 + $0x30] sm:$0xff]   ;;  %v263_v3 = vld [vmem:[%s353_s1 + $0x28] sm:$0xff]  }
   0x2   :  { %240 = vmatpush3.bf16.msra.mxu0 %v261_v1  ;;  %v264_v4 = vld [vmem:[%s353_s1 + $0x20] sm:$0xff]   ;;  %v265_v5 = vld [vmem:[%s353_s1 + $0x18] sm:$0xff]   ;;  %v266_v6 = vld [vmem:[%s353_s1 + $0x10] sm:$0xff]  }
   0x3   :  { %241 = vmatprep.subr.bf16.mxu0 %v274_v0  ;;  %v267_v7 = vld [vmem:[%s353_s1 + $0x8] sm:$0xff]   ;;  %v268_v8 = vld [vmem:[%s353_s1] sm:$0xff]  }
   0x4   :  { %v269_v9 = vld [vmem:[%s354_s0] sm:$0xff]  }
   0x5   :  { %v222_v10 = vld [vmem:[%s355_s3] sm:$0xff]  }
   0x6   :  { %242 = vmatpush3.bf16.msra.mxu0 %v262_v2  ;;  %v205_v11 = vld [vmem:[%s356_s2] ss:$0 sm:$0xff]  ;;  %v223_v12 = vunpack.c.l.bf16 %v222_v10  ;;  %v224_v17 = vunpack.c.h.bf16 %v222_v10 }
   0x7   :  { %243 = vmatprep.subr.bf16.mxu0 %v274_v0  ;;  %v215_v38 = vld [vmem:[%s357_s4] ss:$0 sm:$0xff] }
   0x8   :  { %v216_v42 = vld [vmem:[%s358_s5] ss:$0 sm:$0xff] }
   0xa   :  { %244 = vmatpush3.bf16.msra.mxu0 %v263_v3 }
   0xb   :  { %245 = vmatprep.subr.bf16.mxu0 %v274_v0 }
   0xe   :  { %246 = vmatpush3.bf16.msra.mxu0 %v264_v4 }
   0xf   :  { %247 = vmatprep.subr.bf16.mxu0 %v274_v0 }
  0x12   :  { %248 = vmatpush3.bf16.msra.mxu0 %v265_v5 }
  0x13   :  { %249 = vmatprep.subr.bf16.mxu0 %v274_v0 }
  0x16   :  { %250 = vmatpush3.bf16.msra.mxu0 %v266_v6 }
  0x17   :  { %251 = vmatprep.subr.bf16.mxu0 %v274_v0 }
  0x1a   :  { %252 = vmatpush3.bf16.msra.mxu0 %v267_v7 }
  0x1b   :  { %253 = vmatprep.subr.bf16.mxu0 %v274_v0 }
  0x1e   :  { %254 = vmatpush3.bf16.msra.mxu0 %v268_v8 }
  0x21   :  { %256 = vmatmul.mubr.bf16.vlgmr.msra.gmra.mxu0 %v269_v9 }
  0xe1   :  { %v137_v13 = vpop.f32.mrf.mxu0 }
  0xe2   :  { %v138_v14 = vadd.f32 %v205_v11, %v137_v13 }
  0xe3   :  { %v257_v15 = vpop.f32.mrf.mxu0 }
  0xe4   :  { %v148_v16 = vadd.f32 %v223_v12, %v138_v14 }
  0xe5   :  { %v140_v18 = vpop.f32.mrf.mxu0 }
  0xe6   :  { %v141_v19 = vadd.f32 %v205_v11, %v140_v18  ;;  %152 = vadd.xlane.f32.xlu0 %v148_v16 }
  0xe7   :  { %v258_v20 = vpop.f32.mrf.mxu0 }
  0xe8   :  { %v149_v21 = vadd.f32 %v224_v17, %v141_v19 }
  0xea   :  { %154 = vadd.xlane.f32.xlu0 %v149_v21 }
 0x16f   :  { %v153_v22 = vpop.xlane.xlu0 %152 }
 0x170   :  { %v157_v23 = vmul.f32 0.0078125, %v153_v22 }
 0x172   :  { %v159_v24 = vsub.f32 %v148_v16, %v157_v23 }
 0x173   :  { %v155_v25 = vpop.xlane.xlu0 %154 }
 0x174   :  { %v158_v26 = vmul.f32 0.0078125, %v155_v25  ;;  %v161_v27 = vmul.f32 %v159_v24, %v159_v24 }
 0x176   :  { %v160_v28 = vsub.f32 %v149_v21, %v158_v26  ;;  %163 = vadd.xlane.f32.xlu1 %v161_v27 }
 0x178   :  { %v162_v29 = vmul.f32 %v160_v28, %v160_v28 }
 0x17a   :  { %165 = vadd.xlane.f32.xlu1 %v162_v29 }
 0x1ff   :  { %v164_v30 = vpop.xlane.xlu1 %163 }
 0x200   :  { %v167_v31 = vmul.f32 0.0078125, %v164_v30 }
 0x202   :  { %v169_v32 = vadd.f32 1e-05, %v167_v31 }
 0x203   :  { %v166_v33 = vpop.xlane.xlu1 %165 }
 0x204   :  { %270 = vrsqrt.f32 %v169_v32  ;;  %v168_v34 = vmul.f32 0.0078125, %v166_v33 }
 0x206   :  { %v170_v35 = vadd.f32 1e-05, %v168_v34 }
 0x208   :  { %272 = vrsqrt.f32 %v170_v35 }
 0x211   :  { %v271_v36 = vpop.eup %270 }
 0x212   :  { %v173_v37 = vmul.f32 %v271_v36, %v159_v24 }
 0x214   :  { %v181_v40 = vmul.f32 %v215_v38, %v173_v37 }
 0x215   :  { %v273_v39 = vpop.eup %272 }
 0x216   :  { %v174_v41 = vmul.f32 %v273_v39, %v160_v28  ;;  %v189_v44 = vadd.f32 %v216_v42, %v181_v40 }
 0x218   :  { %v182_v43 = vmul.f32 %v215_v38, %v174_v41 }
 0x21a   :  { %v190_v45 = vadd.f32 %v216_v42, %v182_v43 }
 0x21c   :  { %v228_v46 = vpack.c.bf16 %v190_v45, %v189_v44 }
 0x21e   :  { %229 = vst [vmem:[%s359_s6] sm:$0xff] %v228_v46  }

// kernel: transformer_model_forward.40
= control target key start
LH: loop header
LB: loop body
LE: loop exit
PB: predicated region body
PF: predicated region fallthrough
CT: control target
= control target key end

     0   :  { %s1137_s12 = smov 0   ;;  %s1139_s13 = smov 0   ;;  %s1296_s0 = inlined_call_operand.vmem [shape: bf16[2,8,128], index: 0, kind: input, shape index: {}]   ;;  %s1297_s1 = inlined_call_operand.vmem [shape: bf16[2,16,256], index: 1, kind: input, shape index: {}, may-alias: {1,2}]   ;;  %s1298_s2 = inlined_call_operand.vmem [shape: bf16[2,16,256], index: 2, kind: input, shape index: {}, may-alias: {1,2}]   ;;  %s1299_s3 = inlined_call_operand.vmem [shape: bf16[2,8,128], index: 3, kind: output, shape index: {}]  }
   0x1   :  { %s1141_s14 = smov 0   ;;  %s1143_s15 = smov 0  }
   0x2   :  { %s1145_s16 = smov 0  }
   0x3 LB: > { %s25_s17 = sadd.s32 1, %s1106_s15  ;;  %p67_p1 = scmp.ne.s32.totalorder %s1098_s13, %s1094_s12  ;;  %s1110_s16 = sphi %s1145_s16, %s13_s16   ;;  %s1106_s15 = sphi %s1143_s15, %s1304_s15   ;;  %s1102_s14 = sphi %s1141_s14, %s1303_s14   ;;  %s1098_s13 = sphi %s1139_s13, %s1302_s13   ;;  %s1094_s12 = sphi %s1137_s12, %s1301_s12  }
   0x4   : > { %p27_p0 = scmp.ge.s32.totalorder %s25_s17, 2  ;;  %p68_p2 = scmp.eq.s32.totalorder %s1110_s16, 0 }
   0x5   : > { %s60_s20 = sadd.s32 1, %s1098_s13  ;;  %p915_p5 = scmp.ge.s32.totalorder %s1110_s16, 2 }
   0x6   : > { %s1306_s17 = smov (%p27_p0, %s25_s17), 0  ;;  %p1168_p3 = por %p68_p2, %p67_p1 }
   0x7   : > { %s57_s19 = ssub.s32 %s1106_s15, %s1306_s17  ;;  %147 = sbr.rel (%p915_p5) target bundleno = 22 (0x16), region = 16 }
   0x8   : > { %p58_p4 = scmp.eq.s32.totalorder %s57_s19, 0 }
   0xa   : > { %s1176_s21 = scalar_select %p58_p4, %s1098_s13, %s60_s20  }
   0xc   : > { %160 = sbr.rel (!%p1168_p3) target bundleno = 17 (0x11), region = 24  ;;  %s162_s22 = sand.u32 (%p1168_p3), 1, %s1098_s13  }
   0xd   : > { %s942_s23 = sshll.u32 (%p1168_p3), %s1106_s15, 4  ;;  %s916_s24 = sshll.u32 (%p1168_p3), %s162_s22, 3 }
   0xe   : > { %s167_s27 = scalar_lea.vmem (%p1168_p3), %s1297_s1, %s942_s23  ;;  %s164_s28 = scalar_lea.vmem (%p1168_p3), [#allocation2], %s916_s24 }
   0xf   : > { %v184_v0 = vld [vmem:[%s167_s27] sm:$0xf] (%p1168_p3)  ;;  %v186_v1 = vld [vmem:[%s167_s27 + $0x8] sm:$0xf] (%p1168_p3) }
  0x10   : > { %185 = vst [vmem:[%s164_s28] sm:$0xf] (%p1168_p3), %v184_v0  ;;  %187 = vst [vmem:[%s164_s28 + $0x4] sm:$0xf] (%p1168_p3), %v186_v1 }
  0x11 PF: > { %215 = sbr.rel (!%p1168_p3) target bundleno = 22 (0x16), region = 65  ;;  %s217_s29 = sand.u32 (%p1168_p3), 1, %s1098_s13  }
  0x12   : > { %s943_s30 = sshll.u32 (%p1168_p3), %s1106_s15, 4  ;;  %s919_s4 = sshll.u32 (%p1168_p3), %s217_s29, 3 }
  0x13   : > { %s836_s7 = scalar_lea.vmem (%p1168_p3), %s1298_s2, %s943_s30  ;;  %s219_s8 = scalar_lea.vmem (%p1168_p3), [#allocation3], %s919_s4 }
  0x14   : > { %v922_v2 = vld [vmem:[%s836_s7 + $0x4] sm:$0xf] (%p1168_p3)  ;;  %v923_v3 = vld [vmem:[%s836_s7 + $0xc] sm:$0xf] (%p1168_p3) }
  0x15   : > { %241 = vst [vmem:[%s219_s8] sm:$0xf] (%p1168_p3), %v922_v2  ;;  %243 = vst [vmem:[%s219_s8 + $0x4] sm:$0xf] (%p1168_p3), %v923_v3 }
  0x16 PF: > { %p924_p6 = scmp.ge.s32.totalorder %s1110_s16, 1  ;;  %p270_p7 = scmp.lt.s32.totalorder %s1110_s16, 3 }
  0x18   : > { %p271_p8 = pnand %p924_p6, %p270_p7 }
  0x19   : > { %s277_s9 = sand.u32 (!%p271_p8), 1, %s1094_s12   ;;  %p320_p9 = scmp.lt.s32.totalorder (!%p271_p8), %s1102_s14, 1 }
  0x1a   : > { %274 = sbr.rel (%p271_p8) target bundleno = 1428 (0x594), region = 106  ;;  %s1198_s10 = sshll.u32 (!%p271_p8), %s277_s9, 3 }
  0x1b   : > { %s279_s11 = scalar_lea.vmem (!%p271_p8), [#allocation2], %s1198_s10  ;;  %s1114_s22 = smov (!%p271_p8), 96  }
  0x1c   : > { %s1115_s23 = smov (!%p271_p8), 64   ;;  %s1116_s24 = smov (!%p271_p8), 32  }
  0x1d   : > { %s286_s25 = scalar_lea.vmem (!%p271_p8), [#allocation3], %s1198_s10 }
  0x1f   : > { %v1112_v4 = vmov 0.0   ;;  %vm1113_vm0 = vmmov 0   ;;  %vm345_vm1 = vcmask 261120   ;;  %v1053_v5 = vld [vmem:[%s279_s11] sm:$0xff]   ;;  %s1308_s14 = smov (!%p320_p9, %s1102_s14), 1  ;;  %vm392_vm2 = vcmask 130048  }
  0x20   : > { %960 = vmatprep.subr.bf16.mxu0 %v1112_v4  ;;  %962 = vmatprep.mubr.msk.bf16.mxu0 %vm1113_vm0, %v1112_v4  ;;  %v350_v6 = vsel %vm345_vm1, %v1053_v5, 0  ;;  %s927_s12 = sshll.u32 %s1308_s14, 2  ;;  %v1228_v19 = vld [vmem:[%s286_s25] sm:$0xff]   ;;  %vm794_vm3 = vcmask 523264   ;;  %vm796_vm4 = vcmask 785408  }
  0x21   : > { %966 = vmatprep.subr.bf16.mxu1 %v1112_v4  ;;  %968 = vmatprep.mubr.msk.bf16.mxu1 %vm1113_vm0, %v1112_v4  ;;  %s326_s20 = scalar_lea.vmem %s1296_s0, %s927_s12  ;;  %s333_s28 = scalar_lea.vmem %s1299_s3, %s927_s12 }
  0x22   : > { %961 = vmatpush3.bf16.xpose.msra.mxu0 %v350_v6  ;;  %v335_v7 = vld [vmem:[%s326_s20] sm:$0xf]  ;;  %459 = vrot.lane.b32.xlu1 %v1053_v5, %s1114_s22 }
  0x23   : > { %978 = vmatprep.subr.bf16.mxu0 %v1112_v4  ;;  %v933_v13 = vcombine.low %v335_v7, %v335_v7  ;;  %967 = vmatpush3.bf16.msra.mxu1 %v1228_v19 }
  0x24   : > { %972 = vmatprep.subr.bf16.mxu1 %v1112_v4 }
  0x26   : > { %457 = vrot.lane.b32.xlu1 %v933_v13, %s1114_s22 }
  0x29   : > { %963 = vmatmul.mubr.msk.bf16.vlgmr.msra.gmra.mxu0 %vm345_vm1, %v335_v7 }
  0x2a   : > { %980 = vmatprep.mubr.msk.bf16.mxu0 %vm1113_vm0, %v1112_v4  ;;  %565 = vrot.lane.b32.xlu1 %v933_v13, %s1115_s23 }
  0x2e   : > { %675 = vrot.lane.b32.xlu1 %v1053_v5, %s1116_s24 }
  0x32   : > { %673 = vrot.lane.b32.xlu1 %v933_v13, %s1116_s24 }
  0x94   : > { %v460_v22 = vpop.permute.xlu1 %459 }
  0x95   : > { %v465_v24 = vsel %vm345_vm1, %v460_v22, 0 }
  0x98   : > { %v458_v26 = vpop.permute.xlu1 %457 }
  0x9c   : > { %v566_v28 = vpop.permute.xlu1 %565 }
  0xa0   : > { %v676_v30 = vpop.permute.xlu1 %675 }
  0xa1   : > { %v681_v31 = vsel %vm345_vm1, %v676_v30, 0 }
  0xa4   : > { %v674_v32 = vpop.permute.xlu1 %673 }
  0xe9   : > { %v386_v8 = vpop.f32.mrf.mxu0 }
  0xea   : > { %v393_v9 = vsel %vm392_vm2, %v386_v8, -inf }
  0xeb   : > { %394 = vmax.xlane.f32.xlu0 %v393_v9  ;;  %v964_v10 = vpop.f32.mrf.mxu0 }
  0xed   : > { %v389_v11 = vpop.f32.mrf.mxu0 }
  0xef   : > { %v965_v12 = vpop.f32.mrf.mxu0 }
 0x174   : > { %v395_v14 = vpop.xlane.xlu0 %394 }
 0x175   : > { %v396_v15 = vsub.f32 %v386_v8, %v395_v14 }
 0x177   : > { %v397_v16 = vmul.f32 1.442695, %v396_v15 }
 0x179   : > { %1056 = vpow2.f32 %v397_v16 }
 0x186   : > { %v1057_v17 = vpop.eup %1056 }
 0x187   : > { %v399_v18 = vsel %vm392_vm2, %v1057_v17, 0.0 }
 0x188   : > { %400 = vadd.xlane.f32.xlu0 %v399_v18 }
 0x19e   : > { %567 = vrot.lane.b32.xlu0 %v1053_v5, %s1115_s23 }
 0x211   : > { %v401_v20 = vpop.xlane.xlu0 %400 }
 0x212   : > { %1058 = vrcp.f32 %v401_v20 }
 0x215   : > { %v568_v27 = vpop.permute.xlu0 %567 }
 0x216   : > { %v573_v29 = vsel %vm345_vm1, %v568_v27, 0 }
 0x21f   : > { %v1059_v21 = vpop.eup %1058 }
 0x220   : > { %v403_v23 = vmul.f32 %v1059_v21, %v1057_v17 }
 0x222   : > { %v404_v25 = vpack.c.bf16 %v403_v23, %v403_v23 }
 0x224   : > { %969 = vmatmul.mubr.msk.bf16.vlgmr.msra.gmra.mxu1 %vm392_vm2, %v404_v25 }
 0x225   : > { %973 = vmatpush3.bf16.xpose.msra.mxu1 %v465_v24  ;;  %974 = vmatprep.mubr.msk.bf16.mxu1 %vm1113_vm0, %v1112_v4 }
 0x226   : > { %984 = vmatprep.subr.bf16.mxu1 %v1112_v4 }
 0x22c   : > { %975 = vmatmul.mubr.msk.bf16.vlgmr.msra.gmra.mxu1 %vm345_vm1, %v458_v26 }
 0x22d   : > { %985 = vmatpush3.bf16.xpose.msra.mxu1 %v573_v29  ;;  %986 = vmatprep.mubr.msk.bf16.mxu1 %vm1113_vm0, %v1112_v4 }
 0x22e   : > { %996 = vmatprep.subr.bf16.mxu1 %v1112_v4 }
 0x234   : > { %987 = vmatmul.mubr.msk.bf16.vlgmr.msra.gmra.mxu1 %vm345_vm1, %v566_v28 }
 0x235   : > { %997 = vmatpush3.bf16.xpose.msra.mxu1 %v681_v31  ;;  %998 = vmatprep.mubr.msk.bf16.mxu1 %vm1113_vm0, %v1112_v4 }
 0x23c   : > { %999 = vmatmul.mubr.msk.bf16.vlgmr.msra.gmra.mxu1 %vm345_vm1, %v674_v32 }
 0x2e4   : > { %v1248_v33 = vpop.f32.mrf.mxu1 }
 0x2e6   : > { %v970_v34 = vpop.f32.mrf.mxu1 }
 0x2e8   : > { %v451_v35 = vpop.f32.mrf.mxu1 }
 0x2ea   : > { %v971_v36 = vpop.f32.mrf.mxu1 }
 0x2ec   : > { %v501_v37 = vpop.f32.mrf.mxu1 }
 0x2ed   : > { %v507_v38 = vsel %vm392_vm2, %v501_v37, -inf }
 0x2ee   : > { %508 = vmax.xlane.f32.xlu1 %v507_v38  ;;  %v976_v39 = vpop.f32.mrf.mxu1 }
 0x2f0   : > { %v504_v40 = vpop.f32.mrf.mxu1 }
 0x2f2   : > { %v977_v41 = vpop.f32.mrf.mxu1 }
 0x2f4   : > { %v609_v42 = vpop.f32.mrf.mxu1 }
 0x2f5   : > { %v615_v43 = vsel %vm392_vm2, %v609_v42, -inf }
 0x2f6   : > { %616 = vmax.xlane.f32.xlu0 %v615_v43  ;;  %v988_v44 = vpop.f32.mrf.mxu1 }
 0x2f8   : > { %v612_v45 = vpop.f32.mrf.mxu1 }
 0x2fa   : > { %v989_v46 = vpop.f32.mrf.mxu1 }
 0x2fc   : > { %v717_v47 = vpop.f32.mrf.mxu1 }
 0x2fd   : > { %v723_v48 = vsel %vm392_vm2, %v717_v47, -inf }
 0x2fe   : > { %724 = vmax.xlane.f32.xlu1 %v723_v48  ;;  %v1000_v49 = vpop.f32.mrf.mxu1 }
 0x300   : > { %v720_v50 = vpop.f32.mrf.mxu1 }
 0x302   : > { %v1001_v51 = vpop.f32.mrf.mxu1 }
 0x377   : > { %v509_v52 = vpop.xlane.xlu1 %508 }
 0x378   : > { %v510_v53 = vsub.f32 %v501_v37, %v509_v52 }
 0x37a   : > { %v511_v54 = vmul.f32 1.442695, %v510_v53 }
 0x37c   : > { %1060 = vpow2.f32 %v511_v54 }
 0x37f   : > { %v617_v55 = vpop.xlane.xlu0 %616 }
 0x380   : > { %v618_v56 = vsub.f32 %v609_v42, %v617_v55 }
 0x382   : > { %v619_v57 = vmul.f32 1.442695, %v618_v56 }
 0x384   : > { %1062 = vpow2.f32 %v619_v57 }
 0x387   : > { %v725_v62 = vpop.xlane.xlu1 %724 }
 0x388   : > { %v726_v63 = vsub.f32 %v717_v47, %v725_v62 }
 0x389   : > { %v1061_v58 = vpop.eup %1060 }
 0x38a   : > { %v513_v59 = vsel %vm392_vm2, %v1061_v58, 0.0  ;;  %v727_v0 = vmul.f32 1.442695, %v726_v63 }
 0x38b   : > { %514 = vadd.xlane.f32.xlu1 %v513_v59 }
 0x38c   : > { %1064 = vpow2.f32 %v727_v0 }
 0x391   : > { %v1063_v60 = vpop.eup %1062 }
 0x392   : > { %v621_v61 = vsel %vm392_vm2, %v1063_v60, 0.0 }
 0x393   : > { %622 = vadd.xlane.f32.xlu0 %v621_v61 }
 0x399   : > { %v1065_v1 = vpop.eup %1064 }
 0x39a   : > { %v729_v2 = vsel %vm392_vm2, %v1065_v1, 0.0 }
 0x39c   : > { %627 = vrot.lane.b32.xlu1 %v1228_v19, %s1115_s23 }
 0x3a9   : > { %519 = vrot.lane.b32.xlu0 %v1228_v19, %s1114_s22 }
 0x3c0   : > { %730 = vadd.xlane.f32.xlu1 %v729_v2 }
 0x3d1   : > { %735 = vrot.lane.b32.xlu1 %v1228_v19, %s1116_s24 }
 0x414   : > { %v515_v3 = vpop.xlane.xlu1 %514 }
 0x415   : > { %1066 = vrcp.f32 %v515_v3 }
 0x418   : > { %v628_v10 = vpop.permute.xlu1 %627 }
 0x41c   : > { %v623_v5 = vpop.xlane.xlu0 %622 }
 0x41d   : > { %1068 = vrcp.f32 %v623_v5 }
 0x420   : > { %v520_v6 = vpop.permute.xlu0 %519 }
 0x421   : > { %979 = vmatpush3.bf16.msra.mxu0 %v520_v6 }
 0x422   : > { %v1067_v7 = vpop.eup %1066  ;;  %990 = vmatprep.subr.bf16.mxu0 %v1112_v4 }
 0x423   : > { %v517_v8 = vmul.f32 %v1067_v7, %v1061_v58 }
 0x425   : > { %v518_v9 = vpack.c.bf16 %v517_v8, %v517_v8 }
 0x427   : > { %981 = vmatmul.mubr.msk.bf16.vlgmr.msra.gmra.mxu0 %vm392_vm2, %v518_v9 }
 0x428   : > { %991 = vmatpush3.bf16.msra.mxu0 %v628_v10  ;;  %992 = vmatprep.mubr.msk.bf16.mxu0 %vm1113_vm0, %v1112_v4 }
 0x429   : > { %1002 = vmatprep.subr.bf16.mxu0 %v1112_v4 }
 0x42a   : > { %v1069_v11 = vpop.eup %1068 }
 0x42b   : > { %v625_v12 = vmul.f32 %v1069_v11, %v1063_v60 }
 0x42d   : > { %v626_v13 = vpack.c.bf16 %v625_v12, %v625_v12 }
 0x42f   : > { %993 = vmatmul.mubr.msk.bf16.vlgmr.msra.gmra.mxu0 %vm392_vm2, %v626_v13 }
 0x430   : > { %1004 = vmatprep.mubr.msk.bf16.mxu0 %vm1113_vm0, %v1112_v4 }
 0x449   : > { %v731_v14 = vpop.xlane.xlu1 %730 }
 0x44a   : > { %1070 = vrcp.f32 %v731_v14 }
 0x44d   : > { %v736_v15 = vpop.permute.xlu1 %735 }
 0x44e   : > { %1003 = vmatpush3.bf16.msra.mxu0 %v736_v15 }
 0x457   : > { %v1071_v16 = vpop.eup %1070 }
 0x458   : > { %v733_v17 = vmul.f32 %v1071_v16, %v1065_v1 }
 0x45a   : > { %v734_v18 = vpack.c.bf16 %v733_v17, %v733_v17 }
 0x45c   : > { %1005 = vmatmul.mubr.msk.bf16.vlgmr.msra.gmra.mxu0 %vm392_vm2, %v734_v18 }
 0x4e7   : > { %v559_v19 = vpop.f32.mrf.mxu0 }
 0x4e8   : > { %782 = vrot.lane.b32.xlu0 %v559_v19, %s1116_s24 }
 0x4e9   : > { %v982_v20 = vpop.f32.mrf.mxu0 }
 0x4eb   : > { %v562_v21 = vpop.f32.mrf.mxu0 }
 0x4ed   : > { %v983_v22 = vpop.f32.mrf.mxu0 }
 0x4ef   : > { %v667_v23 = vpop.f32.mrf.mxu0 }
 0x4f0   : > { %786 = vrot.lane.b32.xlu1 %v667_v23, %s1115_s23 }
 0x4f1   : > { %v994_v4 = vpop.f32.mrf.mxu0 }
 0x4f3   : > { %v670_v24 = vpop.f32.mrf.mxu0 }
 0x4f5   : > { %v995_v25 = vpop.f32.mrf.mxu0 }
 0x51c   : > { %v775_v26 = vpop.f32.mrf.mxu0 }
 0x51d   : > { %790 = vrot.lane.b32.xlu0 %v775_v26, %s1114_s22 }
 0x51e   : > { %v1006_v27 = vpop.f32.mrf.mxu0 }
 0x520   : > { %v778_v28 = vpop.f32.mrf.mxu0 }
 0x522   : > { %v1007_v29 = vpop.f32.mrf.mxu0 }
 0x55a   : > { %v783_v30 = vpop.permute.xlu0 %782 }
 0x55b   : > { %v793_v32 = vsel %vm345_vm1, %v1248_v33, %v783_v30 }
 0x562   : > { %v787_v31 = vpop.permute.xlu1 %786 }
 0x563   : > { %v795_v34 = vsel %vm794_vm3, %v793_v32, %v787_v31 }
 0x58f   : > { %v791_v35 = vpop.permute.xlu0 %790 }
 0x590   : > { %v797_v36 = vsel %vm796_vm4, %v795_v34, %v791_v35 }
 0x591   : > { %v798_v37 = vpack.c.bf16 %v797_v36, %v797_v36 }
 0x593   : > { %799 = vst [vmem:[%s333_s28] sm:$0xf] %v798_v37 }
 0x594 PF: > { %s13_s16 = sadd.s32 1, %s1110_s16   ;;  %s1301_s12 = smov %s1098_s13 }
 0x595   : > { %p10_p10 = scmp.ge.s32.totalorder %s13_s16, 4   ;;  %s1302_s13 = smov %s1176_s21 }
 0x596   : > { %s1303_s14 = smov %s1106_s15  ;;  %s1304_s15 = smov %s1306_s17 }
 0x597   :  { %12 = sbr.rel (!%p10_p10) target bundleno = 3 (0x3), region = 160 }

// kernel: transformer_model_forward.51
= control target key start
LH: loop header
LB: loop body
LE: loop exit
PB: predicated region body
PF: predicated region fallthrough
CT: control target
= control target key end

     0   :  { %v277_v22 = vmov 0   ;;  %v85_v45 = vlaneseq  ;;  %s380_s0 = inlined_call_operand.vmem [shape: bf16[16,128], index: 0, kind: input, shape index: {}]   ;;  %s381_s3 = inlined_call_operand.vmem [shape: bf16[128,256], index: 3, kind: input, shape index: {}]   ;;  %s382_s1 = inlined_call_operand.vmem [shape: f32[1,128], index: 1, kind: input, shape index: {}]   ;;  %s383_s2 = inlined_call_operand.vmem [shape: f32[1,128], index: 2, kind: input, shape index: {}]   ;;  %s384_s4 = inlined_call_operand.vmem [shape: f32[1,256], index: 4, kind: input, shape index: {}]   ;;  %s385_s5 = inlined_call_operand.vmem [shape: f32[16,256], index: 5, kind: output, shape index: {}]  }
   0x1   :  { %v245_v0 = vld [vmem:[%s380_s0] sm:$0xff]   ;;  %v249_v3 = vld [vmem:[%s381_s3 + $0x74] ss:$8 sps:$4 sm:$0xff]   ;;  %v251_v4 = vld [vmem:[%s381_s3 + $0x70] ss:$8 sps:$4 sm:$0xff]   ;;  %207 = vmatprep.mubr.bf16.mxu0 %v277_v22 }
   0x2   :  { %v246_v1 = vunpack.c.l.bf16 %v245_v0  ;;  %v247_v2 = vunpack.c.h.bf16 %v245_v0  ;;  %175 = vmatprep.subr.bf16.mxu0 %v249_v3  ;;  %v252_v13 = vld [vmem:[%s381_s3 + $0x64] ss:$8 sps:$4 sm:$0xff]   ;;  %v254_v14 = vld [vmem:[%s381_s3 + $0x60] ss:$8 sps:$4 sm:$0xff]   ;;  %v255_v15 = vld [vmem:[%s381_s3 + $0x54] ss:$8 sps:$4 sm:$0xff]  }
   0x3   :  { %176 = vmatpush1.bf16.msra.mxu0 %v251_v4  ;;  %v257_v16 = vld [vmem:[%s381_s3 + $0x50] ss:$8 sps:$4 sm:$0xff]   ;;  %v258_v17 = vld [vmem:[%s381_s3 + $0x44] ss:$8 sps:$4 sm:$0xff]   ;;  %v260_v18 = vld [vmem:[%s381_s3 + $0x40] ss:$8 sps:$4 sm:$0xff]  }
   0x4   :  { %27 = vadd.xlane.f32.xlu0 %v246_v1  ;;  %177 = vmatprep.subr.bf16.mxu0 %v252_v13  ;;  %v261_v19 = vld [vmem:[%s381_s3 + $0x34] ss:$8 sps:$4 sm:$0xff]   ;;  %v263_v20 = vld [vmem:[%s381_s3 + $0x30] ss:$8 sps:$4 sm:$0xff]   ;;  %v264_v21 = vld [vmem:[%s381_s3 + $0x24] ss:$8 sps:$4 sm:$0xff]  }
   0x5   :  { %v266_v23 = vld [vmem:[%s381_s3 + $0x20] ss:$8 sps:$4 sm:$0xff]   ;;  %v267_v24 = vld [vmem:[%s381_s3 + $0x14] ss:$8 sps:$4 sm:$0xff]   ;;  %v269_v25 = vld [vmem:[%s381_s3 + $0x10] ss:$8 sps:$4 sm:$0xff]  }
   0x6   :  { %v270_v26 = vld [vmem:[%s381_s3 + $0x4] ss:$8 sps:$4 sm:$0xff]   ;;  %v272_v27 = vld [vmem:[%s381_s3] ss:$8 sps:$4 sm:$0xff]   ;;  %v86_v46 = vshrl.u32 %v85_v45, 7 }
   0x7   :  { %178 = vmatpush1.bf16.msra.mxu0 %v254_v14  ;;  %v226_v36 = vld [vmem:[%s382_s1] ss:$0 sm:$0xff] }
   0x8   :  { %29 = vadd.xlane.f32.xlu0 %v247_v2  ;;  %179 = vmatprep.subr.bf16.mxu0 %v255_v15  ;;  %v227_v40 = vld [vmem:[%s383_s2] ss:$0 sm:$0xff]  ;;  %v87_v47 = vsub.s32 0, %v86_v46  ;;  %v91_v49 = vsub.s32 1, %v86_v46 }
   0x9   :  { %v83_v48 = vld [vmem:[%s384_s4] sm:$0x3] }
   0xa   :  { %v88_v50 = vrot.slane %v83_v48, %v87_v47  ;;  %v92_v51 = vrot.slane %v83_v48, %v91_v49 }
   0xb   :  { %180 = vmatpush1.bf16.msra.mxu0 %v257_v16 }
   0xc   :  { %181 = vmatprep.subr.bf16.mxu0 %v258_v17 }
   0xf   :  { %182 = vmatpush1.bf16.msra.mxu0 %v260_v18 }
  0x10   :  { %183 = vmatprep.subr.bf16.mxu0 %v261_v19 }
  0x13   :  { %184 = vmatpush1.bf16.msra.mxu0 %v263_v20 }
  0x14   :  { %185 = vmatprep.subr.bf16.mxu0 %v264_v21 }
  0x17   :  { %186 = vmatpush1.bf16.msra.mxu0 %v266_v23 }
  0x18   :  { %187 = vmatprep.subr.bf16.mxu0 %v267_v24 }
  0x1b   :  { %188 = vmatpush1.bf16.msra.mxu0 %v269_v25 }
  0x1c   :  { %189 = vmatprep.subr.bf16.mxu0 %v270_v26 }
  0x1f   :  { %190 = vmatpush1.bf16.msra.mxu0 %v272_v27 }
  0x8d   :  { %v28_v5 = vpop.xlane.xlu0 %27 }
  0x8e   :  { %v32_v6 = vmul.f32 0.0078125, %v28_v5 }
  0x90   :  { %v34_v7 = vsub.f32 %v246_v1, %v32_v6 }
  0x91   :  { %v30_v8 = vpop.xlane.xlu0 %29 }
  0x92   :  { %v33_v9 = vmul.f32 0.0078125, %v30_v8  ;;  %v36_v10 = vmul.f32 %v34_v7, %v34_v7 }
  0x94   :  { %v35_v11 = vsub.f32 %v247_v2, %v33_v9  ;;  %38 = vadd.xlane.f32.xlu1 %v36_v10 }
  0x96   :  { %v37_v12 = vmul.f32 %v35_v11, %v35_v11 }
  0x98   :  { %40 = vadd.xlane.f32.xlu1 %v37_v12 }
 0x11d   :  { %v39_v28 = vpop.xlane.xlu1 %38 }
 0x11e   :  { %v42_v29 = vmul.f32 0.0078125, %v39_v28 }
 0x120   :  { %v44_v30 = vadd.f32 1e-05, %v42_v29 }
 0x121   :  { %v41_v31 = vpop.xlane.xlu1 %40 }
 0x122   :  { %273 = vrsqrt.f32 %v44_v30  ;;  %v43_v32 = vmul.f32 0.0078125, %v41_v31 }
 0x124   :  { %v45_v33 = vadd.f32 1e-05, %v43_v32 }
 0x126   :  { %275 = vrsqrt.f32 %v45_v33 }
 0x12f   :  { %v274_v34 = vpop.eup %273 }
 0x130   :  { %v48_v35 = vmul.f32 %v274_v34, %v34_v7 }
 0x132   :  { %v56_v39 = vmul.f32 %v226_v36, %v48_v35 }
 0x133   :  { %v276_v37 = vpop.eup %275 }
 0x134   :  { %v49_v38 = vmul.f32 %v276_v37, %v35_v11  ;;  %v64_v42 = vadd.f32 %v227_v40, %v56_v39 }
 0x136   :  { %v57_v41 = vmul.f32 %v226_v36, %v49_v38 }
 0x138   :  { %v65_v43 = vadd.f32 %v227_v40, %v57_v41 }
 0x13a   :  { %v66_v44 = vpack.c.bf16 %v65_v43, %v64_v42 }
 0x13c   :  { %208 = vmatmul.mubr.bf16.vlgmr.msra.gmra.mxu0 %v66_v44 }
 0x1fc   :  { %v209_v52 = vpop.f32.mrf.mxu0 }
 0x1fd   :  { %v210_v53 = vadd.f32 %v209_v52, %v88_v50 }
 0x1fe   :  { %v211_v54 = vpop.f32.mrf.mxu0 }
 0x1ff   :  { %218 = vst [vmem:[%s385_s5] sm:$0xff] %v210_v53  ;;  %v212_v55 = vadd.f32 %v211_v54, %v92_v51 }
 0x200   :  { %v213_v56 = vpop.f32.mrf.mxu0 }
 0x201   :  { %219 = vst [vmem:[%s385_s5 + $0x8] sm:$0xff] %v212_v55  ;;  %v214_v57 = vadd.f32 %v213_v56, %v88_v50 }
 0x202   :  { %v215_v58 = vpop.f32.mrf.mxu0 }
 0x203   :  { %220 = vst [vmem:[%s385_s5 + $0x10] sm:$0xff] %v214_v57  ;;  %v216_v59 = vadd.f32 %v215_v58, %v92_v51 }
 0x205   :  { %221 = vst [vmem:[%s385_s5 + $0x18] sm:$0xff] %v216_v59 }

// kernel: transformer_model_forward.42
= control target key start
LH: loop header
LB: loop body
LE: loop exit
PB: predicated region body
PF: predicated region fallthrough
CT: control target
= control target key end

     0   :  { %v541_v1 = vmov 0   ;;  %v47_v34 = vlaneseq  ;;  %s696_s1 = inlined_call_operand.vmem [shape: bf16[128,256], index: 1, kind: input, shape index: {}]   ;;  %s697_s3 = inlined_call_operand.vmem [shape: bf16[256,128], index: 3, kind: input, shape index: {}]   ;;  %s698_s0 = inlined_call_operand.vmem [shape: bf16[16,128], index: 0, kind: input, shape index: {}]   ;;  %s699_s2 = inlined_call_operand.vmem [shape: f32[1,256], index: 2, kind: input, shape index: {}]   ;;  %s700_s4 = inlined_call_operand.vmem [shape: f32[1,128], index: 4, kind: input, shape index: {}]   ;;  %s701_s5 = inlined_call_operand.vmem [shape: f32[1,128], index: 5, kind: input, shape index: {}]   ;;  %s702_s6 = inlined_call_operand.vmem [shape: f32[1,128], index: 6, kind: input, shape index: {}]   ;;  %s703_s7 = inlined_call_operand.vmem [shape: bf16[16,128], index: 7, kind: output, shape index: {}]  }
   0x1   :  { %v495_v0 = vld [vmem:[%s696_s1 + $0x74] ss:$8 sps:$4 sm:$0xff]   ;;  %175 = vmatprep.mubr.bf16.mxu0 %v541_v1  ;;  %v497_v2 = vld [vmem:[%s696_s1 + $0x70] ss:$8 sps:$4 sm:$0xff]   ;;  %v498_v3 = vld [vmem:[%s696_s1 + $0x64] ss:$8 sps:$4 sm:$0xff]  }
   0x2   :  { %143 = vmatprep.subr.bf16.mxu0 %v495_v0  ;;  %v500_v4 = vld [vmem:[%s696_s1 + $0x60] ss:$8 sps:$4 sm:$0xff]   ;;  %v501_v5 = vld [vmem:[%s696_s1 + $0x54] ss:$8 sps:$4 sm:$0xff]   ;;  %v503_v6 = vld [vmem:[%s696_s1 + $0x50] ss:$8 sps:$4 sm:$0xff]  }
   0x3   :  { %144 = vmatpush1.bf16.msra.mxu0 %v497_v2  ;;  %v504_v7 = vld [vmem:[%s696_s1 + $0x44] ss:$8 sps:$4 sm:$0xff]   ;;  %v506_v8 = vld [vmem:[%s696_s1 + $0x40] ss:$8 sps:$4 sm:$0xff]   ;;  %v507_v9 = vld [vmem:[%s696_s1 + $0x34] ss:$8 sps:$4 sm:$0xff]  }
   0x4   :  { %145 = vmatprep.subr.bf16.mxu0 %v498_v3  ;;  %v520_v10 = vld [vmem:[%s697_s3 + $0x78] sm:$0xff]   ;;  %v522_v13 = vld [vmem:[%s697_s3 + $0x70] sm:$0xff]   ;;  %v524_v15 = vld [vmem:[%s697_s3 + $0x68] sm:$0xff]   ;;  %v48_v35 = vshrl.u32 %v47_v34, 7 }
   0x5   :  { %v521_v11 = vld [vmem:[%s697_s3 + $0x38] sm:$0xff]   ;;  %472 = vmatprep.subr.bf16.mxu1 %v520_v10  ;;  %v523_v14 = vld [vmem:[%s697_s3 + $0x30] sm:$0xff]   ;;  %v510_v16 = vld [vmem:[%s696_s1 + $0x24] ss:$8 sps:$4 sm:$0xff]  }
   0x6   :  { %v509_v12 = vld [vmem:[%s696_s1 + $0x30] ss:$8 sps:$4 sm:$0xff]   ;;  %473 = vmatpush3.bf16.msra.mxu1 %v521_v11  ;;  %v512_v17 = vld [vmem:[%s696_s1 + $0x20] ss:$8 sps:$4 sm:$0xff]   ;;  %v513_v18 = vld [vmem:[%s696_s1 + $0x14] ss:$8 sps:$4 sm:$0xff]  }
   0x7   :  { %146 = vmatpush1.bf16.msra.mxu0 %v500_v4  ;;  %474 = vmatprep.subr.bf16.mxu1 %v522_v13  ;;  %v525_v19 = vld [vmem:[%s697_s3 + $0x28] sm:$0xff]   ;;  %v526_v20 = vld [vmem:[%s697_s3 + $0x60] sm:$0xff]   ;;  %v515_v22 = vld [vmem:[%s696_s1 + $0x10] ss:$8 sps:$4 sm:$0xff]   ;;  %v53_v36 = vsub.s32 1, %v48_v35  ;;  %v49_v37 = vsub.s32 0, %v48_v35 }
   0x8   :  { %147 = vmatprep.subr.bf16.mxu0 %v501_v5  ;;  %v527_v21 = vld [vmem:[%s697_s3 + $0x20] sm:$0xff]   ;;  %v528_v23 = vld [vmem:[%s697_s3 + $0x58] sm:$0xff]   ;;  %v530_v28 = vld [vmem:[%s697_s3 + $0x50] sm:$0xff]  }
   0x9   :  { %v516_v24 = vld [vmem:[%s696_s1 + $0x4] ss:$8 sps:$4 sm:$0xff]   ;;  %v529_v25 = vld [vmem:[%s697_s3 + $0x18] sm:$0xff]   ;;  %v518_v26 = vld [vmem:[%s696_s1] ss:$8 sps:$4 sm:$0xff]  }
   0xa   :  { %475 = vmatpush3.bf16.msra.mxu1 %v523_v14  ;;  %v27_v27 = vld [vmem:[%s698_s0] sm:$0xff]   ;;  %v531_v29 = vld [vmem:[%s697_s3 + $0x10] sm:$0xff]   ;;  %v532_v30 = vld [vmem:[%s697_s3 + $0x48] sm:$0xff]  }
   0xb   :  { %148 = vmatpush1.bf16.msra.mxu0 %v503_v6  ;;  %476 = vmatprep.subr.bf16.mxu1 %v524_v15  ;;  %v533_v31 = vld [vmem:[%s697_s3 + $0x8] sm:$0xff]   ;;  %v534_v32 = vld [vmem:[%s697_s3 + $0x40] sm:$0xff]   ;;  %v368_v59 = vunpack.c.l.bf16 %v27_v27  ;;  %v369_v1 = vunpack.c.h.bf16 %v27_v27 }
   0xc   :  { %149 = vmatprep.subr.bf16.mxu0 %v504_v7  ;;  %v535_v33 = vld [vmem:[%s697_s3] sm:$0xff]  }
   0xd   :  { %v45_v38 = vld [vmem:[%s699_s2] sm:$0x3] }
   0xe   :  { %477 = vmatpush3.bf16.msra.mxu1 %v525_v19  ;;  %v54_v40 = vrot.slane %v45_v38, %v53_v36  ;;  %v50_v41 = vrot.slane %v45_v38, %v49_v37  ;;  %v444_v56 = vld [vmem:[%s700_s4] ss:$0 sm:$0xff] }
   0xf   :  { %150 = vmatpush1.bf16.msra.mxu0 %v506_v8  ;;  %478 = vmatprep.subr.bf16.mxu1 %v526_v20  ;;  %v461_v20 = vld [vmem:[%s701_s5] ss:$0 sm:$0xff] }
  0x10   :  { %151 = vmatprep.subr.bf16.mxu0 %v507_v9 }
  0x12   :  { %479 = vmatpush3.bf16.msra.mxu1 %v527_v21 }
  0x13   :  { %152 = vmatpush1.bf16.msra.mxu0 %v509_v12  ;;  %480 = vmatprep.subr.bf16.mxu1 %v528_v23 }
  0x14   :  { %153 = vmatprep.subr.bf16.mxu0 %v510_v16 }
  0x16   :  { %481 = vmatpush3.bf16.msra.mxu1 %v529_v25 }
  0x17   :  { %154 = vmatpush1.bf16.msra.mxu0 %v512_v17  ;;  %482 = vmatprep.subr.bf16.mxu1 %v530_v28 }
  0x18   :  { %155 = vmatprep.subr.bf16.mxu0 %v513_v18 }
  0x1a   :  { %483 = vmatpush3.bf16.msra.mxu1 %v531_v29 }
  0x1b   :  { %156 = vmatpush1.bf16.msra.mxu0 %v515_v22  ;;  %484 = vmatprep.subr.bf16.mxu1 %v532_v30 }
  0x1c   :  { %157 = vmatprep.subr.bf16.mxu0 %v516_v24  ;;  %v462_v24 = vld [vmem:[%s702_s6] ss:$0 sm:$0xff] }
  0x1e   :  { %485 = vmatpush3.bf16.msra.mxu1 %v533_v31 }
  0x1f   :  { %158 = vmatpush1.bf16.msra.mxu0 %v518_v26  ;;  %486 = vmatprep.subr.bf16.mxu1 %v534_v32 }
  0x22   :  { %176 = vmatmul.mubr.bf16.vlgmr.msra.gmra.mxu0 %v27_v27  ;;  %487 = vmatpush3.bf16.msra.mxu1 %v535_v33 }
  0xe2   :  { %v177_v39 = vpop.f32.mrf.mxu0 }
  0xe3   :  { %v178_v46 = vadd.f32 %v177_v39, %v50_v41 }
  0xe4   :  { %v179_v42 = vpop.f32.mrf.mxu0 }
  0xe5   :  { %v180_v44 = vadd.f32 %v179_v42, %v54_v40  ;;  %v186_v52 = vmax.f32 %v178_v46, 0.0 }
  0xe6   :  { %v181_v43 = vpop.f32.mrf.mxu0 }
  0xe7   :  { %v182_v45 = vadd.f32 %v181_v43, %v50_v41  ;;  %v187_v50 = vmax.f32 %v180_v44, 0.0 }
  0xe8   :  { %v183_v47 = vpop.f32.mrf.mxu0 }
  0xe9   :  { %v184_v48 = vadd.f32 %v183_v47, %v54_v40  ;;  %v188_v49 = vmax.f32 %v182_v45, 0.0 }
  0xeb   :  { %v189_v51 = vmax.f32 %v184_v48, 0.0  ;;  %v190_v54 = vpack.c.bf16 %v188_v49, %v186_v52 }
  0xed   :  { %v191_v53 = vpack.c.bf16 %v189_v51, %v187_v50 }
  0xef   :  { %359 = vmatprep.mubr.bf16.mxu1 %v191_v53 }
  0xf0   :  { %360 = vmatmul.mubr.bf16.vlgmr.msra.gmra.mxu1 %v190_v54 }
 0x1b0   :  { %v488_v55 = vpop.f32.mrf.mxu1 }
 0x1b2   :  { %v489_v57 = vpop.f32.mrf.mxu1 }
 0x1b3   :  { %v490_v58 = vadd.f32 %v489_v57, %v488_v55 }
 0x1b4   :  { %v491_v60 = vpop.f32.mrf.mxu1 }
 0x1b5   :  { %v362_v61 = vadd.f32 %v490_v58, %v444_v56 }
 0x1b6   :  { %v492_v62 = vpop.f32.mrf.mxu1 }
 0x1b7   :  { %v493_v63 = vadd.f32 %v492_v62, %v491_v60  ;;  %v370_v0 = vadd.f32 %v368_v59, %v362_v61 }
 0x1b9   :  { %v365_v2 = vadd.f32 %v493_v63, %v444_v56  ;;  %374 = vadd.xlane.f32.xlu0 %v370_v0 }
 0x1bb   :  { %v371_v3 = vadd.f32 %v369_v1, %v365_v2 }
 0x1bd   :  { %376 = vadd.xlane.f32.xlu0 %v371_v3 }
 0x242   :  { %v375_v4 = vpop.xlane.xlu0 %374 }
 0x243   :  { %v379_v5 = vmul.f32 0.0078125, %v375_v4 }
 0x245   :  { %v381_v6 = vsub.f32 %v370_v0, %v379_v5 }
 0x246   :  { %v377_v7 = vpop.xlane.xlu0 %376 }
 0x247   :  { %v380_v8 = vmul.f32 0.0078125, %v377_v7  ;;  %v383_v9 = vmul.f32 %v381_v6, %v381_v6 }
 0x249   :  { %v382_v10 = vsub.f32 %v371_v3, %v380_v8  ;;  %385 = vadd.xlane.f32.xlu1 %v383_v9 }
 0x24b   :  { %v384_v11 = vmul.f32 %v382_v10, %v382_v10 }
 0x24d   :  { %387 = vadd.xlane.f32.xlu1 %v384_v11 }
 0x2d2   :  { %v386_v12 = vpop.xlane.xlu1 %385 }
 0x2d3   :  { %v389_v13 = vmul.f32 0.0078125, %v386_v12 }
 0x2d5   :  { %v391_v14 = vadd.f32 1e-05, %v389_v13 }
 0x2d6   :  { %v388_v15 = vpop.xlane.xlu1 %387 }
 0x2d7   :  { %537 = vrsqrt.f32 %v391_v14  ;;  %v390_v16 = vmul.f32 0.0078125, %v388_v15 }
 0x2d9   :  { %v392_v17 = vadd.f32 1e-05, %v390_v16 }
 0x2db   :  { %539 = vrsqrt.f32 %v392_v17 }
 0x2e4   :  { %v538_v18 = vpop.eup %537 }
 0x2e5   :  { %v395_v19 = vmul.f32 %v538_v18, %v381_v6 }
 0x2e7   :  { %v403_v22 = vmul.f32 %v461_v20, %v395_v19 }
 0x2e8   :  { %v540_v21 = vpop.eup %539 }
 0x2e9   :  { %v396_v23 = vmul.f32 %v540_v21, %v382_v10  ;;  %v411_v26 = vadd.f32 %v462_v24, %v403_v22 }
 0x2eb   :  { %v404_v25 = vmul.f32 %v461_v20, %v396_v23 }
 0x2ed   :  { %v412_v27 = vadd.f32 %v462_v24, %v404_v25 }
 0x2ef   :  { %v470_v28 = vpack.c.bf16 %v412_v27, %v411_v26 }
 0x2f1   :  { %471 = vst [vmem:[%s703_s7] sm:$0xff] %v470_v28  }

</bundles_post_ra>
